<compile_context>
chip_gen: v6e
topology: v6e:2x2x1
jax: 0.10.0
libtpu: 0.0.40
codegen_flags: <defaults>
</compile_context>

<pallas_src>
import functools

import jax
import jax.numpy as jnp
from jax import lax
from jax.experimental import pallas as pl
from jax.experimental.pallas import tpu as pltpu

PCD_FEAT = 256               # per-cloud feature width
H1, H2, OUT = 512, 256, 3
OUT_PAD = 128                # lane-dense padded output width (wrapper slices to OUT)


def _dynamics_kernel(n_chunks, nc,
                     cloud_ref, wpt_ref, bp_ref,
                     w1_ref, b1_ref, w2_ref, b2_ref, w3_ref, b3_ref,
                     out_ref, acc_ref):
    """grid = (batch_tiles, clouds).  One grid step encodes a single point cloud and
    accumulates its fc1 partial; fc2/fc3 + store run on the last cloud."""
    g = pl.program_id(1)

    @pl.when(g == 0)
    def _init():
        acc_ref[...] = jnp.zeros_like(acc_ref)

    # Shared 3->256 point MLP as 3 VPU broadcast-MACs (K=3 never touches the MXU).
    wpt = wpt_ref[...]                      # (F, 3) f32
    wx = wpt[None, :, 0:1]                  # (1, F, 1)
    wy = wpt[None, :, 1:2]
    wz = wpt[None, :, 2:3]

    def chunk_feat_max(pts):                # pts: (BT, 3, nc) f32 -> (BT, F)
        feat = (wx * pts[:, 0:1, :]
                + wy * pts[:, 1:2, :]
                + wz * pts[:, 2:3, :])      # (BT, F, nc) — live only for this chunk
        return jnp.max(feat, axis=-1)       # lane reduce (XLU slot, VPU stays free)

    if n_chunks == 1:
        pooled = chunk_feat_max(cloud_ref[...])
    else:
        def body(c, running):
            start = pl.multiple_of(c * nc, nc)
            return jnp.maximum(running,
                               chunk_feat_max(cloud_ref[:, :, pl.ds(start, nc)]))
        init = jnp.full((cloud_ref.shape[0], wpt_ref.shape[0]), -jnp.inf, jnp.float32)
        pooled = lax.fori_loop(0, n_chunks, body, init)

    # relu(max_n(x@Wp) + b) == max_n(relu(x@Wp + b))  (relu monotone, per-feature bias).
    enc = jnp.maximum(pooled + bp_ref[...], 0.0)                 # (BT, F)

    # fc1 partial for this cloud (K=256 MXU dot, f32 accumulation in VMEM scratch);
    # the MXU work pipelines under the VPU-bound encoder of neighboring grid steps.
    acc_ref[...] += jnp.dot(enc.astype(w1_ref.dtype), w1_ref[...],
                            preferred_element_type=jnp.float32)

    @pl.when(g == pl.num_programs(1) - 1)
    def _finalize():
        h = jnp.maximum(acc_ref[...] + b1_ref[...], 0.0)                    # (BT, 512)
        h = jnp.dot(h.astype(w2_ref.dtype), w2_ref[...],
                    preferred_element_type=jnp.float32) + b2_ref[...]
        h = jnp.maximum(h, 0.0)                                             # (BT, 256)
        out = jnp.dot(h.astype(w3_ref.dtype), w3_ref[...],
                      preferred_element_type=jnp.float32) + b3_ref[...]
        out_ref[...] = out.astype(out_ref.dtype)                            # (BT, 128)


@jax.jit
def dynamics_forward(params, ee_pose, ee_pcd, hand_depth, front_depth,
                     hand_pcd, front_pcd, hand_seg, front_seg):
    """Matches Dynamics_model.forward (hand_pcd / depth / seg / ee-pose never reach
    the output).  Jitted so the cloud stack/transpose fuses upstream of the kernel."""
    B = hand_depth.shape[0]
    image_num = hand_depth.shape[1]          # torch: hand_depth.shape
    future_steps = ee_pose.shape[1]          # torch: ee_pose.shape[1]

    # Stack front then ee clouds on one cloud axis (torch concat order), points on lanes.
    clouds = jnp.concatenate(
        [front_pcd[:, :image_num], ee_pcd[:, :future_steps]], axis=1)   # (B, G, N, 3)
    clouds = jnp.swapaxes(clouds, 2, 3).astype(jnp.float32)             # (B, G, 3, N)
    G, N = clouds.shape[1], clouds.shape[3]

    wp, bp, w1, b1, w2, b2, w3, b3 = params
    assert w1.shape[0] == G * PCD_FEAT, "fc1 input width must equal G * PCD_FEAT"

    wpt = jnp.asarray(wp, jnp.float32).T                                 # (256, 3)
    bp2 = jnp.asarray(bp, jnp.float32).reshape(1, PCD_FEAT)
    w1b = jnp.asarray(w1, jnp.bfloat16)                                  # (2560, 512)
    w2b = jnp.asarray(w2, jnp.bfloat16)                                  # (512, 256)
    w3p = jnp.zeros((H2, OUT_PAD), jnp.float32).at[:, :OUT].set(w3).astype(jnp.bfloat16)
    b1r = jnp.asarray(b1, jnp.float32).reshape(1, H1)
    b2r = jnp.asarray(b2, jnp.float32).reshape(1, H2)
    b3p = jnp.zeros((1, OUT_PAD), jnp.float32).at[:, :OUT].set(
        jnp.asarray(b3, jnp.float32).reshape(1, OUT))

    # Batch tile: whole batch when small; otherwise >=2 sublane-aligned tiles so the
    # "parallel" axis can be sharded across v7x's two TensorCores.
    if B <= 8:
        BT = B
    else:
        BT = min(128, 8 * max(1, pl.cdiv(B, 2) // 8))

    # Point-axis chunk so the (BT, 256, NC) feat intermediate stays bounded (no spill).
    NC = N
    if N > 512:
        for cand in (512, 256, 128):
            if N % cand == 0:
                NC = cand
                break
    n_chunks = N // NC

    grid = (pl.cdiv(B, BT), G)                       # reduction (cloud) axis last
    kernel = functools.partial(_dynamics_kernel, n_chunks, NC)

    out = pl.pallas_call(
        kernel,
        out_shape=jax.ShapeDtypeStruct((B, OUT_PAD), jnp.float32),
        grid=grid,
        in_specs=[
            pl.BlockSpec((BT, None, 3, N), lambda b, g: (b, g, 0, 0)),   # one cloud/step
            pl.BlockSpec((PCD_FEAT, 3), lambda b, g: (0, 0)),            # wp^T
            pl.BlockSpec((1, PCD_FEAT), lambda b, g: (0, 0)),            # bp
            pl.BlockSpec((PCD_FEAT, H1), lambda b, g: (g, 0)),           # fc1 rows of cloud g
            pl.BlockSpec((1, H1), lambda b, g: (0, 0)),                  # b1
            pl.BlockSpec((H1, H2), lambda b, g: (0, 0)),                 # w2
            pl.BlockSpec((1, H2), lambda b, g: (0, 0)),                  # b2
            pl.BlockSpec((H2, OUT_PAD), lambda b, g: (0, 0)),            # w3 (lane padded)
            pl.BlockSpec((1, OUT_PAD), lambda b, g: (0, 0)),             # b3 (lane padded)
        ],
        out_specs=pl.BlockSpec((BT, OUT_PAD), lambda b, g: (b, 0)),
        scratch_shapes=[pltpu.VMEM((BT, H1), jnp.float32)],              # fc1 accumulator
        compiler_params=pltpu.CompilerParams(
            dimension_semantics=("parallel", "arbitrary"),
            vmem_limit_bytes=48 * 1024 * 1024),                          # fits v7x 64 MiB
    )(clouds, wpt, bp2, w1b, b1r, w2b, b2r, w3p, b3p)
    return out[:, :OUT]


def _reference_forward(params, ee_pose, ee_pcd, hand_depth, front_pcd):
    """Pure-JAX f32 reference (original formulation: per-point bias + relu before max)."""
    wp, bp, w1, b1, w2, b2, w3, b3 = params
    image_num = hand_depth.shape[1]
    future_steps = ee_pose.shape[1]
    clouds = jnp.concatenate(
        [front_pcd[:, :image_num], ee_pcd[:, :future_steps]], axis=1).astype(jnp.float32)
    feat = jnp.maximum(jnp.einsum('bgnc,cf->bgnf', clouds, wp) + bp.reshape(1, 1, 1, -1), 0.0)
    enc = jnp.max(feat, axis=2).reshape(clouds.shape[0], -1)     # (B, G*256)
    h = jnp.maximum(enc @ w1 + b1, 0.0)
    h = jnp.maximum(h @ w2 + b2, 0.0)
    return h @ w3 + b3


def init_params(key, in_features=2560):
    """Deterministic synthetic parameters (PyTorch-style uniform(+-1/sqrt(fan_in)))."""
    def lin(k, fan_in, fan_out):
        bound = 1.0 / (fan_in ** 0.5)
        kw, kb = jax.random.split(k)
        w = jax.random.uniform(kw, (fan_in, fan_out), jnp.float32, -bound, bound)
        b = jax.random.uniform(kb, (1, fan_out), jnp.float32, -bound, bound)
        return w, b
    ks = jax.random.split(key, 4)
    wp, bp = lin(ks[0], 3, PCD_FEAT)          # synthetic pcd_Encoder shared MLP
    w1, b1 = lin(ks[1], in_features, H1)      # fc1: 2560 -> 512
    w2, b2 = lin(ks[2], H1, H2)               # fc2: 512 -> 256
    w3, b3 = lin(ks[3], H2, OUT)              # fc3: 256 -> 3
    return (wp, bp, w1, b1, w2, b2, w3, b3)


if __name__ == "__main__":
    key = jax.random.PRNGKey(0)
    k_param, k_in = jax.random.split(key)
    params = init_params(k_param)

    B = 2
    image_num = 5        # number of depth/front-pcd frames
    future_steps = 5     # number of ee-pcd frames  (image_num + future_steps == 10)
    N = 128              # points per cloud (lane-aligned stand-in for 2000)
    Hd = Wd = 16         # small depth-image spatial size

    kk = jax.random.split(k_in, 8)
    ee_pose     = jax.random.normal(kk[0], (B, future_steps, 7), jnp.float32)
    ee_pcd      = jax.random.normal(kk[1], (B, future_steps, N, 3), jnp.float32)
    hand_depth  = jax.random.normal(kk[2], (B, image_num, Hd, Wd), jnp.float32)
    front_depth = jax.random.normal(kk[3], (B, image_num, Hd, Wd), jnp.float32)
    hand_pcd    = jax.random.normal(kk[4], (B, image_num, N, 3), jnp.float32)
    front_pcd   = jax.random.normal(kk[5], (B, image_num, N, 3), jnp.float32)
    hand_seg    = jax.random.normal(kk[6], (B, image_num, Hd, Wd), jnp.float32)
    front_seg   = jax.random.normal(kk[7], (B, image_num, Hd, Wd), jnp.float32)

    out = dynamics_forward(params, ee_pose, ee_pcd, hand_depth, front_depth,
                           hand_pcd, front_pcd, hand_seg, front_seg)
    out = jax.block_until_ready(out)
    assert out.shape == (B, OUT) and out.dtype == jnp.float32

    # f32 reference check (kernel uses bf16 head weights -> loose tolerance).
    ref = _reference_forward(params, ee_pose, ee_pcd, hand_depth, front_pcd)
    rel = jnp.linalg.norm(out - ref) / (jnp.linalg.norm(ref) + 1e-6)
    assert float(rel) < 5e-2, f"relative L2 error too large: {float(rel)}"

    print("KERNEL_OK")
</pallas_src>

<mosaic_0001>
module attributes {stable_mosaic.version = 11 : i64} {
  func.func @_dynamics_kernel(%arg0: i32, %arg1: i32, %arg2: memref<2x1x3x128xf32, #tpu.memory_space<vmem>>, %arg3: memref<256x3xf32, #tpu.memory_space<vmem>>, %arg4: memref<1x256xf32, #tpu.memory_space<vmem>>, %arg5: memref<256x512xbf16, #tpu.memory_space<vmem>>, %arg6: memref<1x512xf32, #tpu.memory_space<vmem>>, %arg7: memref<512x256xbf16, #tpu.memory_space<vmem>>, %arg8: memref<1x256xf32, #tpu.memory_space<vmem>>, %arg9: memref<256x128xbf16, #tpu.memory_space<vmem>>, %arg10: memref<1x128xf32, #tpu.memory_space<vmem>>, %arg11: memref<2x128xf32, #tpu.memory_space<vmem>>, %arg12: memref<2x512xf32, #tpu.memory_space<vmem>>) attributes {dimension_semantics = [#tpu.dimension_semantics<parallel>, #tpu.dimension_semantics<arbitrary>], iteration_bounds = array<i64: 1, 10>, scalar_prefetch = 0 : i64, scratch_operands = 1 : i64, tpu.core_type = #tpu.core_type<tc>, window_params = [{transform_indices = @transform_0, window_bounds = array<i64: 2, 1, 3, 128>}, {pipeline_mode = #tpu.pipeline_mode<synchronous>, transform_indices = @transform_1, window_bounds = array<i64: 256, 3>}, {pipeline_mode = #tpu.pipeline_mode<synchronous>, transform_indices = @transform_2, window_bounds = array<i64: 1, 256>}, {transform_indices = @transform_3, window_bounds = array<i64: 256, 512>}, {pipeline_mode = #tpu.pipeline_mode<synchronous>, transform_indices = @transform_4, window_bounds = array<i64: 1, 512>}, {pipeline_mode = #tpu.pipeline_mode<synchronous>, transform_indices = @transform_5, window_bounds = array<i64: 512, 256>}, {pipeline_mode = #tpu.pipeline_mode<synchronous>, transform_indices = @transform_6, window_bounds = array<i64: 1, 256>}, {pipeline_mode = #tpu.pipeline_mode<synchronous>, transform_indices = @transform_7, window_bounds = array<i64: 256, 128>}, {pipeline_mode = #tpu.pipeline_mode<synchronous>, transform_indices = @transform_8, window_bounds = array<i64: 1, 128>}, {transform_indices = @transform_9, window_bounds = array<i64: 2, 128>}]} {
    %c0_i32 = arith.constant 0 : i32
    %0 = arith.cmpi eq, %arg1, %c0_i32 : i32
    %1 = arith.extui %0 : i1 to i32
    %c0_i32_0 = arith.constant 0 : i32
    %2 = arith.cmpi ne, %1, %c0_i32_0 : i32
    scf.if %2 {
      %cst_17 = arith.constant 0.000000e+00 : f32
      %41 = vector.broadcast %cst_17 : f32 to vector<2x512xf32>
      %c0_18 = arith.constant 0 : index
      %c0_19 = arith.constant 0 : index
      %42 = vector.load %arg12[%c0_18, %c0_19] : memref<2x512xf32, #tpu.memory_space<vmem>>, vector<2x512xf32>
      tpu.vector_store %arg12[%c0_18, %c0_19], %41 {strides = array<i32>} : memref<2x512xf32, #tpu.memory_space<vmem>>, vector<2x512xf32>,
    } else {
    }
    %c0 = arith.constant 0 : index
    %c0_1 = arith.constant 0 : index
    %3 = vector.load %arg3[%c0, %c0_1] : memref<256x3xf32, #tpu.memory_space<vmem>>, vector<256x3xf32>
    %4 = vector.extract_strided_slice %3 {offsets = [0, 0], sizes = [256, 1], strides = [1, 1]} : vector<256x3xf32> to vector<256x1xf32>
    %5 = vector.shape_cast %4 : vector<256x1xf32> to vector<1x256x1xf32>
    %6 = vector.extract_strided_slice %3 {offsets = [0, 1], sizes = [256, 1], strides = [1, 1]} : vector<256x3xf32> to vector<256x1xf32>
    %7 = vector.shape_cast %6 : vector<256x1xf32> to vector<1x256x1xf32>
    %8 = vector.extract_strided_slice %3 {offsets = [0, 2], sizes = [256, 1], strides = [1, 1]} : vector<256x3xf32> to vector<256x1xf32>
    %9 = vector.shape_cast %8 : vector<256x1xf32> to vector<1x256x1xf32>
    %c0_2 = arith.constant 0 : index
    %c0_3 = arith.constant 0 : index
    %c0_4 = arith.constant 0 : index
    %c0_5 = arith.constant 0 : index
    %10 = vector.load %arg2[%c0_2, %c0_3, %c0_4, %c0_5] : memref<2x1x3x128xf32, #tpu.memory_space<vmem>>, vector<2x1x3x128xf32>
    %11 = vector.shape_cast %10 : vector<2x1x3x128xf32> to vector<2x3x128xf32>
    %12 = vector.extract_strided_slice %11 {offsets = [0, 0, 0], sizes = [2, 1, 128], strides = [1, 1, 1]} : vector<2x3x128xf32> to vector<2x1x128xf32>
    %13 = vector.broadcast %5 : vector<1x256x1xf32> to vector<2x256x128xf32>
    %14 = vector.broadcast %12 : vector<2x1x128xf32> to vector<2x256x128xf32>
    %15 = arith.mulf %13, %14 : vector<2x256x128xf32>
    %16 = vector.extract_strided_slice %11 {offsets = [0, 1, 0], sizes = [2, 1, 128], strides = [1, 1, 1]} : vector<2x3x128xf32> to vector<2x1x128xf32>
    %17 = vector.broadcast %7 : vector<1x256x1xf32> to vector<2x256x128xf32>
    %18 = vector.broadcast %16 : vector<2x1x128xf32> to vector<2x256x128xf32>
    %19 = arith.mulf %17, %18 : vector<2x256x128xf32>
    %20 = arith.addf %15, %19 : vector<2x256x128xf32>
    %21 = vector.extract_strided_slice %11 {offsets = [0, 2, 0], sizes = [2, 1, 128], strides = [1, 1, 1]} : vector<2x3x128xf32> to vector<2x1x128xf32>
    %22 = vector.broadcast %9 : vector<1x256x1xf32> to vector<2x256x128xf32>
    %23 = vector.broadcast %21 : vector<2x1x128xf32> to vector<2x256x128xf32>
    %24 = arith.mulf %22, %23 : vector<2x256x128xf32>
    %25 = arith.addf %20, %24 : vector<2x256x128xf32>
    %cst = arith.constant dense<0xFF800000> : vector<2x256xf32>
    %26 = vector.multi_reduction <maximumf>, %25, %cst [2] : vector<2x256x128xf32> to vector<2x256xf32>
    %c0_6 = arith.constant 0 : index
    %c0_7 = arith.constant 0 : index
    %27 = vector.load %arg4[%c0_6, %c0_7] : memref<1x256xf32, #tpu.memory_space<vmem>>, vector<1x256xf32>
    %28 = vector.broadcast %27 : vector<1x256xf32> to vector<2x256xf32>
    %29 = arith.addf %26, %28 : vector<2x256xf32>
    %cst_8 = arith.constant 0.000000e+00 : f32
    %30 = vector.broadcast %cst_8 : f32 to vector<2x256xf32>
    %31 = arith.maximumf %29, %30 : vector<2x256xf32>
    %c0_9 = arith.constant 0 : index
    %c0_10 = arith.constant 0 : index
    %32 = vector.load %arg12[%c0_9, %c0_10] : memref<2x512xf32, #tpu.memory_space<vmem>>, vector<2x512xf32>
    %33 = arith.truncf %31 : vector<2x256xf32> to vector<2x256xbf16>
    %c0_11 = arith.constant 0 : index
    %c0_12 = arith.constant 0 : index
    %34 = vector.load %arg5[%c0_11, %c0_12] : memref<256x512xbf16, #tpu.memory_space<vmem>>, vector<256x512xbf16>
    %cst_13 = arith.constant dense<0.000000e+00> : vector<2x512xf32>
    %35 = tpu.matmul %33, %34, %cst_13 {dimension_numbers = #tpu.dot_dimension_numbers<[1], [0], [0], [1], [0, 0, 1, 1], [], []>} : vector<2x256xbf16>, vector<256x512xbf16>, vector<2x512xf32> -> vector<2x512xf32>
    %36 = arith.addf %32, %35 : vector<2x512xf32>
    %c0_14 = arith.constant 0 : index
    %c0_15 = arith.constant 0 : index
    %37 = vector.load %arg12[%c0_14, %c0_15] : memref<2x512xf32, #tpu.memory_space<vmem>>, vector<2x512xf32>
    tpu.vector_store %arg12[%c0_14, %c0_15], %36 {strides = array<i32>} : memref<2x512xf32, #tpu.memory_space<vmem>>, vector<2x512xf32>,
    %c9_i32 = arith.constant 9 : i32
    %38 = arith.cmpi eq, %arg1, %c9_i32 : i32
    %39 = arith.extui %38 : i1 to i32
    %c0_i32_16 = arith.constant 0 : i32
    %40 = arith.cmpi ne, %39, %c0_i32_16 : i32
    scf.if %40 {
      %c0_17 = arith.constant 0 : index
      %c0_18 = arith.constant 0 : index
      %41 = vector.load %arg12[%c0_17, %c0_18] : memref<2x512xf32, #tpu.memory_space<vmem>>, vector<2x512xf32>
      %c0_19 = arith.constant 0 : index
      %c0_20 = arith.constant 0 : index
      %42 = vector.load %arg6[%c0_19, %c0_20] : memref<1x512xf32, #tpu.memory_space<vmem>>, vector<1x512xf32>
      %43 = vector.broadcast %42 : vector<1x512xf32> to vector<2x512xf32>
      %44 = arith.addf %41, %43 : vector<2x512xf32>
      %cst_21 = arith.constant 0.000000e+00 : f32
      %45 = vector.broadcast %cst_21 : f32 to vector<2x512xf32>
      %46 = arith.maximumf %44, %45 : vector<2x512xf32>
      %47 = arith.truncf %46 : vector<2x512xf32> to vector<2x512xbf16>
      %c0_22 = arith.constant 0 : index
      %c0_23 = arith.constant 0 : index
      %48 = vector.load %arg7[%c0_22, %c0_23] : memref<512x256xbf16, #tpu.memory_space<vmem>>, vector<512x256xbf16>
      %cst_24 = arith.constant dense<0.000000e+00> : vector<2x256xf32>
      %49 = tpu.matmul %47, %48, %cst_24 {dimension_numbers = #tpu.dot_dimension_numbers<[1], [0], [0], [1], [0, 0, 1, 1], [], []>} : vector<2x512xbf16>, vector<512x256xbf16>, vector<2x256xf32> -> vector<2x256xf32>
      %c0_25 = arith.constant 0 : index
      %c0_26 = arith.constant 0 : index
      %50 = vector.load %arg8[%c0_25, %c0_26] : memref<1x256xf32, #tpu.memory_space<vmem>>, vector<1x256xf32>
      %51 = vector.broadcast %50 : vector<1x256xf32> to vector<2x256xf32>
      %52 = arith.addf %49, %51 : vector<2x256xf32>
      %cst_27 = arith.constant 0.000000e+00 : f32
      %53 = vector.broadcast %cst_27 : f32 to vector<2x256xf32>
      %54 = arith.maximumf %52, %53 : vector<2x256xf32>
      %55 = arith.truncf %54 : vector<2x256xf32> to vector<2x256xbf16>
      %c0_28 = arith.constant 0 : index
      %c0_29 = arith.constant 0 : index
      %56 = vector.load %arg9[%c0_28, %c0_29] : memref<256x128xbf16, #tpu.memory_space<vmem>>, vector<256x128xbf16>
      %cst_30 = arith.constant dense<0.000000e+00> : vector<2x128xf32>
      %57 = tpu.matmul %55, %56, %cst_30 {dimension_numbers = #tpu.dot_dimension_numbers<[1], [0], [0], [1], [0, 0, 1, 1], [], []>} : vector<2x256xbf16>, vector<256x128xbf16>, vector<2x128xf32> -> vector<2x128xf32>
      %c0_31 = arith.constant 0 : index
      %c0_32 = arith.constant 0 : index
      %58 = vector.load %arg10[%c0_31, %c0_32] : memref<1x128xf32, #tpu.memory_space<vmem>>, vector<1x128xf32>
      %59 = vector.broadcast %58 : vector<1x128xf32> to vector<2x128xf32>
      %60 = arith.addf %57, %59 : vector<2x128xf32>
      %c0_33 = arith.constant 0 : index
      %c0_34 = arith.constant 0 : index
      %61 = vector.load %arg11[%c0_33, %c0_34] : memref<2x128xf32, #tpu.memory_space<vmem>>, vector<2x128xf32>
      tpu.vector_store %arg11[%c0_33, %c0_34], %60 {strides = array<i32>} : memref<2x128xf32, #tpu.memory_space<vmem>>, vector<2x128xf32>,
    } else {
    }
    return
  }
  func.func @transform_0(%arg0: i32, %arg1: i32) -> (i32, i32, i32, i32) {
    %c0_i32 = arith.constant 0 : i32
    %c0_i32_0 = arith.constant 0 : i32
    %c0_i32_1 = arith.constant 0 : i32
    return %arg0, %arg1, %c0_i32, %c0_i32_0 : i32, i32, i32, i32
  }
  func.func @transform_1(%arg0: i32, %arg1: i32) -> (i32, i32) {
    %c0_i32 = arith.constant 0 : i32
    %c0_i32_0 = arith.constant 0 : i32
    %c0_i32_1 = arith.constant 0 : i32
    return %c0_i32, %c0_i32_0 : i32, i32
  }
  func.func @transform_2(%arg0: i32, %arg1: i32) -> (i32, i32) {
    %c0_i32 = arith.constant 0 : i32
    %c0_i32_0 = arith.constant 0 : i32
    %c0_i32_1 = arith.constant 0 : i32
    return %c0_i32, %c0_i32_0 : i32, i32
  }
  func.func @transform_3(%arg0: i32, %arg1: i32) -> (i32, i32) {
    %c0_i32 = arith.constant 0 : i32
    %c0_i32_0 = arith.constant 0 : i32
    return %arg1, %c0_i32 : i32, i32
  }
  func.func @transform_4(%arg0: i32, %arg1: i32) -> (i32, i32) {
    %c0_i32 = arith.constant 0 : i32
    %c0_i32_0 = arith.constant 0 : i32
    %c0_i32_1 = arith.constant 0 : i32
    return %c0_i32, %c0_i32_0 : i32, i32
  }
  func.func @transform_5(%arg0: i32, %arg1: i32) -> (i32, i32) {
    %c0_i32 = arith.constant 0 : i32
    %c0_i32_0 = arith.constant 0 : i32
    %c0_i32_1 = arith.constant 0 : i32
    return %c0_i32, %c0_i32_0 : i32, i32
  }
  func.func @transform_6(%arg0: i32, %arg1: i32) -> (i32, i32) {
    %c0_i32 = arith.constant 0 : i32
    %c0_i32_0 = arith.constant 0 : i32
    %c0_i32_1 = arith.constant 0 : i32
    return %c0_i32, %c0_i32_0 : i32, i32
  }
  func.func @transform_7(%arg0: i32, %arg1: i32) -> (i32, i32) {
    %c0_i32 = arith.constant 0 : i32
    %c0_i32_0 = arith.constant 0 : i32
    %c0_i32_1 = arith.constant 0 : i32
    return %c0_i32, %c0_i32_0 : i32, i32
  }
  func.func @transform_8(%arg0: i32, %arg1: i32) -> (i32, i32) {
    %c0_i32 = arith.constant 0 : i32
    %c0_i32_0 = arith.constant 0 : i32
    %c0_i32_1 = arith.constant 0 : i32
    return %c0_i32, %c0_i32_0 : i32, i32
  }
  func.func @transform_9(%arg0: i32, %arg1: i32) -> (i32, i32) {
    %c0_i32 = arith.constant 0 : i32
    %c0_i32_0 = arith.constant 0 : i32
    return %arg0, %c0_i32 : i32, i32
  }
}

</mosaic_0001>

<bundles_post_ra>
// kernel: dynamics_forward.1
= control target key start
LH: loop header
LB: loop body
LE: loop exit
PB: predicated region body
PF: predicated region fallthrough
CT: control target
= control target key end

     0   :  { %14 = vsyncpa [#allocation5], 0  ;;  %s4185_s30 = smov 0   ;;  %s4187_s10 = smov 0   ;;  %s6033_s0 = inlined_call_operand.vmem [shape: f32[2,10,3,128], index: 0, kind: input, shape index: {}]   ;;  %s6034_s1 = inlined_call_operand.vmem [shape: f32[256,3], index: 1, kind: input, shape index: {}]   ;;  %s6035_s2 = inlined_call_operand.vmem [shape: f32[1,256], index: 2, kind: input, shape index: {}]   ;;  %s6036_s3 = inlined_call_operand.vmem [shape: bf16[2560,512], index: 3, kind: input, shape index: {}]   ;;  %s6037_s4 = inlined_call_operand.vmem [shape: f32[1,512], index: 4, kind: input, shape index: {}]   ;;  %s6038_s5 = inlined_call_operand.vmem [shape: bf16[512,256], index: 5, kind: input, shape index: {}]   ;;  %s6039_s6 = inlined_call_operand.vmem [shape: f32[1,256], index: 6, kind: input, shape index: {}]   ;;  %s6040_s7 = inlined_call_operand.vmem [shape: bf16[256,128], index: 7, kind: input, shape index: {}]   ;;  %s6041_s8 = inlined_call_operand.vmem [shape: f32[1,128], index: 8, kind: input, shape index: {}]   ;;  %s6042_s9 = inlined_call_operand.hbm [shape: f32[2,128], index: 9, kind: output, shape index: {}]  }
   0x1   :  { %s4189_s11 = smov 0   ;;  %s4191_s12 = smov 0  }
   0x2   :  { %s4193_s13 = smov 0  }
   0x3 LB: > { %s3610_s14 = sadd.s32 4294967295, %s4127_s13   ;;  %s29_s15 = sadd.s32 1, %s4123_s12  ;;  %s4127_s13 = sphi %s4193_s13, %s20_s13   ;;  %s4123_s12 = sphi %s4191_s12, %s6286_s12   ;;  %s4119_s11 = sphi %s4189_s11, %s6285_s11   ;;  %s4115_s10 = sphi %s4187_s10, %s6284_s10   ;;  %s4111_s30 = sphi %s4185_s30, %s6283_s30  }
   0x4   : > { %p30_p0 = scmp.ge.s32.totalorder %s29_s15, 10  ;;  %p48_p1 = scmp.ne.s32.totalorder %s4115_s10, %s4111_s30 }
   0x5   : > { %p49_p2 = scmp.eq.s32.totalorder %s4127_s13, 0  ;;  %s41_s17 = sadd.s32 1, %s4115_s10 }
   0x6   : > { %s6288_s15 = smov (%p30_p0, %s29_s15), 0  ;;  %p3612_p5 = scmp.ge.s32.totalorder %s4127_s13, 10 }
   0x7   : > { %p50_p3 = por %p49_p2, %p48_p1  ;;  %s37_s16 = ssub.s32 %s4123_s12, %s6288_s15 }
   0x8   : > { %p39_p4 = scmp.eq.s32.totalorder %s37_s16, 0  ;;  %294 = sbr.rel (%p3612_p5) target bundleno = 18 (0x12), region = 44 }
   0xa   : > { %s4221_s18 = scalar_select %p39_p4, %s4115_s10, %s41_s17  }
   0xd   : > { %297 = sbr.rel (!%p50_p3) target bundleno = 18 (0x12), region = 48  ;;  %s299_s19 = sand.u32 (%p50_p3), 1, %s4115_s10  }
   0xe   : > { %s3614_s20 = sshll.u32 (%p50_p3), %s4123_s12, 2  ;;  %s3613_s21 = sshll.u32 (%p50_p3), %s299_s19, 3 }
   0xf   : > { %s306_s24 = scalar_lea.vmem (%p50_p3), %s6033_s0, %s3614_s20  ;;  %s301_s25 = scalar_lea.vmem (%p50_p3), [#allocation3], %s3613_s21 }
  0x10   : > { %v323_v0 = vld [vmem:[%s306_s24] sm:$0xf] (%p50_p3)  ;;  %v325_v1 = vld [vmem:[%s306_s24 + $0x28] sm:$0xf] (%p50_p3) }
  0x11   : > { %324 = vst [vmem:[%s301_s25] sm:$0xf] (%p50_p3), %v323_v0  ;;  %326 = vst [vmem:[%s301_s25 + $0x4] sm:$0xf] (%p50_p3), %v325_v1 }
  0x12 PF: > { %p3615_p6 = scmp.ge.s32.totalorder %s4127_s13, 1  ;;  %p363_p7 = scmp.lt.s32.totalorder %s4127_s13, 11 }
  0x14   : > { %p364_p8 = pnand %p3615_p6, %p363_p7 }
  0x16   : > { %367 = sbr.rel (%p364_p8) target bundleno = 1598 (0x63e), region = 93 }
  0x1b   : > { %s370_s26 = sand.u32 1, %s4111_s30   ;;  %s3617_s27 = sshll.u32 %s4119_s11, 5 }
  0x1c   : > { %s4233_s28 = sshll.u32 %s370_s26, 3  ;;  %p408_p9 = scmp.lt.s32.totalorder %s3617_s27, 319 }
  0x1d   : > { %s372_s20 = scalar_lea.vmem [#allocation3], %s4233_s28  ;;  %p3620_p10 = scmp.ne.s32.totalorder %s4119_s11, 0 }
  0x1e   : > { %s6290_s27 = smov (!%p408_p9, %s3617_s27), 319 }
  0x1f   : > { %s3771_s29 = sshll.u32 %s6290_s27, 4  ;;  %418 = sbr.rel (%p3620_p10) target bundleno = 38 (0x26), region = 101 }
  0x20   : > { %s4238_s19 = scalar_lea.vmem %s6036_s3, %s3771_s29 }
  0x24   : > { %v4129_v2 = vmov 0.0  }
  0x25   : > { %419 = vst [vmem:[#allocation2] sm:$0xff] %v4129_v2 }
  0x26 PF: > { %v4245_v3 = vld [vmem:[%s6034_s1 + $0x10] sm:$0xff]  ;;  %v4250_v4 = vld [vmem:[%s6034_s1] sm:$0xff]  ;;  %v4130_v5 = vmov 1   ;;  %v4131_v6 = vmov 0   ;;  %v4258_v7 = vld [vmem:[%s6034_s1 + $0x18] sm:$0xff]  ;;  %v4132_v23 = vmov 2  }
  0x27   : > { %3847 = vset.pattern.permute.xlu0 %v4130_v5  ;;  %3846 = vset.pattern.permute.xlu1 %v4131_v6  ;;  %v4265_v8 = vld [vmem:[%s6034_s1 + $0x28] sm:$0xff]  ;;  %v4272_v9 = vld [vmem:[%s6034_s1 + $0x38] sm:$0xff]  ;;  %v424_v24 = vld [vmem:[%s6034_s1 + $0x20] sm:$0xff]  ;;  %vm2034_vm0 = vcmask 130112   ;;  %vm2041_vm1 = vcmask 195712   ;;  %vm2048_vm2 = vcmask 261312  }
  0x28   : > { %466 = vperm.xlu1 %3846, %v4245_v3   ;;  %687 = vperm.xlu0 %3847, %v4250_v4   ;;  %v4277_v10 = vld [vmem:[%s6034_s1 + $0x48] sm:$0xff]  ;;  %v4284_v11 = vld [vmem:[%s6034_s1 + $0x58] sm:$0xff]  ;;  %v426_v25 = vld [vmem:[%s6034_s1 + $0x30] sm:$0xff]  ;;  %vm2055_vm3 = vcmask 326912   ;;  %vm2062_vm4 = vcmask 392512   ;;  %vm2069_vm5 = vcmask 458112  }
  0x29   : > { %v4291_v12 = vld [vmem:[%s6034_s1 + $0x68] sm:$0xff]  ;;  %v4298_v13 = vld [vmem:[%s6034_s1 + $0x78] sm:$0xff]  ;;  %v428_v26 = vld [vmem:[%s6034_s1 + $0x40] sm:$0xff]  ;;  %vm2076_vm6 = vcmask 523712   ;;  %vm2083_vm7 = vcmask 589312   ;;  %vm2090_vm8 = vcmask 654912  }
  0x2a   : > { %v4305_v14 = vld [vmem:[%s6034_s1 + $0x88] sm:$0xff]  ;;  %v4314_v15 = vld [vmem:[%s6034_s1 + $0x98] sm:$0xff]  ;;  %v430_v27 = vld [vmem:[%s6034_s1 + $0x50] sm:$0xff]  ;;  %vm2097_vm9 = vcmask 720512   ;;  %vm2104_vm10 = vcmask 786112   ;;  %vm2111_vm11 = vcmask 851712  }
  0x2b   : > { %v4321_v16 = vld [vmem:[%s6034_s1 + $0xa8] sm:$0xff]  ;;  %v4328_v17 = vld [vmem:[%s6034_s1 + $0xb8] sm:$0xff]  ;;  %v432_v28 = vld [vmem:[%s6034_s1 + $0x60] sm:$0xff]  ;;  %vm2118_vm12 = vcmask 917312   ;;  %vm2125_vm13 = vcmask 982912   ;;  %vm2132_vm14 = vcmask 1048512  }
  0x2c   : > { %471 = vperm.xlu1 %3846, %v4258_v7   ;;  %699 = vperm.xlu0 %3847, %v4258_v7   ;;  %v4335_v18 = vld [vmem:[%s6034_s1 + $0xc8] sm:$0xff]  ;;  %v4342_v19 = vld [vmem:[%s6034_s1 + $0xd8] sm:$0xff]  ;;  %v434_v29 = vld [vmem:[%s6034_s1 + $0x70] sm:$0xff]  ;;  %vm2371_vm15 = vcmask 1041409   ;;  %p3685_p11 = scmp.ne.s32.totalorder %s4119_s11, 9 }
  0x2d   : > { %v4349_v20 = vld [vmem:[%s6034_s1 + $0xe8] sm:$0xff]  ;;  %v4356_v21 = vld [vmem:[%s6034_s1 + $0xf8] sm:$0xff]  ;;  %v436_v30 = vld [vmem:[%s6034_s1 + $0x80] sm:$0xff] }
  0x2e   : > { %v421_v22 = vld [vmem:[%s6034_s1 + $0x8] sm:$0xff]  ;;  %v438_v31 = vld [vmem:[%s6034_s1 + $0x90] sm:$0xff]  ;;  %v440_v32 = vld [vmem:[%s6034_s1 + $0xa0] sm:$0xff] }
  0x2f   : > { %v4394_v33 = vld [vmem:[%s6034_s1 + $0xb0] sm:$0xff]  ;;  %v4400_v34 = vld [vmem:[%s6034_s1 + $0xc0] sm:$0xff] }
  0x30   : > { %481 = vperm.xlu1 %3846, %v4265_v8   ;;  %707 = vperm.xlu0 %3847, %v4265_v8   ;;  %v4407_v35 = vld [vmem:[%s6034_s1 + $0xd0] sm:$0xff]  ;;  %v4414_v36 = vld [vmem:[%s6034_s1 + $0xe0] sm:$0xff] }
  0x31   : > { %v4421_v37 = vld [vmem:[%s6034_s1 + $0xf0] sm:$0xff] }
  0x34   : > { %491 = vperm.xlu1 %3846, %v4272_v9   ;;  %715 = vperm.xlu0 %3847, %v4272_v9  }
  0x38   : > { %501 = vperm.xlu1 %3846, %v4277_v10   ;;  %723 = vperm.xlu0 %3847, %v4277_v10  }
  0x3c   : > { %511 = vperm.xlu1 %3846, %v4284_v11   ;;  %731 = vperm.xlu0 %3847, %v4284_v11  }
  0x40   : > { %521 = vperm.xlu1 %3846, %v4291_v12   ;;  %739 = vperm.xlu0 %3847, %v4291_v12  }
  0x44   : > { %531 = vperm.xlu1 %3846, %v4298_v13   ;;  %747 = vperm.xlu0 %3847, %v4298_v13  }
  0x48   : > { %541 = vperm.xlu1 %3846, %v4305_v14   ;;  %755 = vperm.xlu0 %3847, %v4305_v14  }
  0x4c   : > { %551 = vperm.xlu1 %3846, %v4314_v15   ;;  %763 = vperm.xlu0 %3847, %v4314_v15  }
  0x50   : > { %561 = vperm.xlu1 %3846, %v4321_v16   ;;  %771 = vperm.xlu0 %3847, %v4321_v16  }
  0x54   : > { %571 = vperm.xlu1 %3846, %v4328_v17   ;;  %779 = vperm.xlu0 %3847, %v4328_v17  }
  0x58   : > { %581 = vperm.xlu1 %3846, %v4335_v18   ;;  %787 = vperm.xlu0 %3847, %v4335_v18  }
  0x5c   : > { %591 = vperm.xlu1 %3846, %v4342_v19   ;;  %795 = vperm.xlu0 %3847, %v4342_v19  }
  0x60   : > { %601 = vperm.xlu1 %3846, %v4349_v20   ;;  %803 = vperm.xlu0 %3847, %v4349_v20  }
  0x64   : > { %611 = vperm.xlu1 %3846, %v4356_v21   ;;  %811 = vperm.xlu0 %3847, %v4356_v21  }
  0x68   : > { %3848 = vset.pattern.permute.xlu1 %v4130_v5  ;;  %3850 = vset.pattern.permute.xlu0 %v4132_v23 }
  0x69   : > { %691 = vperm.xlu1 %3848, %v421_v22   ;;  %955 = vperm.xlu0 %3850, %v421_v22  }
  0x6d   : > { %695 = vperm.xlu1 %3848, %v4245_v3   ;;  %967 = vperm.xlu0 %3850, %v424_v24  }
  0x71   : > { %703 = vperm.xlu1 %3848, %v424_v24   ;;  %975 = vperm.xlu0 %3850, %v426_v25  }
  0x75   : > { %711 = vperm.xlu1 %3848, %v426_v25   ;;  %983 = vperm.xlu0 %3850, %v428_v26  }
  0x79   : > { %719 = vperm.xlu1 %3848, %v428_v26   ;;  %991 = vperm.xlu0 %3850, %v430_v27  }
  0x7d   : > { %727 = vperm.xlu1 %3848, %v430_v27   ;;  %999 = vperm.xlu0 %3850, %v432_v28  }
  0x81   : > { %735 = vperm.xlu1 %3848, %v432_v28   ;;  %1007 = vperm.xlu0 %3850, %v434_v29  }
  0x85   : > { %743 = vperm.xlu1 %3848, %v434_v29   ;;  %1015 = vperm.xlu0 %3850, %v436_v30  }
  0x89   : > { %751 = vperm.xlu1 %3848, %v436_v30   ;;  %1023 = vperm.xlu0 %3850, %v438_v31  }
  0x8d   : > { %759 = vperm.xlu1 %3848, %v438_v31   ;;  %1031 = vperm.xlu0 %3850, %v440_v32  }
  0x91   : > { %767 = vperm.xlu1 %3848, %v440_v32   ;;  %1039 = vperm.xlu0 %3850, %v4394_v33  }
  0x95   : > { %775 = vperm.xlu1 %3848, %v4394_v33   ;;  %1047 = vperm.xlu0 %3850, %v4400_v34  }
  0x99   : > { %783 = vperm.xlu1 %3848, %v4400_v34   ;;  %1055 = vperm.xlu0 %3850, %v4407_v35  }
  0x9d   : > { %791 = vperm.xlu1 %3848, %v4407_v35   ;;  %1063 = vperm.xlu0 %3850, %v4414_v36  }
  0xa1   : > { %799 = vperm.xlu1 %3848, %v4414_v36   ;;  %1071 = vperm.xlu0 %3850, %v4421_v37  }
  0xa3   : > { %v4425_v38 = vpop.permute.xlu1 %466  ;;  %v4427_v39 = vpop.permute.xlu0 %687 }
  0xa4   : > { %6112 = vst [vmem:[#allocation7_spill] sm:$0xff] %v4425_v38  ;;  %6113 = vst [vmem:[#allocation8_spill] sm:$0xff] %v4427_v39 }
  0xa5   : > { %807 = vperm.xlu1 %3848, %v4421_v37   ;;  %3851 = vset.pattern.permute.xlu0 %v4131_v6 }
  0xa6   : > { %456 = vperm.xlu0 %3851, %v4250_v4  }
  0xa7   : > { %v4432_v40 = vpop.permute.xlu1 %471  ;;  %v4434_v41 = vpop.permute.xlu0 %699 }
  0xa8   : > { %6114 = vst [vmem:[#allocation9_spill] sm:$0xff] %v4432_v40  ;;  %6115 = vst [vmem:[#allocation10_spill] sm:$0xff] %v4434_v41 }
  0xa9   : > { %3849 = vset.pattern.permute.xlu1 %v4132_v23 }
  0xaa   : > { %951 = vperm.xlu1 %3849, %v4250_v4   ;;  %461 = vperm.xlu0 %3851, %v421_v22  }
  0xab   : > { %v4437_v42 = vpop.permute.xlu1 %481  ;;  %v4439_v43 = vpop.permute.xlu0 %707 }
  0xac   : > { %6116 = vst [vmem:[#allocation11_spill] sm:$0xff] %v4437_v42  ;;  %6117 = vst [vmem:[#allocation12_spill] sm:$0xff] %v4439_v43 }
  0xae   : > { %959 = vperm.xlu1 %3849, %v4245_v3   ;;  %476 = vperm.xlu0 %3851, %v424_v24  }
  0xaf   : > { %v4442_v44 = vpop.permute.xlu1 %491  ;;  %v4444_v45 = vpop.permute.xlu0 %715 }
  0xb0   : > { %6118 = vst [vmem:[#allocation13_spill] sm:$0xff] %v4442_v44  ;;  %6119 = vst [vmem:[#allocation14_spill] sm:$0xff] %v4444_v45 }
  0xb2   : > { %963 = vperm.xlu1 %3849, %v4258_v7   ;;  %486 = vperm.xlu0 %3851, %v426_v25  }
  0xb3   : > { %v4447_v46 = vpop.permute.xlu1 %501  ;;  %v4449_v47 = vpop.permute.xlu0 %723 }
  0xb4   : > { %6120 = vst [vmem:[#allocation15_spill] sm:$0xff] %v4447_v46  ;;  %6121 = vst [vmem:[#allocation16_spill] sm:$0xff] %v4449_v47 }
  0xb6   : > { %971 = vperm.xlu1 %3849, %v4265_v8   ;;  %496 = vperm.xlu0 %3851, %v428_v26  }
  0xb7   : > { %v4452_v48 = vpop.permute.xlu1 %511  ;;  %v4454_v49 = vpop.permute.xlu0 %731 }
  0xb8   : > { %6122 = vst [vmem:[#allocation17_spill] sm:$0xff] %v4452_v48  ;;  %6123 = vst [vmem:[#allocation18_spill] sm:$0xff] %v4454_v49 }
  0xba   : > { %979 = vperm.xlu1 %3849, %v4272_v9   ;;  %506 = vperm.xlu0 %3851, %v430_v27  }
  0xbb   : > { %v4457_v50 = vpop.permute.xlu1 %521  ;;  %v4459_v51 = vpop.permute.xlu0 %739 }
  0xbc   : > { %6124 = vst [vmem:[#allocation19_spill] sm:$0xff] %v4459_v51 }
  0xbe   : > { %987 = vperm.xlu1 %3849, %v4277_v10   ;;  %516 = vperm.xlu0 %3851, %v432_v28  }
  0xbf   : > { %v4462_v52 = vpop.permute.xlu1 %531  ;;  %v4464_v53 = vpop.permute.xlu0 %747 }
  0xc0   : > { %6125 = vst [vmem:[#allocation20_spill] sm:$0xff] %v4462_v52  ;;  %6126 = vst [vmem:[#allocation21_spill] sm:$0xff] %v4464_v53 }
  0xc2   : > { %995 = vperm.xlu1 %3849, %v4284_v11   ;;  %526 = vperm.xlu0 %3851, %v434_v29  }
  0xc3   : > { %v4467_v54 = vpop.permute.xlu1 %541  ;;  %v4469_v55 = vpop.permute.xlu0 %755 }
  0xc6   : > { %1003 = vperm.xlu1 %3849, %v4291_v12   ;;  %536 = vperm.xlu0 %3851, %v436_v30   ;;  %v6047_v30 = vlaneseq }
  0xc7   : > { %v4472_v56 = vpop.permute.xlu1 %551  ;;  %v4474_v57 = vpop.permute.xlu0 %763 }
  0xc8   : > { %6127 = vst [vmem:[#allocation22_spill] sm:$0xff] %v4474_v57 }
  0xca   : > { %1011 = vperm.xlu1 %3849, %v4298_v13   ;;  %546 = vperm.xlu0 %3851, %v438_v31  }
  0xcb   : > { %v4477_v58 = vpop.permute.xlu1 %561  ;;  %v4479_v59 = vpop.permute.xlu0 %771 }
  0xcc   : > { %6128 = vst [vmem:[#allocation23_spill] sm:$0xff] %v4477_v58  ;;  %6129 = vst [vmem:[#allocation24_spill] sm:$0xff] %v4479_v59 }
  0xce   : > { %1019 = vperm.xlu1 %3849, %v4305_v14   ;;  %556 = vperm.xlu0 %3851, %v440_v32  }
  0xcf   : > { %v4482_v60 = vpop.permute.xlu1 %571  ;;  %v4484_v61 = vpop.permute.xlu0 %779 }
  0xd0   : > { %6130 = vst [vmem:[#allocation25_spill] sm:$0xff] %v4482_v60  ;;  %6131 = vst [vmem:[#allocation26_spill] sm:$0xff] %v4484_v61 }
  0xd2   : > { %1027 = vperm.xlu1 %3849, %v4314_v15   ;;  %566 = vperm.xlu0 %3851, %v4394_v33   ;;  %v4568_v33 = vshrl.u32 %v6047_v30, 7 }
  0xd3   : > { %v4488_v62 = vpop.permute.xlu1 %581  ;;  %v4490_v63 = vpop.permute.xlu0 %787 }
  0xd4   : > { %6132 = vst [vmem:[#allocation27_spill] sm:$0xff] %v4488_v62  ;;  %6133 = vst [vmem:[#allocation28_spill] sm:$0xff] %v4490_v63 }
  0xd5   : > { %6151 = vst [vmem:[#allocation46_spill] sm:$0xff] %v4568_v33 }
  0xd6   : > { %1035 = vperm.xlu1 %3849, %v4321_v16   ;;  %576 = vperm.xlu0 %3851, %v4400_v34  }
  0xd7   : > { %v4494_v0 = vpop.permute.xlu1 %591  ;;  %v4496_v1 = vpop.permute.xlu0 %795 }
  0xd8   : > { %6134 = vst [vmem:[#allocation29_spill] sm:$0xff] %v4494_v0  ;;  %6135 = vst [vmem:[#allocation30_spill] sm:$0xff] %v4496_v1 }
  0xda   : > { %1043 = vperm.xlu1 %3849, %v4328_v17   ;;  %586 = vperm.xlu0 %3851, %v4407_v35  }
  0xdb   : > { %v4500_v2 = vpop.permute.xlu1 %601  ;;  %v4502_v3 = vpop.permute.xlu0 %803 }
  0xdc   : > { %6136 = vst [vmem:[#allocation31_spill] sm:$0xff] %v4500_v2  ;;  %6137 = vst [vmem:[#allocation32_spill] sm:$0xff] %v4502_v3  ;;  %v452_v3 = vld [vmem:[%s372_s20] sm:$0x7] }
  0xde   : > { %1051 = vperm.xlu1 %3849, %v4335_v18   ;;  %596 = vperm.xlu0 %3851, %v4414_v36   ;;  %v4575_v36 = vsub.s32 0, %v4568_v33 }
  0xdf   : > { %v4506_v4 = vpop.permute.xlu1 %611  ;;  %v4508_v5 = vpop.permute.xlu0 %811 }
  0xe0   : > { %6138 = vst [vmem:[#allocation33_spill] sm:$0xff] %v4506_v4  ;;  %6139 = vst [vmem:[#allocation34_spill] sm:$0xff] %v4508_v5  ;;  %v4587_v2 = vrot.slane %v452_v3, %v4575_v36 }
  0xe1   : > { %6154 = vst [vmem:[#allocation49_spill] sm:$0xff] %v4575_v36 }
  0xe2   : > { %1059 = vperm.xlu1 %3849, %v4342_v19   ;;  %606 = vperm.xlu0 %3851, %v4421_v37   ;;  %v4578_v37 = vsub.s32 1, %v4568_v33  ;;  %v624_v63 = vmul.f32 %v4587_v2, %v4425_v38 }
  0xe4   : > { %v4512_v7 = vpop.permute.xlu1 %691  ;;  %v4514_v8 = vpop.permute.xlu0 %955  ;;  %6155 = vst [vmem:[#allocation50_spill] sm:$0xff] %v4578_v37  ;;  %v4590_v30 = vrot.slane %v452_v3, %v4578_v37 }
  0xe5   : > { %6140 = vst [vmem:[#allocation35_spill] sm:$0xff] %v4512_v7  ;;  %6141 = vst [vmem:[#allocation36_spill] sm:$0xff] %v4514_v8 }
  0xe6   : > { %1067 = vperm.xlu1 %3849, %v4349_v20  }
  0xe8   : > { %v4517_v9 = vpop.permute.xlu1 %695  ;;  %v4519_v10 = vpop.permute.xlu0 %967 }
  0xea   : > { %1075 = vperm.xlu1 %3849, %v4356_v21  }
  0xec   : > { %v4522_v11 = vpop.permute.xlu1 %703  ;;  %v4524_v12 = vpop.permute.xlu0 %975 }
  0xed   : > { %6142 = vst [vmem:[#allocation37_spill] sm:$0xff] %v4522_v11 }
  0xee   : > { %3852 = vset.pattern.permute.xlu1 %v4131_v6 }
  0xf0   : > { %v4527_v13 = vpop.permute.xlu1 %711  ;;  %v4529_v14 = vpop.permute.xlu0 %983 }
  0xf4   : > { %v4531_v15 = vpop.permute.xlu1 %719  ;;  %v4533_v16 = vpop.permute.xlu0 %991 }
  0xf8   : > { %v4535_v17 = vpop.permute.xlu1 %727  ;;  %v4537_v18 = vpop.permute.xlu0 %999 }
  0xfc   : > { %v4539_v19 = vpop.permute.xlu1 %735  ;;  %v4541_v20 = vpop.permute.xlu0 %1007 }
  0xfd   : > { %6143 = vst [vmem:[#allocation38_spill] sm:$0xff] %v4541_v20 }
 0x100   : > { %v4543_v21 = vpop.permute.xlu1 %743  ;;  %v4545_v22 = vpop.permute.xlu0 %1015 }
 0x101   : > { %6144 = vst [vmem:[#allocation39_spill] sm:$0xff] %v4543_v21 }
 0x104   : > { %v4547_v6 = vpop.permute.xlu1 %751  ;;  %v4549_v23 = vpop.permute.xlu0 %1023 }
 0x108   : > { %v4551_v24 = vpop.permute.xlu1 %759  ;;  %v4553_v25 = vpop.permute.xlu0 %1031 }
 0x109   : > { %6145 = vst [vmem:[#allocation40_spill] sm:$0xff] %v4553_v25 }
 0x10c   : > { %v4555_v26 = vpop.permute.xlu1 %767  ;;  %v4557_v27 = vpop.permute.xlu0 %1039 }
 0x10d   : > { %6146 = vst [vmem:[#allocation41_spill] sm:$0xff] %v4557_v27 }
 0x110   : > { %v4559_v28 = vpop.permute.xlu1 %775  ;;  %v4561_v29 = vpop.permute.xlu0 %1047 }
 0x111   : > { %6147 = vst [vmem:[#allocation42_spill] sm:$0xff] %v4559_v28  ;;  %6148 = vst [vmem:[#allocation43_spill] sm:$0xff] %v4561_v29 }
 0x114   : > { %v4563_v31 = vpop.permute.xlu1 %783  ;;  %v4565_v32 = vpop.permute.xlu0 %1055 }
 0x115   : > { %6149 = vst [vmem:[#allocation44_spill] sm:$0xff] %v4563_v31  ;;  %6150 = vst [vmem:[#allocation45_spill] sm:$0xff] %v4565_v32 }
 0x118   : > { %v4570_v34 = vpop.permute.xlu1 %791  ;;  %v4572_v35 = vpop.permute.xlu0 %1063 }
 0x119   : > { %6152 = vst [vmem:[#allocation47_spill] sm:$0xff] %v4570_v34  ;;  %6153 = vst [vmem:[#allocation48_spill] sm:$0xff] %v4572_v35  ;;  %v4593_v35 = vsub.s32 2, %v4568_v33  ;;  %v823_v33 = vmul.f32 %v4590_v30, %v4512_v7  ;;  %v625_v7 = vmul.f32 %v4587_v2, %v4432_v40  ;;  %v627_v40 = vmul.f32 %v4587_v2, %v4437_v42 }
 0x11a   : > { %v629_v42 = vmul.f32 %v4587_v2, %v4442_v44 }
 0x11b   : > { %6158 = vst [vmem:[#allocation53_spill] sm:$0xff] %v4593_v35  ;;  %v4604_v0 = vrot.slane %v452_v3, %v4593_v35 }
 0x11c   : > { %v4580_v5 = vpop.permute.xlu1 %799  ;;  %v4582_v4 = vpop.permute.xlu0 %1071 }
 0x11d   : > { %6156 = vst [vmem:[#allocation51_spill] sm:$0xff] %v4580_v5  ;;  %6157 = vst [vmem:[#allocation52_spill] sm:$0xff] %v4582_v4  ;;  %v822_v4 = vmul.f32 %v4590_v30, %v4427_v39  ;;  %v824_v39 = vmul.f32 %v4590_v30, %v4517_v9  ;;  %v1087_v3 = vmul.f32 %v4604_v0, %v4514_v8 }
 0x120   : > { %v4595_v1 = vpop.permute.xlu1 %807 }
 0x121   : > { %6159 = vst [vmem:[#allocation54_spill] sm:$0xff] %v4595_v1  ;;  %v4597_v32 = vpop.permute.xlu0 %456 }
 0x122   : > { %6160 = vst [vmem:[#allocation55_spill] sm:$0xff] %v4597_v32  ;;  %v622_v5 = vmul.f32 %v4587_v2, %v4597_v32 }
 0x124   : > { %v886_v34 = vadd.f32 %v822_v4, %v622_v5  ;;  %v825_v5 = vmul.f32 %v4590_v30, %v4434_v41  ;;  %v827_v41 = vmul.f32 %v4590_v30, %v4439_v43 }
 0x125   : > { %v4606_v36 = vpop.permute.xlu1 %951  ;;  %v4608_v37 = vpop.permute.xlu0 %461 }
 0x126   : > { %6161 = vst [vmem:[#allocation56_spill] sm:$0xff] %v4608_v37  ;;  %v623_v1 = vmul.f32 %v4587_v2, %v4608_v37  ;;  %v1086_v32 = vmul.f32 %v4604_v0, %v4606_v36  ;;  %v826_v37 = vmul.f32 %v4590_v30, %v4522_v11  ;;  %v1090_v11 = vmul.f32 %v4604_v0, %v4519_v10 }
 0x127   : > { %v891_v43 = vadd.f32 %v827_v41, %v627_v40 }
 0x128   : > { %v887_v35 = vadd.f32 %v823_v33, %v623_v1  ;;  %v1150_v29 = vadd.f32 %v1086_v32, %v886_v34  ;;  %v888_v33 = vadd.f32 %v824_v39, %v624_v63  ;;  %v889_v39 = vadd.f32 %v825_v5, %v625_v7 }
 0x129   : > { %v4624_v62 = vpop.permute.xlu1 %959  ;;  %v4626_v4 = vpop.permute.xlu0 %476  ;;  %v828_v63 = vmul.f32 %v4590_v30, %v4527_v13  ;;  %v1092_v7 = vmul.f32 %v4604_v0, %v4524_v12 }
 0x12a   : > { %6162 = vst [vmem:[#allocation57_spill] sm:$0xff] %v4626_v4  ;;  %v626_v1 = vmul.f32 %v4587_v2, %v4626_v4  ;;  %1214 = vmax.xlane.f32.xlu0 %v1150_v29  ;;  %v1151_v32 = vadd.f32 %v1087_v3, %v887_v35  ;;  %v1088_v34 = vmul.f32 %v4604_v0, %v4624_v62 }
 0x12c   : > { %v890_v8 = vadd.f32 %v826_v37, %v626_v1  ;;  %1216 = vmax.xlane.f32.xlu1 %v1151_v32  ;;  %v1152_v29 = vadd.f32 %v1088_v34, %v888_v33  ;;  %v829_v34 = vmul.f32 %v4590_v30, %v4444_v45 }
 0x12d   : > { %v4642_v38 = vpop.permute.xlu1 %963  ;;  %v4644_v4 = vpop.permute.xlu0 %486 }
 0x12e   : > { %v1089_v35 = vmul.f32 %v4604_v0, %v4642_v38  ;;  %v628_v37 = vmul.f32 %v4587_v2, %v4644_v4  ;;  %1218 = vmax.xlane.f32.xlu0 %v1152_v29  ;;  %v1154_v3 = vadd.f32 %v1090_v11, %v890_v8  ;;  %v830_v8 = vmul.f32 %v4590_v30, %v4531_v15 }
 0x12f   : > { %v893_v44 = vadd.f32 %v829_v34, %v629_v42  ;;  %v1096_v42 = vmul.f32 %v4604_v0, %v4533_v16 }
 0x130   : > { %v892_v1 = vadd.f32 %v828_v63, %v628_v37  ;;  %v1153_v32 = vadd.f32 %v1089_v35, %v889_v39  ;;  %1222 = vmax.xlane.f32.xlu1 %v1154_v3  ;;  %v631_v63 = vmul.f32 %v4587_v2, %v4447_v46  ;;  %v831_v35 = vmul.f32 %v4590_v30, %v4449_v47 }
 0x131   : > { %v4656_v5 = vpop.permute.xlu1 %971  ;;  %v4658_v33 = vpop.permute.xlu0 %496  ;;  %v1094_v37 = vmul.f32 %v4604_v0, %v4529_v14  ;;  %v833_v46 = vmul.f32 %v4590_v30, %v4454_v49 }
 0x132   : > { %v1091_v40 = vmul.f32 %v4604_v0, %v4656_v5  ;;  %v630_v41 = vmul.f32 %v4587_v2, %v4658_v33  ;;  %1220 = vmax.xlane.f32.xlu0 %v1153_v32  ;;  %v1156_v11 = vadd.f32 %v1092_v7, %v892_v1  ;;  %v832_v1 = vmul.f32 %v4590_v30, %v4535_v17 }
 0x134   : > { %v894_v29 = vadd.f32 %v830_v8, %v630_v41  ;;  %v1155_v39 = vadd.f32 %v1091_v40, %v891_v43  ;;  %1226 = vmax.xlane.f32.xlu1 %v1156_v11  ;;  %v895_v41 = vadd.f32 %v831_v35, %v631_v63  ;;  %v633_v11 = vmul.f32 %v4587_v2, %v4452_v48 }
 0x135   : > { %v4674_v3 = vpop.permute.xlu1 %979  ;;  %v4676_v45 = vpop.permute.xlu0 %506 }
 0x136   : > { %v1093_v43 = vmul.f32 %v4604_v0, %v4674_v3  ;;  %v632_v32 = vmul.f32 %v4587_v2, %v4676_v45  ;;  %1224 = vmax.xlane.f32.xlu0 %v1155_v39  ;;  %v1158_v7 = vadd.f32 %v1094_v37, %v894_v29  ;;  %v834_v29 = vmul.f32 %v4590_v30, %v4539_v19 }
 0x137   : > { %v897_v48 = vadd.f32 %v833_v46, %v633_v11  ;;  %v1100_v46 = vmul.f32 %v4604_v0, %v4541_v20 }
 0x138   : > { %v896_v8 = vadd.f32 %v832_v1, %v632_v32  ;;  %v1157_v40 = vadd.f32 %v1093_v43, %v893_v44  ;;  %1230 = vmax.xlane.f32.xlu1 %v1158_v7  ;;  %v635_v1 = vmul.f32 %v4587_v2, %v4457_v50  ;;  %v835_v43 = vmul.f32 %v4590_v30, %v4459_v51 }
 0x139   : > { %v4688_v34 = vpop.permute.xlu1 %987  ;;  %v4690_v47 = vpop.permute.xlu0 %516  ;;  %v1098_v32 = vmul.f32 %v4604_v0, %v4537_v18  ;;  %v837_v51 = vmul.f32 %v4590_v30, %v4464_v53 }
 0x13a   : > { %v1095_v44 = vmul.f32 %v4604_v0, %v4688_v34  ;;  %v634_v39 = vmul.f32 %v4587_v2, %v4690_v47  ;;  %1228 = vmax.xlane.f32.xlu0 %v1157_v40  ;;  %v1160_v63 = vadd.f32 %v1096_v42, %v896_v8  ;;  %v836_v8 = vmul.f32 %v4590_v30, %v4543_v21 }
 0x13c   : > { %v898_v35 = vadd.f32 %v834_v29, %v634_v39  ;;  %v1159_v37 = vadd.f32 %v1095_v44, %v895_v41  ;;  %1234 = vmax.xlane.f32.xlu1 %v1160_v63  ;;  %v899_v39 = vadd.f32 %v835_v43, %v635_v1  ;;  %v637_v63 = vmul.f32 %v4587_v2, %v4462_v52 }
 0x13d   : > { %v4706_v7 = vpop.permute.xlu1 %995  ;;  %v4708_v49 = vpop.permute.xlu0 %526 }
 0x13e   : > { %6163 = vst [vmem:[#allocation58_spill] sm:$0xff] %v4708_v49  ;;  %v1097_v40 = vmul.f32 %v4604_v0, %v4706_v7  ;;  %v636_v41 = vmul.f32 %v4587_v2, %v4708_v49  ;;  %1232 = vmax.xlane.f32.xlu0 %v1159_v37  ;;  %v1162_v42 = vadd.f32 %v1098_v32, %v898_v35 }
 0x13f   : > { %v838_v35 = vmul.f32 %v4590_v30, %v4547_v6  ;;  %v901_v53 = vadd.f32 %v837_v51, %v637_v63  ;;  %v1104_v51 = vmul.f32 %v4604_v0, %v4549_v23 }
 0x140   : > { %v900_v29 = vadd.f32 %v836_v8, %v636_v41  ;;  %v1161_v44 = vadd.f32 %v1097_v40, %v897_v48  ;;  %1238 = vmax.xlane.f32.xlu1 %v1162_v42  ;;  %v639_v8 = vmul.f32 %v4587_v2, %v4467_v54  ;;  %v839_v40 = vmul.f32 %v4590_v30, %v4469_v55 }
 0x141   : > { %v4720_v11 = vpop.permute.xlu1 %1003  ;;  %v4722_v21 = vpop.permute.xlu0 %536  ;;  %v1102_v41 = vmul.f32 %v4604_v0, %v4545_v22 }
 0x142   : > { %v1099_v48 = vmul.f32 %v4604_v0, %v4720_v11  ;;  %v638_v37 = vmul.f32 %v4587_v2, %v4722_v21  ;;  %1236 = vmax.xlane.f32.xlu0 %v1161_v44  ;;  %v1164_v1 = vadd.f32 %v1100_v46, %v900_v29  ;;  %v840_v29 = vmul.f32 %v4590_v30, %v4551_v24 }
 0x144   : > { %v902_v43 = vadd.f32 %v838_v35, %v638_v37  ;;  %v1163_v32 = vadd.f32 %v1099_v48, %v899_v39  ;;  %1242 = vmax.xlane.f32.xlu1 %v1164_v1  ;;  %v903_v37 = vadd.f32 %v839_v40, %v639_v8  ;;  %v641_v1 = vmul.f32 %v4587_v2, %v4472_v56 }
 0x145   : > { %v4738_v42 = vpop.permute.xlu1 %1011  ;;  %v4740_v20 = vpop.permute.xlu0 %546 }
 0x146   : > { %6164 = vst [vmem:[#allocation59_spill] sm:$0xff] %v4738_v42  ;;  %v1101_v44 = vmul.f32 %v4604_v0, %v4738_v42  ;;  %v640_v39 = vmul.f32 %v4587_v2, %v4740_v20  ;;  %1240 = vmax.xlane.f32.xlu0 %v1163_v32  ;;  %v1166_v46 = vadd.f32 %v1102_v41, %v902_v43 }
 0x147   : > { %v841_v42 = vmul.f32 %v4590_v30, %v4474_v57  ;;  %v842_v43 = vmul.f32 %v4590_v30, %v4555_v26 }
 0x148   : > { %v904_v35 = vadd.f32 %v840_v29, %v640_v39  ;;  %v1165_v48 = vadd.f32 %v1101_v44, %v901_v53  ;;  %1246 = vmax.xlane.f32.xlu1 %v1166_v46  ;;  %v643_v29 = vmul.f32 %v4587_v2, %v4477_v58  ;;  %v843_v44 = vmul.f32 %v4590_v30, %v4479_v59 }
 0x149   : > { %v4752_v63 = vpop.permute.xlu1 %1019  ;;  %v4754_v52 = vpop.permute.xlu0 %556  ;;  %v1106_v39 = vmul.f32 %v4604_v0, %v4553_v25  ;;  %v905_v57 = vadd.f32 %v841_v42, %v641_v1  ;;  %v1108_v42 = vmul.f32 %v4604_v0, %v4557_v27  ;;  %v845_v58 = vmul.f32 %v4590_v30, %v4484_v61  ;;  %v6170_v61 = vld [vmem:[#allocation43_spill] sm:$0xff]  ;;  %v6191_v25 = vld [vmem:[#allocation33_spill] sm:$0xff] }
 0x14a   : > { %v1103_v53 = vmul.f32 %v4604_v0, %v4752_v63  ;;  %v642_v32 = vmul.f32 %v4587_v2, %v4754_v52  ;;  %1244 = vmax.xlane.f32.xlu0 %v1165_v48  ;;  %v1168_v8 = vadd.f32 %v1104_v51, %v904_v35  ;;  %v844_v35 = vmul.f32 %v4590_v30, %v4559_v28 }
 0x14c   : > { %v906_v40 = vadd.f32 %v842_v43, %v642_v32  ;;  %v1167_v41 = vadd.f32 %v1103_v53, %v903_v37  ;;  %1250 = vmax.xlane.f32.xlu1 %v1168_v8  ;;  %v907_v32 = vadd.f32 %v843_v44, %v643_v29  ;;  %v645_v8 = vmul.f32 %v4587_v2, %v4482_v60 }
 0x14d   : > { %v4770_v46 = vpop.permute.xlu1 %1027  ;;  %v4772_v49 = vpop.permute.xlu0 %566  ;;  %v1110_v60 = vmul.f32 %v4604_v0, %v6170_v61 }
 0x14e   : > { %6165 = vst [vmem:[#allocation60_spill] sm:$0xff] %v4770_v46  ;;  %v1105_v48 = vmul.f32 %v4604_v0, %v4770_v46  ;;  %v644_v37 = vmul.f32 %v4587_v2, %v4772_v49  ;;  %1248 = vmax.xlane.f32.xlu0 %v1167_v41  ;;  %v1170_v51 = vadd.f32 %v1106_v39, %v906_v40  ;;  %v6189_v46 = vld [vmem:[#allocation53_spill] sm:$0xff] }
 0x14f   : > { %v846_v40 = vmul.f32 %v4590_v30, %v4563_v31  ;;  %v909_v27 = vadd.f32 %v845_v58, %v645_v8 }
 0x150   : > { %v908_v43 = vadd.f32 %v844_v35, %v644_v37  ;;  %v1169_v53 = vadd.f32 %v1105_v48, %v905_v57  ;;  %1254 = vmax.xlane.f32.xlu1 %v1170_v51  ;;  %v6168_v35 = vld [vmem:[#allocation27_spill] sm:$0xff]  ;;  %v6169_v37 = vld [vmem:[#allocation28_spill] sm:$0xff] }
 0x151   : > { %v4784_v1 = vpop.permute.xlu1 %1035  ;;  %v4786_v59 = vpop.permute.xlu0 %576  ;;  %v647_v48 = vmul.f32 %v4587_v2, %v6168_v35  ;;  %v847_v51 = vmul.f32 %v4590_v30, %v6169_v37  ;;  %v6175_v35 = vld [vmem:[#allocation45_spill] sm:$0xff] }
 0x152   : > { %6166 = vst [vmem:[#allocation61_spill] sm:$0xff] %v4784_v1  ;;  %6167 = vst [vmem:[#allocation62_spill] sm:$0xff] %v4786_v59  ;;  %v1107_v57 = vmul.f32 %v4604_v0, %v4784_v1  ;;  %v646_v41 = vmul.f32 %v4587_v2, %v4786_v59  ;;  %1252 = vmax.xlane.f32.xlu0 %v1169_v53  ;;  %v1172_v29 = vadd.f32 %v1108_v42, %v908_v43  ;;  %v6173_v59 = vld [vmem:[#allocation47_spill] sm:$0xff] }
 0x153   : > { %v848_v43 = vmul.f32 %v4590_v30, %v6173_v59  ;;  %v1112_v58 = vmul.f32 %v4604_v0, %v6175_v35  ;;  %v6182_v35 = vld [vmem:[#allocation48_spill] sm:$0xff] }
 0x154   : > { %v910_v44 = vadd.f32 %v846_v40, %v646_v41  ;;  %v1171_v39 = vadd.f32 %v1107_v57, %v907_v32  ;;  %1258 = vmax.xlane.f32.xlu1 %v1172_v29  ;;  %v911_v41 = vadd.f32 %v847_v51, %v647_v48  ;;  %v6174_v29 = vld [vmem:[#allocation29_spill] sm:$0xff] }
 0x155   : > { %v4802_v31 = vpop.permute.xlu1 %1043  ;;  %v4804_v1 = vpop.permute.xlu0 %586  ;;  %v649_v37 = vmul.f32 %v4587_v2, %v6174_v29  ;;  %v453_v51 = vld [vmem:[%s372_s20 + $0x4] sm:$0x7]  ;;  %v6181_v29 = vld [vmem:[#allocation32_spill] sm:$0xff] }
 0x156   : > { %6171 = vst [vmem:[#allocation63_spill] sm:$0xff] %v4802_v31  ;;  %6172 = vst [vmem:[#allocation64_spill] sm:$0xff] %v4804_v1  ;;  %v1109_v53 = vmul.f32 %v4604_v0, %v4802_v31  ;;  %v648_v32 = vmul.f32 %v4587_v2, %v4804_v1  ;;  %1256 = vmax.xlane.f32.xlu0 %v1171_v39  ;;  %v1174_v42 = vadd.f32 %v1110_v60, %v910_v44  ;;  %v6178_v31 = vld [vmem:[#allocation30_spill] sm:$0xff]  ;;  %v6179_v39 = vld [vmem:[#allocation51_spill] sm:$0xff] }
 0x157   : > { %v849_v61 = vmul.f32 %v4590_v30, %v6178_v31  ;;  %v850_v60 = vmul.f32 %v4590_v30, %v6179_v39  ;;  %v851_v31 = vmul.f32 %v4590_v30, %v6181_v29  ;;  %v1114_v39 = vmul.f32 %v4604_v0, %v6182_v35  ;;  %v6187_v29 = vld [vmem:[#allocation50_spill] sm:$0xff]  ;;  %v6188_v35 = vld [vmem:[#allocation52_spill] sm:$0xff] }
 0x158   : > { %v912_v40 = vadd.f32 %v848_v43, %v648_v32  ;;  %v1173_v57 = vadd.f32 %v1109_v53, %v909_v27  ;;  %1262 = vmax.xlane.f32.xlu1 %v1174_v42  ;;  %v6180_v32 = vld [vmem:[#allocation31_spill] sm:$0xff]  ;;  %v4855_v28 = vrot.slane %v453_v51, %v6189_v46 }
 0x159   : > { %v4816_v8 = vpop.permute.xlu1 %1051  ;;  %v4818_v59 = vpop.permute.xlu0 %596  ;;  %v651_v42 = vmul.f32 %v4587_v2, %v6180_v32  ;;  %v4850_v32 = vrot.slane %v453_v51, %v6187_v29  ;;  %v653_v29 = vmul.f32 %v4587_v2, %v6191_v25 }
 0x15a   : > { %6176 = vst [vmem:[#allocation65_spill] sm:$0xff] %v4816_v8  ;;  %6177 = vst [vmem:[#allocation66_spill] sm:$0xff] %v4818_v59  ;;  %v1111_v27 = vmul.f32 %v4604_v0, %v4816_v8  ;;  %v650_v44 = vmul.f32 %v4587_v2, %v4818_v59  ;;  %1260 = vmax.xlane.f32.xlu0 %v1173_v57  ;;  %v1176_v48 = vadd.f32 %v1112_v58, %v912_v40  ;;  %v6185_v40 = vld [vmem:[#allocation54_spill] sm:$0xff] }
 0x15b   : > { %v913_v57 = vadd.f32 %v849_v61, %v649_v37  ;;  %v852_v58 = vmul.f32 %v4590_v30, %v6185_v40  ;;  %v1116_v61 = vmul.f32 %v4604_v0, %v6188_v35  ;;  %v915_v40 = vadd.f32 %v851_v31, %v651_v42  ;;  %v6193_v31 = vld [vmem:[#allocation8_spill] sm:$0xff] }
 0x15c   : > { %v914_v43 = vadd.f32 %v850_v60, %v650_v44  ;;  %v1175_v53 = vadd.f32 %v1111_v27, %v911_v41  ;;  %1266 = vmax.xlane.f32.xlu1 %v1176_v48  ;;  %v6186_v27 = vld [vmem:[#allocation49_spill] sm:$0xff]  ;;  %v854_v46 = vmul.f32 %v4850_v32, %v6193_v31  ;;  %v856_v42 = vmul.f32 %v4850_v32, %v4517_v9 }
 0x15d   : > { %v4836_v8 = vpop.permute.xlu1 %1059  ;;  %v4838_v1 = vpop.permute.xlu0 %606  ;;  %v4847_v44 = vrot.slane %v453_v51, %v6186_v27  ;;  %v1118_v51 = vmul.f32 %v4855_v28, %v4606_v36  ;;  %v6197_v36 = vld [vmem:[#allocation35_spill] sm:$0xff]  ;;  %v1120_v9 = vmul.f32 %v4855_v28, %v4624_v62 }
 0x15e   : > { %6183 = vst [vmem:[#allocation67_spill] sm:$0xff] %v4836_v8  ;;  %6184 = vst [vmem:[#allocation68_spill] sm:$0xff] %v4838_v1  ;;  %v1113_v41 = vmul.f32 %v4604_v0, %v4836_v8  ;;  %v652_v60 = vmul.f32 %v4587_v2, %v4838_v1  ;;  %1264 = vmax.xlane.f32.xlu0 %v1175_v53  ;;  %v1178_v48 = vadd.f32 %v1114_v39, %v914_v43  ;;  %v6190_v8 = vld [vmem:[#allocation55_spill] sm:$0xff]  ;;  %v6192_v53 = vld [vmem:[#allocation34_spill] sm:$0xff] }
 0x15f   : > { %v654_v1 = vmul.f32 %v4847_v44, %v6190_v8  ;;  %v853_v39 = vmul.f32 %v4590_v30, %v6192_v53  ;;  %v6194_v2 = vld [vmem:[#allocation56_spill] sm:$0xff] }
 0x160   : > { %v916_v37 = vadd.f32 %v852_v58, %v652_v60  ;;  %v1177_v59 = vadd.f32 %v1113_v41, %v913_v57  ;;  %1270 = vmax.xlane.f32.xlu1 %v1178_v48  ;;  %v655_v41 = vmul.f32 %v4847_v44, %v6194_v2  ;;  %v6196_v60 = vld [vmem:[#allocation7_spill] sm:$0xff] }
 0x161   : > { %v4859_v27 = vpop.permute.xlu1 %1067  ;;  %v918_v58 = vadd.f32 %v854_v46, %v654_v1  ;;  %v656_v48 = vmul.f32 %v4847_v44, %v6196_v60  ;;  %v6198_v1 = vld [vmem:[#allocation57_spill] sm:$0xff]  ;;  %v6201_v60 = vld [vmem:[#allocation10_spill] sm:$0xff] }
 0x162   : > { %v1115_v43 = vmul.f32 %v4604_v0, %v4859_v27  ;;  %v1180_v57 = vadd.f32 %v1116_v61, %v916_v37  ;;  %1268 = vmax.xlane.f32.xlu0 %v1177_v59  ;;  %v917_v61 = vadd.f32 %v853_v39, %v653_v29  ;;  %v855_v59 = vmul.f32 %v4850_v32, %v6197_v36  ;;  %v6199_v46 = vld [vmem:[#allocation37_spill] sm:$0xff] }
 0x163   : > { %v920_v31 = vadd.f32 %v856_v42, %v656_v48  ;;  %v858_v2 = vmul.f32 %v4850_v32, %v6199_v46  ;;  %v6200_v39 = vld [vmem:[#allocation9_spill] sm:$0xff]  ;;  %v857_v36 = vmul.f32 %v4850_v32, %v6201_v60  ;;  %v1122_v42 = vmul.f32 %v4855_v28, %v4519_v10  ;;  %v6206_v46 = vld [vmem:[#allocation14_spill] sm:$0xff] }
 0x164   : > { %v1179_v8 = vadd.f32 %v1115_v43, %v915_v40  ;;  %1274 = vmax.xlane.f32.xlu1 %v1180_v57  ;;  %v658_v40 = vmul.f32 %v4847_v44, %v6198_v1  ;;  %v1182_v43 = vadd.f32 %v1118_v51, %v918_v58  ;;  %v919_v29 = vadd.f32 %v855_v59, %v655_v41  ;;  %v6204_v59 = vld [vmem:[#allocation12_spill] sm:$0xff] }
 0x165   : > { %v4875_v30 = vpop.permute.xlu1 %1075  ;;  %v660_v51 = vmul.f32 %v4847_v44, %v4644_v4  ;;  %v860_v58 = vmul.f32 %v4850_v32, %v4527_v13  ;;  %v1121_v41 = vmul.f32 %v4855_v28, %v4642_v38  ;;  %v859_v4 = vmul.f32 %v4850_v32, %v6204_v59 }
 0x166   : > { %6195 = vst [vmem:[#allocation52_spill] sm:$0xff] %v4875_v30  ;;  %v1117_v37 = vmul.f32 %v4604_v0, %v4875_v30  ;;  %1272 = vmax.xlane.f32.xlu0 %v1179_v8  ;;  %v657_v0 = vmul.f32 %v4847_v44, %v6200_v39  ;;  %v6202_v30 = vld [vmem:[#allocation36_spill] sm:$0xff]  ;;  %v922_v53 = vadd.f32 %v858_v2, %v658_v40 }
 0x167   : > { %v1119_v62 = vmul.f32 %v4855_v28, %v6202_v30  ;;  %v1184_v8 = vadd.f32 %v1120_v9, %v920_v31  ;;  %v924_v1 = vadd.f32 %v860_v58, %v660_v51  ;;  %v662_v9 = vmul.f32 %v4847_v44, %v4658_v33  ;;  %v6208_v51 = vld [vmem:[#allocation16_spill] sm:$0xff] }
 0x168   : > { %v1181_v57 = vadd.f32 %v1117_v37, %v917_v61  ;;  %1278 = vmax.xlane.f32.xlu1 %v1182_v43  ;;  %v921_v61 = vadd.f32 %v857_v36, %v657_v0  ;;  %v6203_v37 = vld [vmem:[#allocation11_spill] sm:$0xff]  ;;  %v1186_v10 = vadd.f32 %v1122_v42, %v922_v53  ;;  %v1124_v13 = vmul.f32 %v4855_v28, %v4524_v12 }
 0x169   : > { %v1183_v48 = vadd.f32 %v1119_v62, %v919_v29  ;;  %v659_v30 = vmul.f32 %v4847_v44, %v6203_v37  ;;  %v862_v38 = vmul.f32 %v4850_v32, %v4531_v15  ;;  %v1123_v40 = vmul.f32 %v4855_v28, %v4656_v5  ;;  %v6207_v36 = vld [vmem:[#allocation15_spill] sm:$0xff]  ;;  %v6210_v37 = vld [vmem:[#allocation18_spill] sm:$0xff] }
 0x16a   : > { %1276 = vmax.xlane.f32.xlu0 %v1181_v57  ;;  %v1185_v43 = vadd.f32 %v1121_v41, %v921_v61  ;;  %v6205_v57 = vld [vmem:[#allocation13_spill] sm:$0xff]  ;;  %v861_v2 = vmul.f32 %v4850_v32, %v6206_v46  ;;  %v664_v53 = vmul.f32 %v4847_v44, %v4676_v45  ;;  %v1188_v12 = vadd.f32 %v1124_v13, %v924_v1 }
 0x16b   : > { %v661_v31 = vmul.f32 %v4847_v44, %v6205_v57  ;;  %v923_v33 = vadd.f32 %v859_v4, %v659_v30  ;;  %v926_v29 = vadd.f32 %v862_v38, %v662_v9  ;;  %v1126_v15 = vmul.f32 %v4855_v28, %v4529_v14  ;;  %v6211_v38 = vld [vmem:[#allocation19_spill] sm:$0xff] }
 0x16c   : > { %1282 = vmax.xlane.f32.xlu1 %v1184_v8  ;;  %v864_v5 = vmul.f32 %v4850_v32, %v4535_v17  ;;  %v1125_v39 = vmul.f32 %v4855_v28, %v4674_v3  ;;  %v663_v62 = vmul.f32 %v4847_v44, %v6207_v36  ;;  %v863_v45 = vmul.f32 %v4850_v32, %v6208_v51 }
 0x16d   : > { %v1187_v0 = vadd.f32 %v1123_v40, %v923_v33  ;;  %v925_v60 = vadd.f32 %v861_v2, %v661_v31  ;;  %v666_v42 = vmul.f32 %v4847_v44, %v4690_v47  ;;  %v1190_v14 = vadd.f32 %v1126_v15, %v926_v29 }
 0x16e   : > { %1280 = vmax.xlane.f32.xlu0 %v1183_v48  ;;  %v928_v8 = vadd.f32 %v864_v5, %v664_v53  ;;  %v1128_v17 = vmul.f32 %v4855_v28, %v4533_v16  ;;  %v866_v3 = vmul.f32 %v4850_v32, %v4539_v19  ;;  %v1127_v58 = vmul.f32 %v4855_v28, %v4688_v34  ;;  %v6209_v48 = vld [vmem:[#allocation17_spill] sm:$0xff] }
 0x16f   : > { %v1189_v41 = vadd.f32 %v1125_v39, %v925_v60  ;;  %v665_v61 = vmul.f32 %v4847_v44, %v6209_v48  ;;  %v865_v30 = vmul.f32 %v4850_v32, %v6210_v37  ;;  %v927_v47 = vadd.f32 %v863_v45, %v663_v62  ;;  %v6213_v39 = vld [vmem:[#allocation40_spill] sm:$0xff]  ;;  %v6216_v62 = vld [vmem:[#allocation23_spill] sm:$0xff]  ;;  %v6221_v37 = vld [vmem:[#allocation61_spill] sm:$0xff] }
 0x170   : > { %1286 = vmax.xlane.f32.xlu1 %v1186_v10  ;;  %v930_v59 = vadd.f32 %v866_v3, %v666_v42  ;;  %v670_v4 = vmul.f32 %v4847_v44, %v4722_v21  ;;  %v1192_v16 = vadd.f32 %v1128_v17, %v928_v8  ;;  %v1130_v19 = vmul.f32 %v4855_v28, %v4537_v18  ;;  %v6215_v60 = vld [vmem:[#allocation60_spill] sm:$0xff] }
 0x171   : > { %v870_v34 = vmul.f32 %v4850_v32, %v4547_v6  ;;  %v1129_v1 = vmul.f32 %v4855_v28, %v4706_v7  ;;  %v1191_v9 = vadd.f32 %v1127_v58, %v927_v47  ;;  %v929_v10 = vadd.f32 %v865_v30, %v665_v61  ;;  %v6217_v45 = vld [vmem:[#allocation24_spill] sm:$0xff]  ;;  %v6219_v58 = vld [vmem:[#allocation41_spill] sm:$0xff] }
 0x172   : > { %1284 = vmax.xlane.f32.xlu0 %v1185_v43  ;;  %v667_v13 = vmul.f32 %v4847_v44, %v4457_v50  ;;  %v867_v21 = vmul.f32 %v4850_v32, %v6211_v38  ;;  %v672_v43 = vmul.f32 %v4847_v44, %v4740_v20  ;;  %v1194_v18 = vadd.f32 %v1130_v19, %v930_v59  ;;  %v6220_v48 = vld [vmem:[#allocation44_spill] sm:$0xff]  ;;  %v6223_v19 = vld [vmem:[#allocation26_spill] sm:$0xff]  ;;  %v6225_v38 = vld [vmem:[#allocation43_spill] sm:$0xff] }
 0x173   : > { %v934_v40 = vadd.f32 %v870_v34, %v670_v4  ;;  %v1134_v6 = vmul.f32 %v4855_v28, %v4545_v22  ;;  %v872_v7 = vmul.f32 %v4850_v32, %v4551_v24  ;;  %v1131_v57 = vmul.f32 %v4855_v28, %v4720_v11  ;;  %v6222_v4 = vld [vmem:[#allocation25_spill] sm:$0xff] }
 0x174   : > { %1290 = vmax.xlane.f32.xlu1 %v1188_v12  ;;  %v1193_v50 = vadd.f32 %v1129_v1, %v929_v10  ;;  %v671_v31 = vmul.f32 %v4847_v44, %v4467_v54  ;;  %v871_v46 = vmul.f32 %v4850_v32, %v4469_v55  ;;  %v931_v20 = vadd.f32 %v867_v21, %v667_v13  ;;  %v6212_v12 = vld [vmem:[#allocation22_spill] sm:$0xff] }
 0x175   : > { %v936_v2 = vadd.f32 %v872_v7, %v672_v43  ;;  %v674_v33 = vmul.f32 %v4847_v44, %v4754_v52  ;;  %v1198_v22 = vadd.f32 %v1134_v6, %v934_v40  ;;  %v1136_v24 = vmul.f32 %v4855_v28, %v4549_v23  ;;  %v6226_v40 = vld [vmem:[#allocation47_spill] sm:$0xff] }
 0x176   : > { %1288 = vmax.xlane.f32.xlu0 %v1187_v0  ;;  %v874_v11 = vmul.f32 %v4850_v32, %v4555_v26  ;;  %v1135_v29 = vmul.f32 %v4855_v28, %v4752_v63  ;;  %v1195_v54 = vadd.f32 %v1131_v57, %v931_v20  ;;  %v935_v53 = vadd.f32 %v871_v46, %v671_v31  ;;  %v6214_v0 = vld [vmem:[#allocation42_spill] sm:$0xff]  ;;  %v6228_v57 = vld [vmem:[#allocation27_spill] sm:$0xff]  ;;  %v6229_v31 = vld [vmem:[#allocation28_spill] sm:$0xff] }
 0x177   : > { %v673_v55 = vmul.f32 %v4847_v44, %v4472_v56  ;;  %v873_v52 = vmul.f32 %v4850_v32, %v6212_v12  ;;  %v676_v5 = vmul.f32 %v4847_v44, %v4772_v49  ;;  %v1200_v23 = vadd.f32 %v1136_v24, %v936_v2 }
 0x178   : > { %1294 = vmax.xlane.f32.xlu1 %v1190_v14  ;;  %v938_v15 = vadd.f32 %v874_v11, %v674_v33  ;;  %v1138_v26 = vmul.f32 %v4855_v28, %v6213_v39  ;;  %v876_v63 = vmul.f32 %v4850_v32, %v6214_v0  ;;  %v1137_v36 = vmul.f32 %v4855_v28, %v6215_v60  ;;  %v6218_v14 = vld [vmem:[#allocation62_spill] sm:$0xff]  ;;  %v6231_v11 = vld [vmem:[#allocation45_spill] sm:$0xff]  ;;  %v6236_v60 = vld [vmem:[#allocation48_spill] sm:$0xff] }
 0x179   : > { %v1199_v56 = vadd.f32 %v1135_v29, %v935_v53  ;;  %v675_v51 = vmul.f32 %v4847_v44, %v6216_v62  ;;  %v875_v8 = vmul.f32 %v4850_v32, %v6217_v45  ;;  %v937_v49 = vadd.f32 %v873_v52, %v673_v55  ;;  %v6230_v33 = vld [vmem:[#allocation66_spill] sm:$0xff]  ;;  %v6233_v55 = vld [vmem:[#allocation65_spill] sm:$0xff] }
 0x17a   : > { %1292 = vmax.xlane.f32.xlu0 %v1189_v41  ;;  %v940_v42 = vadd.f32 %v876_v63, %v676_v5  ;;  %v678_v17 = vmul.f32 %v4847_v44, %v6218_v14  ;;  %v1202_v3 = vadd.f32 %v1138_v26, %v938_v15  ;;  %v1140_v41 = vmul.f32 %v4855_v28, %v6219_v58  ;;  %v6234_v5 = vld [vmem:[#allocation29_spill] sm:$0xff]  ;;  %v6235_v39 = vld [vmem:[#allocation30_spill] sm:$0xff] }
 0x17b   : > { %v878_v61 = vmul.f32 %v4850_v32, %v6220_v48  ;;  %v1139_v30 = vmul.f32 %v4855_v28, %v6221_v37  ;;  %v1201_v47 = vadd.f32 %v1137_v36, %v937_v49  ;;  %v939_v59 = vadd.f32 %v875_v8, %v675_v51  ;;  %v6238_v8 = vld [vmem:[#allocation31_spill] sm:$0xff]  ;;  %v6240_v37 = vld [vmem:[#allocation50_spill] sm:$0xff] }
 0x17c   : > { %1298 = vmax.xlane.f32.xlu1 %v1192_v16  ;;  %v677_v16 = vmul.f32 %v4847_v44, %v6222_v4  ;;  %v877_v34 = vmul.f32 %v4850_v32, %v6223_v19  ;;  %v1204_v13 = vadd.f32 %v1140_v41, %v940_v42  ;;  %v1142_v21 = vmul.f32 %v4855_v28, %v6225_v38  ;;  %v6239_v42 = vld [vmem:[#allocation32_spill] sm:$0xff] }
 0x17d   : > { %v942_v1 = vadd.f32 %v878_v61, %v678_v17  ;;  %v880_v43 = vmul.f32 %v4850_v32, %v6226_v40  ;;  %v1203_v7 = vadd.f32 %v1139_v30, %v939_v59  ;;  %v879_v46 = vmul.f32 %v4850_v32, %v6229_v31  ;;  %v1342_v61 = vld [vmem:[%s6035_s2] sm:$0x3]  ;;  %v6242_v40 = vld [vmem:[#allocation54_spill] sm:$0xff] }
 0x17e   : > { %1296 = vmax.xlane.f32.xlu0 %v1191_v9  ;;  %v6224_v9 = vld [vmem:[#allocation64_spill] sm:$0xff]  ;;  %v941_v20 = vadd.f32 %v877_v34, %v677_v16  ;;  %v1144_v29 = vmul.f32 %v4855_v28, %v6231_v11  ;;  %v1143_v12 = vmul.f32 %v4855_v28, %v6233_v55  ;;  %v881_v26 = vmul.f32 %v4850_v32, %v6235_v39 }
 0x17f   : > { %v680_v10 = vmul.f32 %v4847_v44, %v6224_v9  ;;  %v1206_v24 = vadd.f32 %v1142_v21, %v942_v1  ;;  %v1146_v36 = vmul.f32 %v4855_v28, %v6236_v60  ;;  %v683_v49 = vmul.f32 %v4847_v44, %v6238_v8 }
 0x180   : > { %1302 = vmax.xlane.f32.xlu1 %v1194_v18  ;;  %v6227_v18 = vld [vmem:[#allocation63_spill] sm:$0xff]  ;;  %v883_v14 = vmul.f32 %v4850_v32, %v6239_v42  ;;  %v5041_v30 = vrot.slane %v1342_v61, %v6240_v37  ;;  %v685_v31 = vmul.f32 %v4847_v44, %v6191_v25 }
 0x181   : > { %v1141_v6 = vmul.f32 %v4855_v28, %v6227_v18  ;;  %v944_v2 = vadd.f32 %v880_v43, %v680_v10  ;;  %v884_v43 = vmul.f32 %v4850_v32, %v6242_v40  ;;  %v6255_v40 = vld [vmem:[#allocation21_spill] sm:$0xff] }
 0x182   : > { %1300 = vmax.xlane.f32.xlu0 %v1193_v50  ;;  %v679_v50 = vmul.f32 %v4847_v44, %v6228_v57  ;;  %v947_v41 = vadd.f32 %v883_v14, %v683_v49  ;;  %v1148_v57 = vmul.f32 %v4855_v28, %v6188_v35 }
 0x183   : > { %v1205_v52 = vadd.f32 %v1141_v6, %v941_v20  ;;  %v1208_v63 = vadd.f32 %v1144_v29, %v944_v2 }
 0x184   : > { %1310 = vmax.xlane.f32.xlu1 %v1198_v22  ;;  %v682_v22 = vmul.f32 %v4847_v44, %v6230_v33  ;;  %v943_v15 = vadd.f32 %v879_v46, %v679_v50  ;;  %v6245_v46 = vld [vmem:[#allocation34_spill] sm:$0xff] }
 0x185   : > { %v885_v20 = vmul.f32 %v4850_v32, %v6245_v46 }
 0x186   : > { %1304 = vmax.xlane.f32.xlu0 %v1195_v54  ;;  %v6232_v54 = vld [vmem:[#allocation51_spill] sm:$0xff]  ;;  %v1207_v51 = vadd.f32 %v1143_v12, %v943_v15  ;;  %v6249_v15 = vld [vmem:[#allocation49_spill] sm:$0xff] }
 0x187   : > { %v882_v53 = vmul.f32 %v4850_v32, %v6232_v54  ;;  %v949_v29 = vadd.f32 %v885_v20, %v685_v31  ;;  %v6256_v31 = vld [vmem:[#allocation38_spill] sm:$0xff]  ;;  %v6257_v20 = vld [vmem:[#allocation59_spill] sm:$0xff] }
 0x188   : > { %1314 = vmax.xlane.f32.xlu1 %v1200_v23  ;;  %v681_v23 = vmul.f32 %v4847_v44, %v6234_v5  ;;  %v5102_v5 = vrot.slane %v1342_v61, %v6249_v15  ;;  %v6253_v61 = vld [vmem:[#allocation39_spill] sm:$0xff]  ;;  %v1132_v46 = vmul.f32 %v4855_v28, %v6256_v31 }
 0x189   : > { %v946_v0 = vadd.f32 %v882_v53, %v682_v22  ;;  %v6247_v22 = vld [vmem:[#allocation52_spill] sm:$0xff]  ;;  %v868_v37 = vmul.f32 %v4850_v32, %v6253_v61 }
 0x18a   : > { %1312 = vmax.xlane.f32.xlu0 %v1199_v56  ;;  %v6237_v56 = vld [vmem:[#allocation67_spill] sm:$0xff]  ;;  %v945_v45 = vadd.f32 %v881_v26, %v681_v23 }
 0x18b   : > { %v1145_v62 = vmul.f32 %v4855_v28, %v6237_v56  ;;  %v1210_v17 = vadd.f32 %v1146_v36, %v946_v0 }
 0x18c   : > { %1318 = vmax.xlane.f32.xlu1 %v1202_v3  ;;  %v1147_v3 = vmul.f32 %v4855_v28, %v4859_v27 }
 0x18d   : > { %v1209_v58 = vadd.f32 %v1145_v62, %v945_v45 }
 0x18e   : > { %1316 = vmax.xlane.f32.xlu0 %v1201_v47  ;;  %v1211_v48 = vadd.f32 %v1147_v3, %v947_v41  ;;  %v6252_v3 = vld [vmem:[#allocation58_spill] sm:$0xff] }
 0x190   : > { %1322 = vmax.xlane.f32.xlu1 %v1204_v13  ;;  %v6241_v13 = vld [vmem:[#allocation68_spill] sm:$0xff] }
 0x191   : > { %v684_v38 = vmul.f32 %v4847_v44, %v6241_v13  ;;  %v6254_v13 = vld [vmem:[#allocation20_spill] sm:$0xff] }
 0x192   : > { %1320 = vmax.xlane.f32.xlu0 %v1203_v7 }
 0x193   : > { %v948_v6 = vadd.f32 %v884_v43, %v684_v38  ;;  %v669_v38 = vmul.f32 %v4847_v44, %v6254_v13  ;;  %v869_v43 = vmul.f32 %v4850_v32, %v6255_v40 }
 0x194   : > { %1326 = vmax.xlane.f32.xlu1 %v1206_v24  ;;  %v1149_v24 = vmul.f32 %v4855_v28, %v6247_v22 }
 0x195   : > { %v1212_v33 = vadd.f32 %v1148_v57, %v948_v6 }
 0x196   : > { %1324 = vmax.xlane.f32.xlu0 %v1205_v52  ;;  %v1213_v53 = vadd.f32 %v1149_v24, %v949_v29  ;;  %v933_v24 = vadd.f32 %v869_v43, %v669_v38 }
 0x198   : > { %1330 = vmax.xlane.f32.xlu1 %v1208_v63 }
 0x19a   : > { %1328 = vmax.xlane.f32.xlu0 %v1207_v51 }
 0x19c   : > { %1334 = vmax.xlane.f32.xlu1 %v1210_v17 }
 0x19e   : > { %1332 = vmax.xlane.f32.xlu0 %v1209_v58  ;;  %v668_v58 = vmul.f32 %v4847_v44, %v6252_v3 }
 0x1a0   : > { %v932_v6 = vadd.f32 %v868_v37, %v668_v58 }
 0x1a2   : > { %1336 = vmax.xlane.f32.xlu0 %v1211_v48  ;;  %v1196_v29 = vadd.f32 %v1132_v46, %v932_v6 }
 0x1ad   : > { %1416 = vbcast.lane.b32.xlu1 %v5041_v30, 256 }
 0x1b3   : > { %v5044_v47 = vpop.xlane.xlu0 %1214 }
 0x1b5   : > { %v5046_v59 = vpop.xlane.xlu1 %1216 }
 0x1b7   : > { %v5048_v27 = vpop.xlane.xlu0 %1218 }
 0x1b8   : > { %1420 = vbcast.lane.b32.xlu0 %v5041_v30, 264 }
 0x1b9   : > { %v5051_v4 = vpop.xlane.xlu1 %1222 }
 0x1bb   : > { %v5053_v16 = vpop.xlane.xlu0 %1220 }
 0x1bd   : > { %v5055_v19 = vpop.xlane.xlu1 %1226 }
 0x1bf   : > { %v5057_v34 = vpop.xlane.xlu0 %1224 }
 0x1c1   : > { %v5059_v1 = vpop.xlane.xlu1 %1230 }
 0x1c3   : > { %v5061_v9 = vpop.xlane.xlu0 %1228 }
 0x1c5   : > { %v5063_v10 = vpop.xlane.xlu1 %1234 }
 0x1c7   : > { %v5067_v21 = vpop.xlane.xlu0 %1232 }
 0x1c9   : > { %v5071_v18 = vpop.xlane.xlu1 %1238 }
 0x1ca   : > { %6243 = vst [vmem:[#allocation55_spill] sm:$0xff] %v5071_v18 }
 0x1cb   : > { %v5073_v7 = vpop.xlane.xlu0 %1236 }
 0x1cd   : > { %v5077_v50 = vpop.xlane.xlu1 %1242 }
 0x1ce   : > { %6244 = vst [vmem:[#allocation33_spill] sm:$0xff] %v5077_v50 }
 0x1cf   : > { %v5083_v2 = vpop.xlane.xlu0 %1240 }
 0x1d0   : > { %6246 = vst [vmem:[#allocation8_spill] sm:$0xff] %v5083_v2 }
 0x1d1   : > { %v5087_v11 = vpop.xlane.xlu1 %1246  ;;  %1338 = vmax.xlane.f32.xlu1 %v1212_v33  ;;  %v1133_v33 = vmul.f32 %v4855_v28, %v6257_v20 }
 0x1d3   : > { %v5089_v54 = vpop.xlane.xlu0 %1244  ;;  %v1197_v44 = vadd.f32 %v1133_v33, %v933_v24 }
 0x1d4   : > { %6248 = vst [vmem:[#allocation56_spill] sm:$0xff] %v5089_v54 }
 0x1d5   : > { %v5091_v35 = vpop.xlane.xlu1 %1250 }
 0x1d7   : > { %1340 = vmax.xlane.f32.xlu0 %v1213_v53  ;;  %v5093_v25 = vpop.xlane.xlu0 %1248 }
 0x1d9   : > { %v5095_v55 = vpop.xlane.xlu1 %1254 }
 0x1db   : > { %v5097_v12 = vpop.xlane.xlu0 %1252 }
 0x1dd   : > { %v5099_v52 = vpop.xlane.xlu1 %1258 }
 0x1df   : > { %v5104_v23 = vpop.xlane.xlu0 %1256 }
 0x1e1   : > { %v5106_v39 = vpop.xlane.xlu1 %1262 }
 0x1e2   : > { %1353 = vbcast.lane.b32.xlu1 %v5102_v5, 256 }
 0x1e3   : > { %v5109_v26 = vpop.xlane.xlu0 %1260 }
 0x1e5   : > { %v5111_v0 = vpop.xlane.xlu1 %1266 }
 0x1e6   : > { %1424 = vbcast.lane.b32.xlu1 %v5041_v30, 272 }
 0x1e7   : > { %v5114_v63 = vpop.xlane.xlu0 %1264 }
 0x1e9   : > { %v5116_v60 = vpop.xlane.xlu1 %1270 }
 0x1ea   : > { %1428 = vbcast.lane.b32.xlu1 %v5041_v30, 280 }
 0x1eb   : > { %v5119_v36 = vpop.xlane.xlu0 %1268 }
 0x1ed   : > { %1357 = vbcast.lane.b32.xlu0 %v5102_v5, 264  ;;  %v5122_v56 = vpop.xlane.xlu1 %1274 }
 0x1ee   : > { %6250 = vst [vmem:[#allocation7_spill] sm:$0xff] %v5122_v56 }
 0x1ef   : > { %v5124_v62 = vpop.xlane.xlu0 %1272 }
 0x1f1   : > { %v5126_v51 = vpop.xlane.xlu1 %1278 }
 0x1f3   : > { %v5128_v45 = vpop.xlane.xlu0 %1276 }
 0x1f4   : > { %6251 = vst [vmem:[#allocation35_spill] sm:$0xff] %v5128_v45 }
 0x1f5   : > { %v5130_v8 = vpop.xlane.xlu1 %1282 }
 0x1f7   : > { %v5132_v49 = vpop.xlane.xlu0 %1280 }
 0x1f9   : > { %v5136_v14 = vpop.xlane.xlu1 %1286 }
 0x1fb   : > { %v5134_v42 = vpop.xlane.xlu0 %1284 }
 0x1fd   : > { %v5142_v41 = vpop.xlane.xlu1 %1290 }
 0x1ff   : > { %v5138_v17 = vpop.xlane.xlu0 %1288 }
 0x201   : > { %v5158_v22 = vpop.xlane.xlu1 %1294 }
 0x203   : > { %v5144_v48 = vpop.xlane.xlu0 %1292 }
 0x205   : > { %v5162_v15 = vpop.xlane.xlu1 %1298 }
 0x207   : > { %v5152_v57 = vpop.xlane.xlu0 %1296 }
 0x209   : > { %v5166_v3 = vpop.xlane.xlu1 %1302 }
 0x20a   : > { %6259 = vst [vmem:[#allocation37_spill] sm:$0xff] %v5166_v3 }
 0x20b   : > { %v5160_v53 = vpop.xlane.xlu0 %1300 }
 0x20c   : > { %1306 = vmax.xlane.f32.xlu0 %v1196_v29 }
 0x20d   : > { %v1311_v61 = vpop.xlane.xlu1 %1310 }
 0x20e   : > { %1308 = vmax.xlane.f32.xlu1 %v1197_v44 }
 0x20f   : > { %v5164_v32 = vpop.xlane.xlu0 %1304 }
 0x210   : > { %6258 = vst [vmem:[#allocation57_spill] sm:$0xff] %v5164_v32 }
 0x211   : > { %v5171_v28 = vpop.xlane.xlu1 %1314 }
 0x213   : > { %v1313_v58 = vpop.xlane.xlu0 %1312 }
 0x215   : > { %v5177_v38 = vpop.xlane.xlu1 %1318 }
 0x217   : > { %v5168_v37 = vpop.xlane.xlu0 %1316 }
 0x219   : > { %v5185_v43 = vpop.xlane.xlu1 %1322 }
 0x21b   : > { %v5175_v13 = vpop.xlane.xlu0 %1320 }
 0x21d   : > { %v5191_v31 = vpop.xlane.xlu1 %1326 }
 0x21f   : > { %1365 = vbcast.lane.b32.xlu1 %v5102_v5, 280  ;;  %v5181_v40 = vpop.xlane.xlu0 %1324 }
 0x221   : > { %v5199_v20 = vpop.xlane.xlu1 %1330 }
 0x222   : > { %1361 = vbcast.lane.b32.xlu0 %v5102_v5, 272 }
 0x223   : > { %1436 = vbcast.lane.b32.xlu1 %v5041_v30, 296  ;;  %v5189_v6 = vpop.xlane.xlu0 %1328 }
 0x225   : > { %v5205_v24 = vpop.xlane.xlu1 %1334 }
 0x226   : > { %1432 = vbcast.lane.b32.xlu0 %v5041_v30, 288  ;;  %6261 = vst [vmem:[#allocation10_spill] sm:$0xff] %v5205_v24 }
 0x227   : > { %1373 = vbcast.lane.b32.xlu1 %v5102_v5, 296  ;;  %v5195_v46 = vpop.xlane.xlu0 %1332 }
 0x229   : > { %v1417_v44 = vpop.permute.xlu1 %1416 }
 0x22a   : > { %1369 = vbcast.lane.b32.xlu0 %v5102_v5, 288  ;;  %v1526_v54 = vadd.f32 %v1417_v44, %v5087_v11  ;;  %v1558_v45 = vadd.f32 %v1417_v44, %v1311_v61 }
 0x22b   : > { %1444 = vbcast.lane.b32.xlu1 %v5041_v30, 312  ;;  %v5203_v33 = vpop.xlane.xlu0 %1336 }
 0x22c   : > { %6260 = vst [vmem:[#allocation9_spill] sm:$0xff] %v5203_v33  ;;  %v1590_v32 = vmax.f32 %v1526_v54, 0.0  ;;  %v1622_v24 = vmax.f32 %v1558_v45, 0.0 }
 0x22e   : > { %1440 = vbcast.lane.b32.xlu0 %v5041_v30, 304 }
 0x22f   : > { %1381 = vbcast.lane.b32.xlu1 %v5102_v5, 312  ;;  %v1421_v29 = vpop.permute.xlu0 %1420 }
 0x230   : > { %v1527_v50 = vadd.f32 %v1421_v29, %v5093_v25  ;;  %v1559_v56 = vadd.f32 %v1421_v29, %v1313_v58 }
 0x232   : > { %1377 = vbcast.lane.b32.xlu0 %v5102_v5, 304  ;;  %v1591_v3 = vmax.f32 %v1527_v50, 0.0  ;;  %v1623_v18 = vmax.f32 %v1559_v56, 0.0 }
 0x233   : > { %1452 = vbcast.lane.b32.xlu1 %v5041_v30, 328 }
 0x234   : > { %v1647_v2 = vpack.c.bf16 %v1591_v3, %v1590_v32  ;;  %v1663_v25 = vpack.c.bf16 %v1623_v18, %v1622_v24 }
 0x236   : > { %1448 = vbcast.lane.b32.xlu0 %v5041_v30, 320  ;;  %v1784_v33 = vunpack.c.h.b16 %v1647_v2  ;;  %v1783_v11 = vunpack.c.l.b16 %v1647_v2  ;;  %v1815_v50 = vunpack.c.l.b16 %v1663_v25  ;;  %v1816_v58 = vunpack.c.h.b16 %v1663_v25 }
 0x237   : > { %1389 = vbcast.lane.b32.xlu1 %v5102_v5, 328 }
 0x23a   : > { %1385 = vbcast.lane.b32.xlu0 %v5102_v5, 320 }
 0x23b   : > { %1460 = vbcast.lane.b32.xlu1 %v5041_v30, 344 }
 0x23e   : > { %1456 = vbcast.lane.b32.xlu0 %v5041_v30, 336 }
 0x23f   : > { %1397 = vbcast.lane.b32.xlu1 %v5102_v5, 344 }
 0x242   : > { %1393 = vbcast.lane.b32.xlu0 %v5102_v5, 336 }
 0x243   : > { %1468 = vbcast.lane.b32.xlu1 %v5041_v30, 360 }
 0x246   : > { %1464 = vbcast.lane.b32.xlu0 %v5041_v30, 352 }
 0x247   : > { %1405 = vbcast.lane.b32.xlu1 %v5102_v5, 360 }
 0x24a   : > { %1401 = vbcast.lane.b32.xlu0 %v5102_v5, 352 }
 0x24b   : > { %1476 = vbcast.lane.b32.xlu1 %v5041_v30, 376 }
 0x24e   : > { %1472 = vbcast.lane.b32.xlu0 %v5041_v30, 368 }
 0x24f   : > { %1413 = vbcast.lane.b32.xlu1 %v5102_v5, 376 }
 0x252   : > { %1409 = vbcast.lane.b32.xlu0 %v5102_v5, 368 }
 0x253   : > { %1883 = vperm.xlu1 %3852, %v1784_v33  }
 0x256   : > { %1880 = vperm.xlu0 %3851, %v1783_v11  }
 0x257   : > { %1976 = vperm.xlu1 %3852, %v1815_v50  }
 0x25a   : > { %v5220_v54 = vpop.xlane.xlu1 %1338  ;;  %1979 = vperm.xlu0 %3851, %v1816_v58  }
 0x25b   : > { %6262 = vst [vmem:[#allocation36_spill] sm:$0xff] %v5220_v54 }
 0x25e   : > { %v1354_v56 = vpop.permute.xlu1 %1353 }
 0x25f   : > { %v1510_v30 = vadd.f32 %v1354_v56, %v5044_v47  ;;  %v1542_v18 = vadd.f32 %v1354_v56, %v5126_v51 }
 0x260   : > { %v5222_v32 = vpop.xlane.xlu0 %1340 }
 0x261   : > { %6263 = vst [vmem:[#allocation11_spill] sm:$0xff] %v5222_v32  ;;  %v1574_v61 = vmax.f32 %v1510_v30, 0.0  ;;  %v1606_v50 = vmax.f32 %v1542_v18, 0.0 }
 0x262   : > { %v1425_v45 = vpop.permute.xlu1 %1424 }
 0x263   : > { %v1528_v33 = vadd.f32 %v1425_v45, %v5091_v35  ;;  %v1560_v47 = vadd.f32 %v1425_v45, %v5171_v28 }
 0x264   : > { %v1358_v3 = vpop.permute.xlu0 %1357 }
 0x265   : > { %v1511_v5 = vadd.f32 %v1358_v3, %v5046_v59  ;;  %v1543_v2 = vadd.f32 %v1358_v3, %v5132_v49  ;;  %v1592_v51 = vmax.f32 %v1528_v33, 0.0  ;;  %v1624_v3 = vmax.f32 %v1560_v47, 0.0 }
 0x266   : > { %v1429_v24 = vpop.permute.xlu1 %1428 }
 0x267   : > { %v1575_v29 = vmax.f32 %v1511_v5, 0.0  ;;  %v1607_v44 = vmax.f32 %v1543_v2, 0.0  ;;  %v1529_v25 = vadd.f32 %v1429_v24, %v5097_v12  ;;  %v1561_v11 = vadd.f32 %v1429_v24, %v5168_v37 }
 0x269   : > { %v1639_v58 = vpack.c.bf16 %v1575_v29, %v1574_v61  ;;  %v1593_v54 = vmax.f32 %v1529_v25, 0.0  ;;  %v1655_v56 = vpack.c.bf16 %v1607_v44, %v1606_v50  ;;  %v1625_v49 = vmax.f32 %v1561_v11, 0.0 }
 0x26b   : > { %v1767_v59 = vunpack.c.l.b16 %v1639_v58  ;;  %v1768_v32 = vunpack.c.h.b16 %v1639_v58  ;;  %v1648_v30 = vpack.c.bf16 %v1593_v54, %v1592_v51  ;;  %v1799_v35 = vunpack.c.l.b16 %v1655_v56 }
 0x26c   : > { %v1664_v5 = vpack.c.bf16 %v1625_v49, %v1624_v3  ;;  %v1800_v12 = vunpack.c.h.b16 %v1655_v56 }
 0x26d   : > { %1835 = vperm.xlu0 %3851, %v1768_v32   ;;  %1832 = vperm.xlu1 %3852, %v1767_v59   ;;  %v1785_v2 = vunpack.c.l.b16 %v1648_v30  ;;  %v1786_v28 = vunpack.c.h.b16 %v1648_v30 }
 0x26e   : > { %v1817_v37 = vunpack.c.l.b16 %v1664_v5  ;;  %v1818_v45 = vunpack.c.h.b16 %v1664_v5 }
 0x271   : > { %1928 = vperm.xlu0 %3851, %v1799_v35   ;;  %1886 = vperm.xlu1 %3852, %v1785_v2  }
 0x275   : > { %1982 = vperm.xlu0 %3851, %v1817_v37   ;;  %1931 = vperm.xlu1 %3852, %v1800_v12  }
 0x279   : > { %1889 = vperm.xlu0 %3851, %v1786_v28  }
 0x27d   : > { %1985 = vperm.xlu0 %3851, %v1818_v45  }
 0x295   : > { %v5232_v18 = vpop.xlane.xlu0 %1306 }
 0x297   : > { %v5234_v61 = vpop.xlane.xlu1 %1308 }
 0x299   : > { %v1362_v54 = vpop.permute.xlu0 %1361 }
 0x29a   : > { %v1512_v32 = vadd.f32 %v1362_v54, %v5048_v27  ;;  %v1544_v24 = vadd.f32 %v1362_v54, %v5130_v8 }
 0x29b   : > { %v1366_v33 = vpop.permute.xlu1 %1365 }
 0x29c   : > { %v1513_v29 = vadd.f32 %v1366_v33, %v5053_v16  ;;  %v1545_v44 = vadd.f32 %v1366_v33, %v5134_v42  ;;  %v1576_v11 = vmax.f32 %v1512_v32, 0.0  ;;  %v1608_v56 = vmax.f32 %v1544_v24, 0.0 }
 0x29d   : > { %v1433_v25 = vpop.permute.xlu0 %1432 }
 0x29e   : > { %v1577_v50 = vmax.f32 %v1513_v29, 0.0  ;;  %v1609_v47 = vmax.f32 %v1545_v44, 0.0  ;;  %v1530_v58 = vadd.f32 %v1433_v25, %v5095_v55  ;;  %v1562_v49 = vadd.f32 %v1433_v25, %v5177_v38 }
 0x29f   : > { %v1437_v51 = vpop.permute.xlu1 %1436 }
 0x2a0   : > { %v1640_v59 = vpack.c.bf16 %v1577_v50, %v1576_v11  ;;  %v1531_v27 = vadd.f32 %v1437_v51, %v5104_v23  ;;  %v1563_v30 = vadd.f32 %v1437_v51, %v5175_v13  ;;  %v1656_v3 = vpack.c.bf16 %v1609_v47, %v1608_v56 }
 0x2a1   : > { %v1370_v8 = vpop.permute.xlu0 %1369  ;;  %v1594_v35 = vmax.f32 %v1530_v58, 0.0  ;;  %v1626_v12 = vmax.f32 %v1562_v49, 0.0 }
 0x2a2   : > { %v1769_v16 = vunpack.c.l.b16 %v1640_v59  ;;  %v1595_v42 = vmax.f32 %v1531_v27, 0.0  ;;  %v1627_v5 = vmax.f32 %v1563_v30, 0.0  ;;  %v1801_v28 = vunpack.c.l.b16 %v1656_v3 }
 0x2a3   : > { %v1374_v2 = vpop.permute.xlu1 %1373  ;;  %v1514_v23 = vadd.f32 %v1370_v8, %v5051_v4  ;;  %v1770_v33 = vunpack.c.h.b16 %v1640_v59  ;;  %v1546_v50 = vadd.f32 %v1370_v8, %v5136_v14  ;;  %v1802_v4 = vunpack.c.h.b16 %v1656_v3 }
 0x2a4   : > { %1838 = vperm.xlu1 %3852, %v1769_v16   ;;  %v1649_v37 = vpack.c.bf16 %v1595_v42, %v1594_v35  ;;  %v1515_v45 = vadd.f32 %v1374_v2, %v5057_v34  ;;  %v1665_v54 = vpack.c.bf16 %v1627_v5, %v1626_v12  ;;  %v1547_v24 = vadd.f32 %v1374_v2, %v5138_v17 }
 0x2a5   : > { %v1441_v55 = vpop.permute.xlu0 %1440  ;;  %v1578_v47 = vmax.f32 %v1514_v23, 0.0  ;;  %v1610_v30 = vmax.f32 %v1546_v50, 0.0 }
 0x2a6   : > { %v1787_v38 = vunpack.c.l.b16 %v1649_v37  ;;  %v1579_v29 = vmax.f32 %v1515_v45, 0.0  ;;  %v1819_v44 = vunpack.c.l.b16 %v1665_v54  ;;  %v1532_v34 = vadd.f32 %v1441_v55, %v5099_v52 }
 0x2a7   : > { %v1445_v32 = vpop.permute.xlu1 %1444  ;;  %v1611_v51 = vmax.f32 %v1547_v24, 0.0  ;;  %v1788_v49 = vunpack.c.h.b16 %v1649_v37  ;;  %v1820_v35 = vunpack.c.h.b16 %v1665_v54 }
 0x2a8   : > { %1934 = vperm.xlu1 %3852, %v1801_v28   ;;  %1892 = vperm.xlu0 %3851, %v1787_v38   ;;  %v1533_v25 = vadd.f32 %v1445_v32, %v5109_v26  ;;  %v1641_v56 = vpack.c.bf16 %v1579_v29, %v1578_v47  ;;  %v1565_v59 = vadd.f32 %v1445_v32, %v5181_v40  ;;  %v1596_v16 = vmax.f32 %v1532_v34, 0.0 }
 0x2a9   : > { %v1378_v13 = vpop.permute.xlu0 %1377  ;;  %v1564_v26 = vadd.f32 %v1441_v55, %v5185_v43  ;;  %v1657_v8 = vpack.c.bf16 %v1611_v51, %v1610_v30 }
 0x2aa   : > { %v1597_v17 = vmax.f32 %v1533_v25, 0.0  ;;  %v1771_v52 = vunpack.c.l.b16 %v1641_v56  ;;  %v1629_v42 = vmax.f32 %v1565_v59, 0.0  ;;  %v1516_v45 = vadd.f32 %v1378_v13, %v5055_v19 }
 0x2ab   : > { %v1382_v11 = vpop.permute.xlu1 %1381  ;;  %v1628_v2 = vmax.f32 %v1564_v26, 0.0  ;;  %v1803_v12 = vunpack.c.l.b16 %v1657_v8  ;;  %v1772_v38 = vunpack.c.h.b16 %v1641_v56  ;;  %v1804_v50 = vunpack.c.h.b16 %v1657_v8 }
 0x2ac   : > { %1841 = vperm.xlu1 %3852, %v1770_v33   ;;  %1988 = vperm.xlu0 %3851, %v1819_v44   ;;  %v1650_v3 = vpack.c.bf16 %v1597_v17, %v1596_v16  ;;  %v1517_v37 = vadd.f32 %v1382_v11, %v5061_v9  ;;  %v1549_v32 = vadd.f32 %v1382_v11, %v5144_v48  ;;  %v1580_v44 = vmax.f32 %v1516_v45, 0.0 }
 0x2ad   : > { %v1449_v58 = vpop.permute.xlu0 %1448  ;;  %v1666_v28 = vpack.c.bf16 %v1629_v42, %v1628_v2  ;;  %v1548_v9 = vadd.f32 %v1378_v13, %v5142_v41  ;;  %v6264_v16 = vlaneseq }
 0x2ae   : > { %v1789_v43 = vunpack.c.l.b16 %v1650_v3  ;;  %v1581_v23 = vmax.f32 %v1517_v37, 0.0  ;;  %v1534_v25 = vadd.f32 %v1449_v58, %v5106_v39  ;;  %v1613_v47 = vmax.f32 %v1549_v32, 0.0 }
 0x2af   : > { %v1453_v27 = vpop.permute.xlu1 %1452  ;;  %v1821_v33 = vunpack.c.l.b16 %v1666_v28  ;;  %v1566_v41 = vadd.f32 %v1449_v58, %v5191_v31  ;;  %v1822_v59 = vunpack.c.h.b16 %v1666_v28  ;;  %v5281_v8 = vand.u32 127, %v6264_v16 }
 0x2b0   : > { %1937 = vperm.xlu1 %3852, %v1802_v4   ;;  %1895 = vperm.xlu0 %3851, %v1788_v49   ;;  %v1535_v24 = vadd.f32 %v1453_v27, %v5114_v63  ;;  %v1642_v34 = vpack.c.bf16 %v1581_v23, %v1580_v44  ;;  %v1790_v4 = vunpack.c.h.b16 %v1650_v3  ;;  %v1567_v48 = vadd.f32 %v1453_v27, %v5189_v6 }
 0x2b1   : > { %v5252_v14 = vpop.permute.xlu0 %1385  ;;  %v1612_v63 = vmax.f32 %v1548_v9, 0.0  ;;  %v1598_v13 = vmax.f32 %v1534_v25, 0.0  ;;  %v1630_v6 = vmax.f32 %v1566_v41, 0.0  ;;  %v3855_v9 = vld [vmem:[%s4238_s19 + $0xec] ss:$16 sps:$4 sm:$0xff]  }
 0x2b2   : > { %v1599_v11 = vmax.f32 %v1535_v24, 0.0  ;;  %v1773_v49 = vunpack.c.l.b16 %v1642_v34  ;;  %v1631_v17 = vmax.f32 %v1567_v48, 0.0  ;;  %v1518_v3 = vadd.f32 %v5252_v14, %v5059_v1  ;;  %2739 = vmatprep.subr.bf16.mxu1 %v3855_v9  ;;  %v3858_v48 = vld [vmem:[%s4238_s19 + $0xe8] ss:$16 sps:$4 sm:$0xff]  }
 0x2b3   : > { %v1390_v5 = vpop.permute.xlu1 %1389  ;;  %v1658_v39 = vpack.c.bf16 %v1613_v47, %v1612_v63  ;;  %v1774_v37 = vunpack.c.h.b16 %v1642_v34  ;;  %v1550_v32 = vadd.f32 %v5252_v14, %v5158_v22  ;;  %2740 = vmatpush1.bf16.msra.mxu1 %v3858_v48 }
 0x2b4   : > { %1844 = vperm.xlu1 %3852, %v1771_v52   ;;  %1991 = vperm.xlu0 %3851, %v1820_v35   ;;  %v1651_v30 = vpack.c.bf16 %v1599_v11, %v1598_v13  ;;  %v1519_v58 = vadd.f32 %v1390_v5, %v5067_v21  ;;  %v5284_v52 = vpack.c.bf16 %v1631_v17, %v1630_v6  ;;  %v1582_v23 = vmax.f32 %v1518_v3, 0.0  ;;  %v3859_v13 = vld [vmem:[%s4238_s19 + $0xc4] ss:$16 sps:$4 sm:$0xff]   ;;  %v3864_v6 = vld [vmem:[%s4238_s19 + $0xc8] ss:$16 sps:$4 sm:$0xff]  }
 0x2b5   : > { %v5254_v40 = vpop.permute.xlu0 %1456  ;;  %v1805_v31 = vunpack.c.l.b16 %v1658_v39  ;;  %v1551_v28 = vadd.f32 %v1390_v5, %v5152_v57  ;;  %v1806_v57 = vunpack.c.h.b16 %v1658_v39  ;;  %v1614_v11 = vmax.f32 %v1550_v32, 0.0  ;;  %v3861_v39 = vld [vmem:[%s4238_s19 + $0xcc] ss:$16 sps:$4 sm:$0xff]   ;;  %v3870_v32 = vld [vmem:[%s4238_s19 + $0xa8] ss:$16 sps:$4 sm:$0xff]  }
 0x2b6   : > { %v1791_v35 = vunpack.c.l.b16 %v1651_v30  ;;  %v1583_v21 = vmax.f32 %v1519_v58, 0.0  ;;  %v1536_v5 = vadd.f32 %v5254_v40, %v5111_v0  ;;  %v1792_v47 = vunpack.c.h.b16 %v1651_v30  ;;  %v3863_v30 = vld [vmem:[%s4238_s19 + $0xc0] ss:$16 sps:$4 sm:$0xff]   ;;  %2741 = vmatprep.subr.bf16.mxu1 %v3861_v39 }
 0x2b7   : > { %v5257_v55 = vpop.permute.xlu1 %1460  ;;  %v1615_v44 = vmax.f32 %v1551_v28, 0.0  ;;  %2742 = vmatpush1.bf16.msra.mxu1 %v3864_v6  ;;  %v3887_v6 = vld [vmem:[%s4238_s19 + $0x40] ss:$16 sps:$4 sm:$0xff]  }
 0x2b8   : > { %1940 = vperm.xlu1 %3852, %v1803_v12   ;;  %1898 = vperm.xlu0 %3851, %v1789_v43   ;;  %v2029_v12 = vadd.s32 4294967288, %v5281_v8  ;;  %v1823_v43 = vunpack.c.l.b16 %v5284_v52  ;;  %v1537_v45 = vadd.f32 %v5257_v55, %v5119_v36  ;;  %v6265_v36 = vld [vmem:[#allocation46_spill] sm:$0xff]  ;;  %v5312_v25 = vpack.c.bf16 %v1583_v21, %v1582_v23 }
 0x2b9   : > { %v5260_v54 = vpop.permute.xlu0 %1393 }
 0x2ba   : > { %v5308_v24 = vsub.s32 %v2029_v12, %v6265_v36  ;;  %v1601_v34 = vmax.f32 %v1537_v45, 0.0  ;;  %v1775_v17 = vunpack.c.l.b16 %v5312_v25  ;;  %v3865_v12 = vld [vmem:[%s4238_s19 + $0xa4] ss:$16 sps:$4 sm:$0xff]   ;;  %v1776_v9 = vunpack.c.h.b16 %v5312_v25 }
 0x2bb   : > { %v5264_v29 = vpop.permute.xlu1 %1397 }
 0x2bc   : > { %1847 = vperm.xlu1 %3852, %v1772_v38   ;;  %1994 = vperm.xlu0 %3851, %v1821_v33   ;;  %v1521_v21 = vadd.f32 %v5264_v29, %v5073_v7  ;;  %v3871_v7 = vld [vmem:[%s4238_s19 + $0x84] ss:$16 sps:$4 sm:$0xff]  }
 0x2bd   : > { %v5268_v19 = vpop.permute.xlu0 %1464 }
 0x2bf   : > { %v5271_v51 = vpop.permute.xlu1 %1468 }
 0x2c0   : > { %1943 = vperm.xlu1 %3852, %v1804_v50   ;;  %1901 = vperm.xlu0 %3851, %v1790_v4   ;;  %v3857_v50 = vld [vmem:[%s4238_s19 + $0xe0] ss:$16 sps:$4 sm:$0xff]   ;;  %v5319_v4 = vsub.s32 %v5281_v8, %v6265_v36 }
 0x2c1   : > { %v5274_v56 = vpop.permute.xlu0 %1401 }
 0x2c3   : > { %v5276_v26 = vpop.permute.xlu1 %1405 }
 0x2c4   : > { %1850 = vperm.xlu1 %3852, %v1773_v49   ;;  %1997 = vperm.xlu0 %3851, %v1822_v59   ;;  %v1824_v49 = vunpack.c.h.b16 %v5284_v52  ;;  %v5329_v59 = vpack.c.bf16 %v1615_v44, %v1614_v11  ;;  %v1553_v44 = vadd.f32 %v5264_v29, %v5160_v53  ;;  %v1538_v53 = vadd.f32 %v5268_v19, %v5116_v60  ;;  %v3877_v29 = vld [vmem:[%s4238_s19 + $0x64] ss:$16 sps:$4 sm:$0xff]   ;;  %v3881_v11 = vld [vmem:[%s4238_s19 + $0x60] ss:$16 sps:$4 sm:$0xff]  }
 0x2c5   : > { %v5278_v27 = vpop.permute.xlu0 %1472 }
 0x2c6   : > { %v1807_v28 = vunpack.c.l.b16 %v5329_v59  ;;  %v1617_v48 = vmax.f32 %v1553_v44, 0.0  ;;  %v3895_v44 = vld [vmem:[%s4238_s19 + $0x4] ss:$16 sps:$4 sm:$0xff]  }
 0x2c7   : > { %v5286_v42 = vpop.permute.xlu1 %1476 }
 0x2c8   : > { %1946 = vperm.xlu1 %3852, %v1805_v31   ;;  %1904 = vperm.xlu0 %3851, %v1791_v35  }
 0x2c9   : > { %v5290_v2 = vpop.permute.xlu0 %1409 }
 0x2ca   : > { %v1556_v1 = vadd.f32 %v5290_v2, %v5232_v18  ;;  %v3853_v18 = vld [vmem:[%s4238_s19 + $0xe4] ss:$16 sps:$4 sm:$0xff]  }
 0x2cb   : > { %v5299_v38 = vpop.permute.xlu1 %1413  ;;  %2698 = vmatprep.subr.bf16.mxu0 %v3853_v18  ;;  %v3873_v18 = vld [vmem:[%s4238_s19 + $0x8c] ss:$16 sps:$4 sm:$0xff]  }
 0x2cc   : > { %v1557_v33 = vadd.f32 %v5299_v38, %v5234_v61  ;;  %1853 = vperm.xlu1 %3852, %v1774_v37   ;;  %2000 = vperm.xlu0 %3851, %v1823_v43   ;;  %v1620_v22 = vmax.f32 %v1556_v1, 0.0  ;;  %v1569_v61 = vadd.f32 %v5257_v55, %v5195_v46  ;;  %v1568_v46 = vadd.f32 %v5254_v40, %v5199_v20  ;;  %v3867_v37 = vld [vmem:[%s4238_s19 + $0xac] ss:$16 sps:$4 sm:$0xff]   ;;  %v3869_v1 = vld [vmem:[%s4238_s19 + $0xa0] ss:$16 sps:$4 sm:$0xff]  }
 0x2cd   : > { %2699 = vmatpush1.bf16.msra.mxu0 %v3857_v50  ;;  %v1600_v55 = vmax.f32 %v1536_v5, 0.0  ;;  %2743 = vmatprep.subr.bf16.mxu1 %v3867_v37  ;;  %v3876_v50 = vld [vmem:[%s4238_s19 + $0x88] ss:$16 sps:$4 sm:$0xff]  }
 0x2ce   : > { %v1621_v14 = vmax.f32 %v1557_v33, 0.0  ;;  %v1633_v16 = vmax.f32 %v1569_v61, 0.0  ;;  %2700 = vmatprep.subr.bf16.mxu0 %v3859_v13  ;;  %v1632_v52 = vmax.f32 %v1568_v46, 0.0  ;;  %2744 = vmatpush1.bf16.msra.mxu1 %v3870_v32  ;;  %v1552_v61 = vadd.f32 %v5260_v54, %v5162_v15  ;;  %v3882_v46 = vld [vmem:[%s4238_s19 + $0x68] ss:$16 sps:$4 sm:$0xff]  }
 0x2cf   : > { %v1884_v0 = vpop.permute.xlu1 %1883  ;;  %v5334_v31 = vpack.c.bf16 %v1601_v34, %v1600_v55  ;;  %2745 = vmatprep.subr.bf16.mxu1 %v3873_v18  ;;  %v3879_v34 = vld [vmem:[%s4238_s19 + $0x6c] ss:$16 sps:$4 sm:$0xff]   ;;  %v6267_v13 = vld [vmem:[#allocation10_spill] sm:$0xff]  ;;  %v6268_v37 = vld [vmem:[#allocation8_spill] sm:$0xff] }
 0x2d0   : > { %v5322_v63 = vpack.c.bf16 %v1621_v14, %v1620_v22  ;;  %1949 = vperm.xlu1 %3852, %v1806_v57   ;;  %1907 = vperm.xlu0 %3851, %v1792_v47   ;;  %v2141_v20 = vrot.slane %v1884_v0, %v5308_v24  ;;  %v1668_v23 = vpack.c.bf16 %v1633_v16, %v1632_v52  ;;  %v1585_v22 = vmax.f32 %v1521_v21, 0.0  ;;  %v3875_v14 = vld [vmem:[%s4238_s19 + $0x80] ss:$16 sps:$4 sm:$0xff]   ;;  %v3888_v16 = vld [vmem:[%s4238_s19 + $0x48] ss:$16 sps:$4 sm:$0xff]  }
 0x2d1   : > { %v1881_v41 = vpop.permute.xlu0 %1880  ;;  %2701 = vmatpush1.bf16.msra.mxu0 %v3863_v30  ;;  %v1793_v33 = vunpack.c.l.b16 %v5334_v31  ;;  %v1520_v57 = vadd.f32 %v5260_v54, %v5063_v10  ;;  %v1539_v47 = vadd.f32 %v5271_v51, %v5124_v62  ;;  %v1808_v0 = vunpack.c.h.b16 %v5329_v59  ;;  %v6266_v54 = vld [vmem:[#allocation9_spill] sm:$0xff]  ;;  %v3883_v59 = vld [vmem:[%s4238_s19 + $0x44] ss:$16 sps:$4 sm:$0xff]   ;;  %v6269_v32 = vld [vmem:[#allocation55_spill] sm:$0xff] }
 0x2d2   : > { %v2137_v40 = vrot.slane %v1881_v41, %v5319_v4  ;;  %2702 = vmatprep.subr.bf16.mxu0 %v3865_v12  ;;  %v1825_v10 = vunpack.c.l.b16 %v1668_v23  ;;  %2746 = vmatpush1.bf16.msra.mxu1 %v3876_v50  ;;  %v1794_v15 = vunpack.c.h.b16 %v5334_v31  ;;  %v1571_v55 = vadd.f32 %v5271_v51, %v6266_v54  ;;  %v3889_v52 = vld [vmem:[%s4238_s19 + $0x24] ss:$16 sps:$4 sm:$0xff]   ;;  %v3893_v21 = vld [vmem:[%s4238_s19 + $0x20] ss:$16 sps:$4 sm:$0xff]  }
 0x2d3   : > { %v1977_v58 = vpop.permute.xlu1 %1976  ;;  %v1584_v25 = vmax.f32 %v1520_v57, 0.0  ;;  %v1603_v60 = vmax.f32 %v1539_v47, 0.0  ;;  %2747 = vmatprep.subr.bf16.mxu1 %v3879_v34  ;;  %v1616_v41 = vmax.f32 %v1552_v61, 0.0  ;;  %v1570_v39 = vadd.f32 %v5268_v19, %v6267_v13  ;;  %v6270_v50 = vld [vmem:[#allocation57_spill] sm:$0xff]  ;;  %v6273_v54 = vld [vmem:[#allocation7_spill] sm:$0xff] }
 0x2d4   : > { %1856 = vperm.xlu1 %3852, %v1775_v17   ;;  %v5339_v35 = vsel %vm2034_vm0, %v2141_v20, %v2137_v40  ;;  %2003 = vperm.xlu0 %3851, %v1824_v49   ;;  %v2295_v43 = vrot.slane %v1977_v58, %v5319_v4  ;;  %v1602_v49 = vmax.f32 %v1538_v53, 0.0  ;;  %v3885_v17 = vld [vmem:[%s4238_s19 + $0x4c] ss:$16 sps:$4 sm:$0xff]   ;;  %v1826_v31 = vunpack.c.h.b16 %v1668_v23  ;;  %v3899_v61 = vld [vmem:[%s4238_s19] ss:$16 sps:$4 sm:$0xff]  }
 0x2d5   : > { %v1980_v3 = vpop.permute.xlu0 %1979  ;;  %2703 = vmatpush1.bf16.msra.mxu0 %v3869_v1  ;;  %v5372_v62 = vpack.c.bf16 %v1585_v22, %v1584_v25  ;;  %v5383_v30 = vpack.c.bf16 %v1617_v48, %v1616_v41  ;;  %v1635_v20 = vmax.f32 %v1571_v55, 0.0  ;;  %v1634_v19 = vmax.f32 %v1570_v39, 0.0  ;;  %v3897_v22 = vld [vmem:[%s4238_s19 + $0xc] ss:$16 sps:$4 sm:$0xff]   ;;  %v3900_v25 = vld [vmem:[%s4238_s19 + $0x8] ss:$16 sps:$4 sm:$0xff]  }
 0x2d6   : > { %v2299_v45 = vrot.slane %v1980_v3, %v5308_v24  ;;  %2704 = vmatprep.subr.bf16.mxu0 %v3871_v7  ;;  %2748 = vmatpush1.bf16.msra.mxu1 %v3882_v46  ;;  %v5388_v40 = vpack.c.bf16 %v1603_v60, %v1602_v49  ;;  %v2036_v58 = vadd.s32 4294967280, %v5281_v8  ;;  %v3891_v3 = vld [vmem:[%s4238_s19 + $0x2c] ss:$16 sps:$4 sm:$0xff]   ;;  %v1522_v23 = vadd.f32 %v5274_v56, %v6269_v32  ;;  %v3901_v41 = vld [vmem:[%s4238_s19 + $0x1e4] ss:$16 sps:$4 sm:$0xff]  }
 0x2d7   : > { %v1777_v51 = vunpack.c.l.b16 %v5372_v62  ;;  %2749 = vmatprep.subr.bf16.mxu1 %v3885_v17  ;;  %v1809_v12 = vunpack.c.l.b16 %v5383_v30  ;;  %v6272_v48 = vld [vmem:[#allocation37_spill] sm:$0xff]  ;;  %v1540_v55 = vadd.f32 %v5278_v27, %v6273_v54 }
 0x2d8   : > { %v5354_v5 = vsel %vm2034_vm0, %v2299_v45, %v2295_v43  ;;  %1952 = vperm.xlu1 %3852, %v1807_v28   ;;  %1910 = vperm.xlu0 %3851, %v1793_v33   ;;  %v1523_v28 = vadd.f32 %v5276_v26, %v6268_v37  ;;  %v3894_v43 = vld [vmem:[%s4238_s19 + $0x28] ss:$16 sps:$4 sm:$0xff]   ;;  %v5398_v45 = vpack.c.bf16 %v1635_v20, %v1634_v19  ;;  %v1795_v1 = vunpack.c.l.b16 %v5388_v40  ;;  %v3903_v13 = vld [vmem:[%s4238_s19 + $0x1ec] ss:$16 sps:$4 sm:$0xff]   ;;  %v3911_v32 = vld [vmem:[%s4238_s19 + $0x1c0] ss:$16 sps:$4 sm:$0xff]  }
 0x2d9   : > { %2705 = vmatpush1.bf16.msra.mxu0 %v3875_v14  ;;  %v1778_v14 = vunpack.c.h.b16 %v5372_v62  ;;  %v1554_v62 = vadd.f32 %v5274_v56, %v6272_v48  ;;  %v1810_v56 = vunpack.c.h.b16 %v5383_v30  ;;  %v3906_v17 = vld [vmem:[%s4238_s19 + $0x1e8] ss:$16 sps:$4 sm:$0xff]  }
 0x2da   : > { %2706 = vmatprep.subr.bf16.mxu0 %v3877_v29  ;;  %2750 = vmatpush1.bf16.msra.mxu1 %v3888_v16  ;;  %v1587_v47 = vmax.f32 %v1523_v28, 0.0  ;;  %v1827_v53 = vunpack.c.l.b16 %v5398_v45  ;;  %v6271_v29 = vld [vmem:[#allocation35_spill] sm:$0xff]  ;;  %v6275_v30 = vld [vmem:[#allocation36_spill] sm:$0xff] }
 0x2db   : > { %2751 = vmatprep.subr.bf16.mxu1 %v3891_v3  ;;  %v1541_v34 = vadd.f32 %v5286_v42, %v6271_v29  ;;  %v1618_v19 = vmax.f32 %v1554_v62, 0.0  ;;  %v3907_v28 = vld [vmem:[%s4238_s19 + $0x1c4] ss:$16 sps:$4 sm:$0xff]   ;;  %v6277_v29 = vld [vmem:[#allocation33_spill] sm:$0xff] }
 0x2dc   : > { %1859 = vperm.xlu1 %3852, %v1776_v9   ;;  %2006 = vperm.xlu0 %3851, %v1825_v10   ;;  %v5406_v9 = vsub.s32 %v2036_v58, %v6265_v36  ;;  %v1555_v10 = vadd.f32 %v5276_v26, %v6270_v50  ;;  %v1572_v58 = vadd.f32 %v5278_v27, %v6275_v30  ;;  %v3909_v27 = vld [vmem:[%s4238_s19 + $0x1cc] ss:$16 sps:$4 sm:$0xff]   ;;  %v6276_v50 = vld [vmem:[#allocation56_spill] sm:$0xff] }
 0x2dd   : > { %2707 = vmatpush1.bf16.msra.mxu0 %v3881_v11  ;;  %v1586_v11 = vmax.f32 %v1522_v23, 0.0  ;;  %v3912_v23 = vld [vmem:[%s4238_s19 + $0x1c8] ss:$16 sps:$4 sm:$0xff]   ;;  %v3919_v62 = vld [vmem:[%s4238_s19 + $0x184] ss:$16 sps:$4 sm:$0xff]  }
 0x2de   : > { %2708 = vmatprep.subr.bf16.mxu0 %v3883_v59  ;;  %2752 = vmatpush1.bf16.msra.mxu1 %v3894_v43  ;;  %v1619_v39 = vmax.f32 %v1555_v10, 0.0  ;;  %v3905_v59 = vld [vmem:[%s4238_s19 + $0x1e0] ss:$16 sps:$4 sm:$0xff]   ;;  %v1525_v10 = vadd.f32 %v5299_v38, %v6276_v50  ;;  %v3924_v54 = vld [vmem:[%s4238_s19 + $0x188] ss:$16 sps:$4 sm:$0xff]  }
 0x2df   : > { %2753 = vmatprep.subr.bf16.mxu1 %v3897_v22  ;;  %v5430_v49 = vpack.c.bf16 %v1587_v47, %v1586_v11  ;;  %v3915_v22 = vld [vmem:[%s4238_s19 + $0x1ac] ss:$16 sps:$4 sm:$0xff]   ;;  %v3918_v47 = vld [vmem:[%s4238_s19 + $0x1a8] ss:$16 sps:$4 sm:$0xff]   ;;  %v3937_v30 = vld [vmem:[%s4238_s19 + $0x124] ss:$16 sps:$4 sm:$0xff]  }
 0x2e0   : > { %1955 = vperm.xlu1 %3852, %v1808_v0   ;;  %1913 = vperm.xlu0 %3851, %v1794_v15   ;;  %v2043_v15 = vadd.s32 4294967272, %v5281_v8  ;;  %v1661_v43 = vpack.c.bf16 %v1619_v39, %v1618_v19  ;;  %v3921_v11 = vld [vmem:[%s4238_s19 + $0x18c] ss:$16 sps:$4 sm:$0xff]  }
 0x2e1   : > { %2709 = vmatpush1.bf16.msra.mxu0 %v3887_v6  ;;  %v6274_v6 = vld [vmem:[#allocation11_spill] sm:$0xff] }
 0x2e2   : > { %2710 = vmatprep.subr.bf16.mxu0 %v3889_v52  ;;  %2754 = vmatpush1.bf16.msra.mxu1 %v3900_v25  ;;  %v1573_v16 = vadd.f32 %v5286_v42, %v6274_v6  ;;  %v5442_v3 = vsub.s32 %v2043_v15, %v6265_v36  ;;  %v1604_v42 = vmax.f32 %v1540_v55, 0.0  ;;  %v3923_v15 = vld [vmem:[%s4238_s19 + $0x180] ss:$16 sps:$4 sm:$0xff]   ;;  %v3933_v6 = vld [vmem:[%s4238_s19 + $0x14c] ss:$16 sps:$4 sm:$0xff]  }
 0x2e3   : > { %2755 = vmatprep.subr.bf16.mxu1 %v3903_v13  ;;  %v3927_v13 = vld [vmem:[%s4238_s19 + $0x16c] ss:$16 sps:$4 sm:$0xff]  }
 0x2e4   : > { %1862 = vperm.xlu1 %3852, %v1777_v51   ;;  %2009 = vperm.xlu0 %3851, %v1826_v31   ;;  %v1796_v51 = vunpack.c.h.b16 %v5388_v40  ;;  %v1605_v31 = vmax.f32 %v1541_v34, 0.0  ;;  %v1524_v34 = vadd.f32 %v5290_v2, %v6277_v29 }
 0x2e5   : > { %2711 = vmatpush1.bf16.msra.mxu0 %v3893_v21  ;;  %v1828_v21 = vunpack.c.h.b16 %v5398_v45 }
 0x2e6   : > { %2712 = vmatprep.subr.bf16.mxu0 %v3895_v44  ;;  %2756 = vmatpush2.bf16.msra.mxu1 %v3906_v17  ;;  %v3913_v44 = vld [vmem:[%s4238_s19 + $0x1a4] ss:$16 sps:$4 sm:$0xff]  }
 0x2e7   : > { %2757 = vmatprep.subr.bf16.mxu1 %v3909_v27  ;;  %v3947_v27 = vld [vmem:[%s4238_s19 + $0x100] ss:$16 sps:$4 sm:$0xff]  }
 0x2e8   : > { %v1833_v33 = vpop.permute.xlu1 %1832  ;;  %1958 = vperm.xlu1 %3852, %v1809_v12   ;;  %v1836_v57 = vpop.permute.xlu0 %1835  ;;  %1916 = vperm.xlu0 %3851, %v1795_v1   ;;  %v1779_v1 = vunpack.c.l.b16 %v5430_v49 }
 0x2e9   : > { %v2028_v7 = vrot.slane %v1833_v33, %v5319_v4  ;;  %v2033_v18 = vrot.slane %v1836_v57, %v5308_v24  ;;  %2713 = vmatpush1.bf16.msra.mxu0 %v3899_v61  ;;  %v1637_v33 = vmax.f32 %v1573_v16, 0.0  ;;  %v1654_v57 = vpack.c.bf16 %v1605_v31, %v1604_v42  ;;  %v3935_v31 = vld [vmem:[%s4238_s19 + $0x140] ss:$16 sps:$4 sm:$0xff]   ;;  %v3942_v42 = vld [vmem:[%s4238_s19 + $0x128] ss:$16 sps:$4 sm:$0xff]  }
 0x2ea   : > { %2714 = vmatprep.subr.bf16.mxu0 %v3901_v41  ;;  %2758 = vmatpush2.bf16.msra.mxu1 %v3912_v23  ;;  %v3925_v41 = vld [vmem:[%s4238_s19 + $0x164] ss:$16 sps:$4 sm:$0xff]  }
 0x2eb   : > { %v5419_v0 = vsel %vm2034_vm0, %v2033_v18, %v2028_v7  ;;  %v1636_v7 = vmax.f32 %v1572_v58, 0.0  ;;  %v1797_v25 = vunpack.c.l.b16 %v1654_v57  ;;  %2759 = vmatprep.subr.bf16.mxu1 %v3915_v22  ;;  %v1798_v17 = vunpack.c.h.b16 %v1654_v57  ;;  %v3939_v58 = vld [vmem:[%s4238_s19 + $0x12c] ss:$16 sps:$4 sm:$0xff]  }
 0x2ec   : > { %v1887_v26 = vpop.permute.xlu1 %1886  ;;  %1865 = vperm.xlu1 %3852, %v1778_v14   ;;  %v1929_v46 = vpop.permute.xlu0 %1928  ;;  %2012 = vperm.xlu0 %3851, %v1827_v53   ;;  %v1811_v14 = vunpack.c.l.b16 %v1661_v43 }
 0x2ed   : > { %v2146_v60 = vrot.slane %v1887_v26, %v5406_v9  ;;  %2715 = vmatpush2.bf16.msra.mxu0 %v3905_v59  ;;  %v1670_v61 = vpack.c.bf16 %v1637_v33, %v1636_v7  ;;  %v1780_v26 = vunpack.c.h.b16 %v5430_v49  ;;  %v3929_v49 = vld [vmem:[%s4238_s19 + $0x160] ss:$16 sps:$4 sm:$0xff]   ;;  %v3930_v59 = vld [vmem:[%s4238_s19 + $0x168] ss:$16 sps:$4 sm:$0xff]   ;;  %v2057_v7 = vadd.s32 4294967256, %v5281_v8 }
 0x2ee   : > { %2716 = vmatprep.subr.bf16.mxu0 %v3907_v28  ;;  %2760 = vmatpush2.bf16.msra.mxu1 %v3918_v47 }
 0x2ef   : > { %v2147_v20 = vsel %vm2041_vm1, %v2146_v60, %v5339_v35  ;;  %v2216_v35 = vrot.slane %v1929_v46, %v5319_v4  ;;  %v1589_v46 = vmax.f32 %v1525_v10, 0.0  ;;  %v1829_v55 = vunpack.c.l.b16 %v1670_v61  ;;  %2761 = vmatprep.subr.bf16.mxu1 %v3921_v11 }
 0x2f0   : > { %v1932_v52 = vpop.permute.xlu1 %1931  ;;  %1961 = vperm.xlu1 %3852, %v1810_v56   ;;  %v1983_v40 = vpop.permute.xlu0 %1982  ;;  %1919 = vperm.xlu0 %3851, %v1796_v51   ;;  %v1588_v60 = vmax.f32 %v1524_v34, 0.0  ;;  %v1812_v56 = vunpack.c.h.b16 %v1661_v43  ;;  %v3931_v51 = vld [vmem:[%s4238_s19 + $0x144] ss:$16 sps:$4 sm:$0xff]   ;;  %v1830_v19 = vunpack.c.h.b16 %v1670_v61  ;;  %v2050_v43 = vadd.s32 4294967264, %v5281_v8 }
 0x2f1   : > { %v2220_v12 = vrot.slane %v1932_v52, %v5308_v24  ;;  %v2304_v37 = vrot.slane %v1983_v40, %v5406_v9  ;;  %2717 = vmatpush2.bf16.msra.mxu0 %v3911_v32  ;;  %v1813_v52 = vunpack.c.l.b16 %v5322_v63  ;;  %v3941_v40 = vld [vmem:[%s4238_s19 + $0x120] ss:$16 sps:$4 sm:$0xff]  }
 0x2f2   : > { %2718 = vmatprep.subr.bf16.mxu0 %v3913_v44  ;;  %2762 = vmatpush2.bf16.msra.mxu1 %v3924_v54  ;;  %v1646_v39 = vpack.c.bf16 %v1589_v46, %v1588_v60  ;;  %v2053_v32 = vsub.s32 %v2050_v43, %v6265_v36 }
 0x2f3   : > { %v5454_v4 = vsel %vm2034_vm0, %v2220_v12, %v2216_v35  ;;  %v2305_v24 = vsel %vm2041_vm1, %v2304_v37, %v5354_v5  ;;  %v3917_v5 = vld [vmem:[%s4238_s19 + $0x1a0] ss:$16 sps:$4 sm:$0xff]   ;;  %2763 = vmatprep.subr.bf16.mxu1 %v3927_v13  ;;  %v1814_v35 = vunpack.c.h.b16 %v5322_v63  ;;  %v3943_v12 = vld [vmem:[%s4238_s19 + $0x104] ss:$16 sps:$4 sm:$0xff]   ;;  %v3945_v37 = vld [vmem:[%s4238_s19 + $0x10c] ss:$16 sps:$4 sm:$0xff]  }
 0x2f4   : > { %1868 = vperm.xlu1 %3852, %v1779_v1   ;;  %v1890_v45 = vpop.permute.xlu0 %1889  ;;  %2015 = vperm.xlu0 %3851, %v1828_v21   ;;  %v1781_v16 = vunpack.c.l.b16 %v1646_v39  ;;  %v1782_v28 = vunpack.c.h.b16 %v1646_v39  ;;  %v3948_v21 = vld [vmem:[%s4238_s19 + $0x108] ss:$16 sps:$4 sm:$0xff]  }
 0x2f5   : > { %v2151_v18 = vrot.slane %v1890_v45, %v5442_v3  ;;  %2719 = vmatpush2.bf16.msra.mxu0 %v3917_v5 }
 0x2f6   : > { %2720 = vmatprep.subr.bf16.mxu0 %v3919_v62  ;;  %2764 = vmatpush2.bf16.msra.mxu1 %v3930_v59 }
 0x2f7   : > { %v5466_v53 = vsel %vm2048_vm2, %v2151_v18, %v2147_v20  ;;  %v3936_v20 = vld [vmem:[%s4238_s19 + $0x148] ss:$16 sps:$4 sm:$0xff]   ;;  %2765 = vmatprep.subr.bf16.mxu1 %v3933_v6 }
 0x2f8   : > { %1964 = vperm.xlu1 %3852, %v1811_v14   ;;  %v1986_v48 = vpop.permute.xlu0 %1985  ;;  %1922 = vperm.xlu0 %3851, %v1797_v25  }
 0x2f9   : > { %v2309_v38 = vrot.slane %v1986_v48, %v5442_v3  ;;  %2721 = vmatpush2.bf16.msra.mxu0 %v3923_v15 }
 0x2fa   : > { %2722 = vmatprep.subr.bf16.mxu0 %v3925_v41  ;;  %2766 = vmatpush2.bf16.msra.mxu1 %v3936_v20 }
 0x2fb   : > { %v5477_v2 = vsel %vm2048_vm2, %v2309_v38, %v2305_v24  ;;  %2767 = vmatprep.subr.bf16.mxu1 %v3939_v58 }
 0x2fc   : > { %1871 = vperm.xlu1 %3852, %v1780_v26   ;;  %2018 = vperm.xlu0 %3851, %v1829_v55  }
 0x2fd   : > { %2723 = vmatpush2.bf16.msra.mxu0 %v3929_v49 }
 0x2fe   : > { %2724 = vmatprep.subr.bf16.mxu0 %v3931_v51  ;;  %2768 = vmatpush2.bf16.msra.mxu1 %v3942_v42 }
 0x2ff   : > { %2769 = vmatprep.subr.bf16.mxu1 %v3945_v37 }
 0x300   : > { %1967 = vperm.xlu1 %3852, %v1812_v56   ;;  %1925 = vperm.xlu0 %3851, %v1798_v17  }
 0x301   : > { %2725 = vmatpush2.bf16.msra.mxu0 %v3935_v31 }
 0x302   : > { %2726 = vmatprep.subr.bf16.mxu0 %v3937_v30  ;;  %2770 = vmatpush2.bf16.msra.mxu1 %v3948_v21 }
 0x304   : > { %1874 = vperm.xlu1 %3852, %v1781_v16   ;;  %2021 = vperm.xlu0 %3851, %v1830_v19  }
 0x305   : > { %2727 = vmatpush2.bf16.msra.mxu0 %v3941_v40 }
 0x306   : > { %2728 = vmatprep.subr.bf16.mxu0 %v3943_v12 }
 0x308   : > { %1970 = vperm.xlu1 %3852, %v1813_v52   ;;  %1973 = vperm.xlu0 %3851, %v1814_v35  }
 0x309   : > { %2729 = vmatpush2.bf16.msra.mxu0 %v3947_v27 }
 0x30c   : > { %1877 = vperm.xlu1 %3852, %v1782_v28  }
 0x31f   : > { %v1839_v1 = vpop.permute.xlu1 %1838 }
 0x320   : > { %v2040_v63 = vrot.slane %v1839_v1, %v5406_v9 }
 0x322   : > { %v2042_v23 = vsel %vm2041_vm1, %v2040_v63, %v5419_v0  ;;  %v2060_v0 = vsub.s32 %v2057_v7, %v6265_v36  ;;  %v2078_v7 = vadd.s32 4294967232, %v5281_v8 }
 0x323   : > { %v1935_v33 = vpop.permute.xlu1 %1934  ;;  %v1893_v24 = vpop.permute.xlu0 %1892 }
 0x324   : > { %v2225_v57 = vrot.slane %v1935_v33, %v5406_v9  ;;  %v2156_v45 = vrot.slane %v1893_v24, %v2053_v32  ;;  %v2071_v24 = vadd.s32 4294967240, %v5281_v8 }
 0x326   : > { %v2226_v18 = vsel %vm2041_vm1, %v2225_v57, %v5454_v4  ;;  %v2157_v44 = vsel %vm2055_vm3, %v2156_v45, %v5466_v53  ;;  %v2064_v53 = vadd.s32 4294967248, %v5281_v8 }
 0x327   : > { %v1842_v22 = vpop.permute.xlu1 %1841  ;;  %v1989_v50 = vpop.permute.xlu0 %1988 }
 0x328   : > { %v2047_v14 = vrot.slane %v1842_v22, %v5442_v3  ;;  %v2314_v10 = vrot.slane %v1989_v50, %v2053_v32  ;;  %v5518_v26 = vsub.s32 %v2064_v53, %v6265_v36  ;;  %v2092_v22 = vadd.s32 4294967216, %v5281_v8 }
 0x329   : > { %v2099_v50 = vadd.s32 4294967208, %v5281_v8 }
 0x32a   : > { %v2049_v9 = vsel %vm2048_vm2, %v2047_v14, %v2042_v23  ;;  %v2315_v5 = vsel %vm2055_vm3, %v2314_v10, %v5477_v2  ;;  %v2074_v14 = vsub.s32 %v2071_v24, %v6265_v36  ;;  %v5607_v53 = vsub.s32 %v2092_v22, %v6265_v36 }
 0x32b   : > { %v1938_v47 = vpop.permute.xlu1 %1937  ;;  %v1896_v4 = vpop.permute.xlu0 %1895 }
 0x32c   : > { %v2230_v61 = vrot.slane %v1938_v47, %v5442_v3  ;;  %v2161_v25 = vrot.slane %v1896_v4, %v2060_v0  ;;  %v2120_v4 = vadd.s32 4294967184, %v5281_v8 }
 0x32e   : > { %v2231_v29 = vsel %vm2048_vm2, %v2230_v61, %v2226_v18  ;;  %v2162_v34 = vsel %vm2062_vm4, %v2161_v25, %v2157_v44  ;;  %v2085_v44 = vadd.s32 4294967224, %v5281_v8  ;;  %v2113_v61 = vadd.s32 4294967192, %v5281_v8 }
 0x32f   : > { %v1845_v48 = vpop.permute.xlu1 %1844  ;;  %v1992_v62 = vpop.permute.xlu0 %1991 }
 0x330   : > { %v2054_v38 = vrot.slane %v1845_v48, %v2053_v32  ;;  %v2319_v11 = vrot.slane %v1992_v62, %v2060_v0  ;;  %v5600_v47 = vsub.s32 %v2085_v44, %v6265_v36 }
 0x332   : > { %v2056_v46 = vsel %vm2055_vm3, %v2054_v38, %v2049_v9  ;;  %v5522_v3 = vsel %vm2062_vm4, %v2319_v11, %v2315_v5  ;;  %v2106_v9 = vadd.s32 4294967200, %v5281_v8  ;;  %v5614_v38 = vsub.s32 %v2099_v50, %v6265_v36 }
 0x333   : > { %v1941_v15 = vpop.permute.xlu1 %1940  ;;  %v1899_v55 = vpop.permute.xlu0 %1898 }
 0x334   : > { %v2235_v54 = vrot.slane %v1941_v15, %v2053_v32  ;;  %v2166_v2 = vrot.slane %v1899_v55, %v5518_v26  ;;  %v5622_v15 = vsub.s32 %v2106_v9, %v6265_v36 }
 0x336   : > { %v2236_v60 = vsel %vm2055_vm3, %v2235_v54, %v2231_v29  ;;  %v5527_v41 = vsel %vm2069_vm5, %v2166_v2, %v2162_v34  ;;  %v2127_v29 = vadd.s32 4294967176, %v5281_v8  ;;  %v5629_v2 = vsub.s32 %v2113_v61, %v6265_v36 }
 0x337   : > { %v1848_v13 = vpop.permute.xlu1 %1847  ;;  %v5529_v39 = vpop.permute.xlu0 %1994 }
 0x338   : > { %v2061_v56 = vrot.slane %v1848_v13, %v2060_v0  ;;  %v2324_v25 = vrot.slane %v5529_v39, %v5518_v26  ;;  %v5639_v39 = vsub.s32 %v2127_v29, %v6265_v36 }
 0x33a   : > { %v5532_v49 = vsel %vm2062_vm4, %v2061_v56, %v2056_v46 }
 0x33b   : > { %v1944_v59 = vpop.permute.xlu1 %1943  ;;  %v5534_v51 = vpop.permute.xlu0 %1901 }
 0x33c   : > { %v2240_v17 = vrot.slane %v1944_v59, %v2060_v0  ;;  %v2081_v0 = vsub.s32 %v2078_v7, %v6265_v36  ;;  %v2171_v34 = vrot.slane %v5534_v51, %v2074_v14 }
 0x33e   : > { %v5537_v6 = vsel %vm2062_vm4, %v2240_v17, %v2236_v60  ;;  %v5632_v60 = vsub.s32 %v2120_v4, %v6265_v36  ;;  %v2172_v59 = vsel %vm2076_vm6, %v2171_v34, %v5527_v41 }
 0x33f   : > { %v5539_v16 = vpop.permute.xlu1 %1850  ;;  %v5541_v31 = vpop.permute.xlu0 %1997 }
 0x340   : > { %v2068_v48 = vrot.slane %v5539_v16, %v5518_v26  ;;  %v2329_v11 = vrot.slane %v5541_v31, %v2074_v14 }
 0x342   : > { %v2070_v17 = vsel %vm2069_vm5, %v2068_v48, %v5532_v49 }
 0x343   : > { %v5543_v20 = vpop.permute.xlu1 %1946  ;;  %v5545_v19 = vpop.permute.xlu0 %1904 }
 0x344   : > { %v2245_v46 = vrot.slane %v5543_v20, %v5518_v26  ;;  %v2176_v54 = vrot.slane %v5545_v19, %v2081_v0  ;;  %v2325_v26 = vsel %vm2069_vm5, %v2324_v25, %v5522_v3 }
 0x345   : > { %v2330_v31 = vsel %vm2076_vm6, %v2329_v11, %v2325_v26 }
 0x346   : > { %v2246_v20 = vsel %vm2069_vm5, %v2245_v46, %v5537_v6  ;;  %v2177_v49 = vsel %vm2083_vm7, %v2176_v54, %v2172_v59 }
 0x347   : > { %v5547_v30 = vpop.permute.xlu1 %1853  ;;  %v5549_v58 = vpop.permute.xlu0 %2000 }
 0x348   : > { %v2075_v55 = vrot.slane %v5547_v30, %v2074_v14  ;;  %v2334_v13 = vrot.slane %v5549_v58, %v2081_v0 }
 0x34a   : > { %v2077_v58 = vsel %vm2076_vm6, %v2075_v55, %v2070_v17  ;;  %v2335_v6 = vsel %vm2083_vm7, %v2334_v13, %v2330_v31 }
 0x34b   : > { %v5551_v52 = vpop.permute.xlu1 %1949  ;;  %v5553_v40 = vpop.permute.xlu0 %1907 }
 0x34c   : > { %v2250_v56 = vrot.slane %v5551_v52, %v2074_v14  ;;  %v2181_v51 = vrot.slane %v5553_v40, %v5600_v47 }
 0x34e   : > { %v2182_v24 = vsel %vm2090_vm8, %v2181_v51, %v2177_v49 }
 0x34f   : > { %v5555_v42 = vpop.permute.xlu1 %1856  ;;  %v5557_v35 = vpop.permute.xlu0 %2003 }
 0x350   : > { %v2082_v16 = vrot.slane %v5555_v42, %v2081_v0  ;;  %v2339_v19 = vrot.slane %v5557_v35, %v5600_v47  ;;  %v2251_v42 = vsel %vm2076_vm6, %v2250_v56, %v2246_v20 }
 0x352   : > { %v2084_v7 = vsel %vm2083_vm7, %v2082_v16, %v2077_v58  ;;  %v2340_v22 = vsel %vm2090_vm8, %v2339_v19, %v2335_v6 }
 0x353   : > { %v5559_v12 = vpop.permute.xlu1 %1952  ;;  %v5561_v37 = vpop.permute.xlu0 %1910 }
 0x354   : > { %v2255_v41 = vrot.slane %v5559_v12, %v2081_v0  ;;  %v2186_v52 = vrot.slane %v5561_v37, %v5607_v53 }
 0x356   : > { %v2256_v14 = vsel %vm2083_vm7, %v2255_v41, %v2251_v42  ;;  %v2187_v0 = vsel %vm2097_vm9, %v2186_v52, %v2182_v24 }
 0x357   : > { %v5563_v28 = vpop.permute.xlu1 %1859  ;;  %v5565_v27 = vpop.permute.xlu0 %2006 }
 0x358   : > { %v2089_v40 = vrot.slane %v5563_v28, %v5600_v47  ;;  %v2344_v35 = vrot.slane %v5565_v27, %v5607_v53 }
 0x35a   : > { %v2091_v9 = vsel %vm2090_vm8, %v2089_v40, %v2084_v7  ;;  %v4133_v7 = vmov 1983009808  }
 0x35b   : > { %v5567_v21 = vpop.permute.xlu1 %1955  ;;  %v5569_v43 = vpop.permute.xlu0 %1913 }
 0x35c   : > { %v2260_v12 = vrot.slane %v5567_v21, %v5600_v47  ;;  %v2191_v37 = vrot.slane %v5569_v43, %v5614_v38  ;;  %v2345_v47 = vsel %vm2097_vm9, %v2344_v35, %v2340_v22 }
 0x35e   : > { %v2261_v61 = vsel %vm2090_vm8, %v2260_v12, %v2256_v14  ;;  %v2192_v4 = vsel %vm2104_vm10, %v2191_v37, %v2187_v0  ;;  %v2787_v37 = vunpack.c.l.s4 %v4133_v7 }
 0x35f   : > { %v5571_v1 = vpop.permute.xlu1 %1862  ;;  %v5573_v63 = vpop.permute.xlu0 %2009 }
 0x360   : > { %v2349_v28 = vrot.slane %v5573_v63, %v5614_v38 }
 0x362   : > { %v2350_v25 = vsel %vm2104_vm10, %v2349_v28, %v2345_v47  ;;  %v2788_v28 = vunpack.c.0.s8 %v2787_v37  ;;  %v1638_v47 = vld [vmem:[#allocation2] sm:$0xff] }
 0x363   : > { %v5575_v32 = vpop.permute.xlu1 %1958  ;;  %v5577_v23 = vpop.permute.xlu0 %1916 }
 0x364   : > { %v2196_v27 = vrot.slane %v5577_v23, %v5622_v15  ;;  %v2265_v29 = vrot.slane %v5575_v32, %v5607_v53  ;;  %v5737_v14 = vsub.s32 %v2788_v28, %v6265_v36 }
 0x366   : > { %v2197_v48 = vsel %vm2111_vm11, %v2196_v27, %v2192_v4 }
 0x367   : > { %v5579_v33 = vpop.permute.xlu1 %1865  ;;  %v5581_v57 = vpop.permute.xlu0 %2012 }
 0x368   : > { %v2354_v21 = vrot.slane %v5581_v57, %v5622_v15 }
 0x36a   : > { %v2355_v11 = vsel %vm2111_vm11, %v2354_v21, %v2350_v25 }
 0x36b   : > { %v5584_v45 = vpop.permute.xlu1 %1961  ;;  %v5587_v18 = vpop.permute.xlu0 %1919 }
 0x36c   : > { %v2201_v43 = vrot.slane %v5587_v18, %v5629_v2  ;;  %v2270_v46 = vrot.slane %v5584_v45, %v5614_v38  ;;  %v2266_v45 = vsel %vm2097_vm9, %v2265_v29, %v2261_v61 }
 0x36e   : > { %v2202_v54 = vsel %vm2118_vm12, %v2201_v43, %v2197_v48  ;;  %v2271_v16 = vsel %vm2104_vm10, %v2270_v46, %v2266_v45 }
 0x36f   : > { %v5593_v10 = vpop.permute.xlu1 %1868  ;;  %v5597_v5 = vpop.permute.xlu0 %2015 }
 0x370   : > { %v2359_v63 = vrot.slane %v5597_v5, %v5629_v2  ;;  %v2096_v5 = vrot.slane %v5571_v1, %v5607_v53  ;;  %v2103_v1 = vrot.slane %v5579_v33, %v5614_v38  ;;  %v2110_v59 = vrot.slane %v5593_v10, %v5622_v15 }
 0x372   : > { %v2360_v55 = vsel %vm2118_vm12, %v2359_v63, %v2355_v11  ;;  %v2098_v19 = vsel %vm2097_vm9, %v2096_v5, %v2091_v9 }
 0x373   : > { %v5616_v62 = vpop.permute.xlu1 %1964  ;;  %v5624_v8 = vpop.permute.xlu0 %1922 }
 0x374   : > { %v2206_v23 = vrot.slane %v5624_v8, %v5632_v60  ;;  %v2275_v32 = vrot.slane %v5616_v62, %v5622_v15 }
 0x376   : > { %v2207_v53 = vsel %vm2125_vm13, %v2206_v23, %v2202_v54  ;;  %v2276_v41 = vsel %vm2111_vm11, %v2275_v32, %v2271_v16 }
 0x377   : > { %v5648_v3 = vpop.permute.xlu1 %1871  ;;  %v2019_v30 = vpop.permute.xlu0 %2018 }
 0x378   : > { %v2364_v57 = vrot.slane %v2019_v30, %v5632_v60  ;;  %v2117_v33 = vrot.slane %v5648_v3, %v5629_v2  ;;  %v2105_v30 = vsel %vm2104_vm10, %v2103_v1, %v2098_v19 }
 0x37a   : > { %v2365_v13 = vsel %vm2125_vm13, %v2364_v57, %v2360_v55 }
 0x37b   : > { %v1968_v44 = vpop.permute.xlu1 %1967  ;;  %v1926_v50 = vpop.permute.xlu0 %1925 }
 0x37c   : > { %v2211_v18 = vrot.slane %v1926_v50, %v5639_v39  ;;  %v2280_v56 = vrot.slane %v1968_v44, %v5629_v2  ;;  %v2112_v2 = vsel %vm2111_vm11, %v2110_v59, %v2105_v30 }
 0x37d   : > { %v2119_v40 = vsel %vm2118_vm12, %v2117_v33, %v2112_v2 }
 0x37e   : > { %v2212_v51 = vsel %vm2132_vm14, %v2211_v18, %v2207_v53  ;;  %v2281_v49 = vsel %vm2118_vm12, %v2280_v56, %v2276_v41 }
 0x37f   : > { %v1875_v34 = vpop.permute.xlu1 %1874  ;;  %v2022_v8 = vpop.permute.xlu0 %2021 }
 0x380   : > { %v2369_v26 = vrot.slane %v2022_v8, %v5639_v39  ;;  %v2124_v10 = vrot.slane %v1875_v34, %v5632_v60 }
 0x382   : > { %v2370_v62 = vsel %vm2132_vm14, %v2369_v26, %v2365_v13 }
 0x383   : > { %v1971_v17 = vpop.permute.xlu1 %1970  ;;  %v1974_v31 = vpop.permute.xlu0 %1973  ;;  %v2373_v20 = vsel %vm2371_vm15, %v2370_v62, %v2212_v51 }
 0x384   : > { %v2285_v38 = vrot.slane %v1971_v17, %v5632_v60  ;;  %v2375_v15 = vpack.c.b16 %v2373_v20, %v2373_v20  ;;  %v2290_v58 = vrot.slane %v1974_v31, %v5639_v39  ;;  %v2126_v60 = vsel %vm2125_vm13, %v2124_v10, %v2119_v40 }
 0x386   : > { %v2286_v3 = vsel %vm2125_vm13, %v2285_v38, %v2281_v49  ;;  %2730 = vmatprep.mubr.bf16.mxu0 %v2375_v15  ;;  %2771 = vmatprep.mubr.bf16.mxu1 %v2375_v15 }
 0x387   : > { %v1878_v52 = vpop.permute.xlu1 %1877  ;;  %v2291_v42 = vsel %vm2132_vm14, %v2290_v58, %v2286_v3 }
 0x388   : > { %v2131_v6 = vrot.slane %v1878_v52, %v5639_v39 }
 0x38a   : > { %v2133_v35 = vsel %vm2132_vm14, %v2131_v6, %v2126_v60 }
 0x38b   : > { %v2372_v12 = vsel %vm2371_vm15, %v2291_v42, %v2133_v35 }
 0x38c   : > { %v2374_v24 = vpack.c.b16 %v2372_v12, %v2372_v12 }
 0x38e   : > { %2731 = vmatmul.mubr.bf16.vlgmr.msra.gmra.mxu0 %v2374_v24  ;;  %2772 = vmatmul.mubr.bf16.vlgmr.msra.gmra.mxu1 %v2374_v24 }
 0x44e   : > { %v2732_v44 = vpop.f32.mrf.mxu0  ;;  %v2773_v22 = vpop.f32.mrf.mxu1 }
 0x450   : > { %v2734_v39 = vpop.f32.mrf.mxu0  ;;  %v2775_v27 = vpop.f32.mrf.mxu1 }
 0x451   : > { %v2784_v21 = vcombine.low %v2732_v44, %v2734_v39  ;;  %v2785_v50 = vcombine.low %v2773_v22, %v2775_v27 }
 0x452   : > { %v2736_v0 = vpop.f32.mrf.mxu0  ;;  %v2777_v9 = vpop.f32.mrf.mxu1 }
 0x453   : > { %v2792_v43 = vrot.slane %v2784_v21, %v5737_v14  ;;  %v2799_v63 = vrot.slane %v2785_v50, %v5737_v14 }
 0x454   : > { %v2737_v61 = vpop.f32.mrf.mxu0  ;;  %v2778_v23 = vpop.f32.mrf.mxu1 }
 0x455   : > { %v2800_v57 = vcombine.low %v2792_v43, %v2799_v63  ;;  %2807 = sbr.rel (%p3685_p11) target bundleno = 1583 (0x62f), region = 105 }
 0x457   : > { %v2802_v4 = vadd.f32 %v2800_v57, %v1638_v47 }
 0x459   : > { %2803 = vst [vmem:[#allocation2] sm:$0xff] %v2802_v4 }
 0x45a   : > { %v3949_v36 = vld [vmem:[%s6038_s5 + $0x74] ss:$8 sps:$4 sm:$0xff]   ;;  %v3953_v29 = vld [vmem:[%s6038_s5 + $0x70] ss:$8 sps:$4 sm:$0xff]   ;;  %v3955_v34 = vld [vmem:[%s6038_s5 + $0x64] ss:$8 sps:$4 sm:$0xff]  }
 0x45b   : > { %v3951_v25 = vld [vmem:[%s6038_s5 + $0x174] ss:$8 sps:$4 sm:$0xff]   ;;  %3269 = vmatprep.subr.bf16.mxu0 %v3949_v36  ;;  %v3954_v18 = vld [vmem:[%s6038_s5 + $0x170] ss:$8 sps:$4 sm:$0xff]   ;;  %v3957_v5 = vld [vmem:[%s6038_s5 + $0x164] ss:$8 sps:$4 sm:$0xff]  }
 0x45c   : > { %3310 = vmatprep.subr.bf16.mxu1 %v3951_v25  ;;  %3270 = vmatpush1.bf16.msra.mxu0 %v3953_v29  ;;  %v3959_v48 = vld [vmem:[%s6038_s5 + $0x60] ss:$8 sps:$4 sm:$0xff]   ;;  %v3961_v46 = vld [vmem:[%s6038_s5 + $0x54] ss:$8 sps:$4 sm:$0xff]   ;;  %v3965_v54 = vld [vmem:[%s6038_s5 + $0x50] ss:$8 sps:$4 sm:$0xff]  }
 0x45d   : > { %3311 = vmatpush1.bf16.msra.mxu1 %v3954_v18  ;;  %3271 = vmatprep.subr.bf16.mxu0 %v3955_v34  ;;  %v3960_v11 = vld [vmem:[%s6038_s5 + $0x160] ss:$8 sps:$4 sm:$0xff]   ;;  %v3963_v8 = vld [vmem:[%s6038_s5 + $0x154] ss:$8 sps:$4 sm:$0xff]   ;;  %v3966_v55 = vld [vmem:[%s6038_s5 + $0x150] ss:$8 sps:$4 sm:$0xff]  }
 0x45e   : > { %3312 = vmatprep.subr.bf16.mxu1 %v3957_v5  ;;  %v3967_v32 = vld [vmem:[%s6038_s5 + $0x44] ss:$8 sps:$4 sm:$0xff]   ;;  %v3971_v1 = vld [vmem:[%s6038_s5 + $0x40] ss:$8 sps:$4 sm:$0xff]   ;;  %v3973_v13 = vld [vmem:[%s6038_s5 + $0x34] ss:$8 sps:$4 sm:$0xff]  }
 0x45f   : > { %v3969_v26 = vld [vmem:[%s6038_s5 + $0x144] ss:$8 sps:$4 sm:$0xff]   ;;  %v3972_v53 = vld [vmem:[%s6038_s5 + $0x140] ss:$8 sps:$4 sm:$0xff]   ;;  %v3975_v56 = vld [vmem:[%s6038_s5 + $0x134] ss:$8 sps:$4 sm:$0xff]  }
 0x460   : > { %3272 = vmatpush1.bf16.msra.mxu0 %v3959_v48  ;;  %v3977_v45 = vld [vmem:[%s6038_s5 + $0x30] ss:$8 sps:$4 sm:$0xff]   ;;  %v3979_v17 = vld [vmem:[%s6038_s5 + $0x24] ss:$8 sps:$4 sm:$0xff]   ;;  %v3983_v62 = vld [vmem:[%s6038_s5 + $0x20] ss:$8 sps:$4 sm:$0xff]  }
 0x461   : > { %3313 = vmatpush1.bf16.msra.mxu1 %v3960_v11  ;;  %3273 = vmatprep.subr.bf16.mxu0 %v3961_v46  ;;  %v3978_v59 = vld [vmem:[%s6038_s5 + $0x130] ss:$8 sps:$4 sm:$0xff]   ;;  %v3981_v51 = vld [vmem:[%s6038_s5 + $0x124] ss:$8 sps:$4 sm:$0xff]   ;;  %v3984_v16 = vld [vmem:[%s6038_s5 + $0x120] ss:$8 sps:$4 sm:$0xff]  }
 0x462   : > { %3314 = vmatprep.subr.bf16.mxu1 %v3963_v8  ;;  %v3985_v33 = vld [vmem:[%s6038_s5 + $0x14] ss:$8 sps:$4 sm:$0xff]   ;;  %v3989_v31 = vld [vmem:[%s6038_s5 + $0x10] ss:$8 sps:$4 sm:$0xff]   ;;  %v3991_v19 = vld [vmem:[%s6038_s5 + $0x4] ss:$8 sps:$4 sm:$0xff]  }
 0x463   : > { %v3987_v38 = vld [vmem:[%s6038_s5 + $0x114] ss:$8 sps:$4 sm:$0xff]   ;;  %v3990_v20 = vld [vmem:[%s6038_s5 + $0x110] ss:$8 sps:$4 sm:$0xff]   ;;  %v3993_v41 = vld [vmem:[%s6038_s5 + $0x104] ss:$8 sps:$4 sm:$0xff]  }
 0x464   : > { %3274 = vmatpush1.bf16.msra.mxu0 %v3965_v54  ;;  %v3995_v10 = vld [vmem:[%s6038_s5] ss:$8 sps:$4 sm:$0xff]   ;;  %v3997_v30 = vld [vmem:[%s6038_s5 + $0xf4] ss:$8 sps:$4 sm:$0xff]   ;;  %v4001_v58 = vld [vmem:[%s6038_s5 + $0xf0] ss:$8 sps:$4 sm:$0xff]  }
 0x465   : > { %3315 = vmatpush1.bf16.msra.mxu1 %v3966_v55  ;;  %3275 = vmatprep.subr.bf16.mxu0 %v3967_v32  ;;  %v3996_v15 = vld [vmem:[%s6038_s5 + $0x100] ss:$8 sps:$4 sm:$0xff]   ;;  %v3999_v49 = vld [vmem:[%s6038_s5 + $0x1f4] ss:$8 sps:$4 sm:$0xff]   ;;  %v4002_v2 = vld [vmem:[%s6038_s5 + $0x1f0] ss:$8 sps:$4 sm:$0xff]  }
 0x466   : > { %3316 = vmatprep.subr.bf16.mxu1 %v3969_v26  ;;  %v4003_v3 = vld [vmem:[%s6038_s5 + $0xe4] ss:$8 sps:$4 sm:$0xff]   ;;  %v4007_v40 = vld [vmem:[%s6038_s5 + $0xe0] ss:$8 sps:$4 sm:$0xff]   ;;  %v4009_v60 = vld [vmem:[%s6038_s5 + $0xd4] ss:$8 sps:$4 sm:$0xff]  }
 0x467   : > { %v4005_v52 = vld [vmem:[%s6038_s5 + $0x1e4] ss:$8 sps:$4 sm:$0xff]   ;;  %v4008_v6 = vld [vmem:[%s6038_s5 + $0x1e0] ss:$8 sps:$4 sm:$0xff]   ;;  %v4011_v42 = vld [vmem:[%s6038_s5 + $0x1d4] ss:$8 sps:$4 sm:$0xff]  }
 0x468   : > { %3276 = vmatpush1.bf16.msra.mxu0 %v3971_v1  ;;  %v4013_v35 = vld [vmem:[%s6038_s5 + $0xd0] ss:$8 sps:$4 sm:$0xff]   ;;  %v4015_v24 = vld [vmem:[%s6038_s5 + $0xc4] ss:$8 sps:$4 sm:$0xff]   ;;  %v4019_v44 = vld [vmem:[%s6038_s5 + $0xc0] ss:$8 sps:$4 sm:$0xff]  }
 0x469   : > { %3317 = vmatpush1.bf16.msra.mxu1 %v3972_v53  ;;  %3277 = vmatprep.subr.bf16.mxu0 %v3973_v13  ;;  %v4014_v12 = vld [vmem:[%s6038_s5 + $0x1d0] ss:$8 sps:$4 sm:$0xff]   ;;  %v4017_v7 = vld [vmem:[%s6038_s5 + $0x1c4] ss:$8 sps:$4 sm:$0xff]   ;;  %v4020_v22 = vld [vmem:[%s6038_s5 + $0x1c0] ss:$8 sps:$4 sm:$0xff]  }
 0x46a   : > { %3318 = vmatprep.subr.bf16.mxu1 %v3975_v56  ;;  %v6278_v37 = vld [vmem:[#allocation46_spill] sm:$0xff]  ;;  %v2809_v39 = vld [vmem:[%s6037_s4] sm:$0xf]  ;;  %v6279_v21 = vld [vmem:[#allocation49_spill] sm:$0xff] }
 0x46b   : > { %v2825_v28 = vsub.s32 3, %v6278_v37  ;;  %v4021_v27 = vld [vmem:[%s6038_s5 + $0xb4] ss:$8 sps:$4 sm:$0xff]   ;;  %v2814_v50 = vrot.slane %v2809_v39, %v6279_v21  ;;  %v6281_v43 = vld [vmem:[#allocation53_spill] sm:$0xff]  ;;  %v2808_v5 = vld [vmem:[#allocation2] sm:$0xff] }
 0x46c   : > { %3278 = vmatpush1.bf16.msra.mxu0 %v3977_v45  ;;  %v6280_v0 = vld [vmem:[#allocation50_spill] sm:$0xff]  ;;  %v2822_v63 = vrot.slane %v2809_v39, %v6281_v43  ;;  %v4027_v25 = vld [vmem:[%s6038_s5 + $0xa4] ss:$8 sps:$4 sm:$0xff]   ;;  %v4031_v48 = vld [vmem:[%s6038_s5 + $0xa0] ss:$8 sps:$4 sm:$0xff]  }
 0x46d   : > { %3319 = vmatpush1.bf16.msra.mxu1 %v3978_v59  ;;  %3279 = vmatprep.subr.bf16.mxu0 %v3979_v17  ;;  %v2818_v9 = vrot.slane %v2809_v39, %v6280_v0  ;;  %v4023_v47 = vld [vmem:[%s6038_s5 + $0x1b4] ss:$8 sps:$4 sm:$0xff]   ;;  %v2826_v61 = vrot.slane %v2809_v39, %v2825_v28  ;;  %v4025_v23 = vld [vmem:[%s6038_s5 + $0xb0] ss:$8 sps:$4 sm:$0xff]   ;;  %v4029_v18 = vld [vmem:[%s6038_s5 + $0x1a4] ss:$8 sps:$4 sm:$0xff]  }
 0x46e   : > { %3320 = vmatprep.subr.bf16.mxu1 %v3981_v51  ;;  %v4026_v4 = vld [vmem:[%s6038_s5 + $0x1b0] ss:$8 sps:$4 sm:$0xff]   ;;  %v4032_v46 = vld [vmem:[%s6038_s5 + $0x1a0] ss:$8 sps:$4 sm:$0xff]   ;;  %v4033_v8 = vld [vmem:[%s6038_s5 + $0x94] ss:$8 sps:$4 sm:$0xff]  }
 0x46f   : > { %v2827_v57 = vcombine.low %v2814_v50, %v2818_v9  ;;  %v2828_v36 = vcombine.low %v2822_v63, %v2826_v61  ;;  %v4035_v54 = vld [vmem:[%s6038_s5 + $0x194] ss:$8 sps:$4 sm:$0xff]   ;;  %v4037_v32 = vld [vmem:[%s6038_s5 + $0x90] ss:$8 sps:$4 sm:$0xff]   ;;  %v4039_v1 = vld [vmem:[%s6038_s5 + $0x84] ss:$8 sps:$4 sm:$0xff]  }
 0x470   : > { %3280 = vmatpush1.bf16.msra.mxu0 %v3983_v62  ;;  %v4038_v26 = vld [vmem:[%s6038_s5 + $0x190] ss:$8 sps:$4 sm:$0xff]   ;;  %v4041_v53 = vld [vmem:[%s6038_s5 + $0x184] ss:$8 sps:$4 sm:$0xff]   ;;  %v4043_v51 = vld [vmem:[%s6038_s5 + $0x80] ss:$8 sps:$4 sm:$0xff]  }
 0x471   : > { %3321 = vmatpush1.bf16.msra.mxu1 %v3984_v16  ;;  %3281 = vmatprep.subr.bf16.mxu0 %v3985_v33  ;;  %v2835_v29 = vrot.slane %v2827_v57, %v5737_v14  ;;  %v2842_v34 = vrot.slane %v2828_v36, %v5737_v14  ;;  %v4044_v62 = vld [vmem:[%s6038_s5 + $0x180] ss:$8 sps:$4 sm:$0xff]  }
 0x472   : > { %3322 = vmatprep.subr.bf16.mxu1 %v3987_v38  ;;  %v4045_v38 = vld [vmem:[%s6040_s7 + $0x78] sm:$0xff]  }
 0x473   : > { %v2843_v11 = vcombine.low %v2835_v29, %v2842_v34 }
 0x474   : > { %3282 = vmatpush1.bf16.msra.mxu0 %v3989_v31 }
 0x475   : > { %3323 = vmatpush1.bf16.msra.mxu1 %v3990_v20  ;;  %3283 = vmatprep.subr.bf16.mxu0 %v3991_v19  ;;  %v2845_v55 = vadd.f32 %v2843_v11, %v2808_v5  ;;  %v4046_v19 = vld [vmem:[%s6040_s7 + $0x38] sm:$0xff]  }
 0x476   : > { %3324 = vmatprep.subr.bf16.mxu1 %v3993_v41  ;;  %v4047_v41 = vld [vmem:[%s6040_s7 + $0x70] sm:$0xff]  }
 0x477   : > { %v2846_v13 = vmax.f32 %v2845_v55, 0.0 }
 0x478   : > { %3284 = vmatpush1.bf16.msra.mxu0 %v3995_v10  ;;  %v4048_v10 = vld [vmem:[%s6040_s7 + $0x30] sm:$0xff]  }
 0x479   : > { %3325 = vmatpush1.bf16.msra.mxu1 %v3996_v15  ;;  %3285 = vmatprep.subr.bf16.mxu0 %v3997_v30  ;;  %v2855_v56 = vrot.slane %v2846_v13, %v5737_v14  ;;  %v2848_v45 = vcombine.high %v2846_v13, %v2846_v13  ;;  %v4049_v15 = vld [vmem:[%s6040_s7 + $0x68] sm:$0xff]  }
 0x47a   : > { %3326 = vmatprep.subr.bf16.mxu1 %v3999_v49  ;;  %v4050_v30 = vld [vmem:[%s6040_s7 + $0x28] sm:$0xff]   ;;  %v4051_v49 = vld [vmem:[%s6040_s7 + $0x60] sm:$0xff]  }
 0x47b   : > { %v2863_v59 = vcombine.high %v2855_v56, %v2855_v56  ;;  %v2862_v17 = vrot.slane %v2848_v45, %v5737_v14  ;;  %v2869_v31 = vpack.c.bf16 %v2855_v56, %v2855_v56 }
 0x47c   : > { %3286 = vmatpush2.bf16.msra.mxu0 %v4001_v58  ;;  %v4052_v58 = vld [vmem:[%s6040_s7 + $0x20] sm:$0xff]  }
 0x47d   : > { %3327 = vmatpush2.bf16.msra.mxu1 %v4002_v2  ;;  %3287 = vmatprep.subr.bf16.mxu0 %v4003_v3  ;;  %v2870_v16 = vpack.c.bf16 %v2863_v59, %v2863_v59  ;;  %v2864_v33 = vcombine.high %v2862_v17, %v2862_v17  ;;  %v2871_v20 = vpack.c.bf16 %v2862_v17, %v2862_v17  ;;  %v4053_v2 = vld [vmem:[%s6040_s7 + $0x58] sm:$0xff]  }
 0x47e   : > { %3328 = vmatprep.subr.bf16.mxu1 %v4005_v52  ;;  %v4054_v3 = vld [vmem:[%s6040_s7 + $0x18] sm:$0xff]   ;;  %v4055_v52 = vld [vmem:[%s6040_s7 + $0x50] sm:$0xff]  }
 0x47f   : > { %3301 = vmatprep.mubr.bf16.mxu0 %v2870_v16  ;;  %v2872_v14 = vpack.c.bf16 %v2864_v33, %v2864_v33 }
 0x480   : > { %3288 = vmatpush2.bf16.msra.mxu0 %v4007_v40  ;;  %v4056_v40 = vld [vmem:[%s6040_s7 + $0x10] sm:$0xff]  }
 0x481   : > { %3329 = vmatpush2.bf16.msra.mxu1 %v4008_v6  ;;  %3289 = vmatprep.subr.bf16.mxu0 %v4009_v60  ;;  %v4057_v6 = vld [vmem:[%s6040_s7 + $0x48] sm:$0xff]  }
 0x482   : > { %3330 = vmatprep.subr.bf16.mxu1 %v4011_v42  ;;  %3342 = vmatprep.mubr.bf16.mxu1 %v2872_v14  ;;  %v4058_v60 = vld [vmem:[%s6040_s7 + $0x8] sm:$0xff]   ;;  %v4059_v42 = vld [vmem:[%s6040_s7 + $0x40] sm:$0xff]  }
 0x484   : > { %3290 = vmatpush2.bf16.msra.mxu0 %v4013_v35  ;;  %v4060_v35 = vld [vmem:[%s6040_s7] sm:$0xff]  }
 0x485   : > { %3331 = vmatpush2.bf16.msra.mxu1 %v4014_v12  ;;  %3291 = vmatprep.subr.bf16.mxu0 %v4015_v24  ;;  %v2937_v12 = vld [vmem:[%s6039_s6] sm:$0x3] }
 0x486   : > { %3332 = vmatprep.subr.bf16.mxu1 %v4017_v7  ;;  %v2942_v24 = vrot.slane %v2937_v12, %v6279_v21  ;;  %v2946_v7 = vrot.slane %v2937_v12, %v6280_v0  ;;  %v3750_v0 = vld [vmem:[%s6041_s8] ss:$0 sm:$0xff] }
 0x488   : > { %3292 = vmatpush2.bf16.msra.mxu0 %v4019_v44 }
 0x489   : > { %3333 = vmatpush2.bf16.msra.mxu1 %v4020_v22  ;;  %3293 = vmatprep.subr.bf16.mxu0 %v4021_v27 }
 0x48a   : > { %3334 = vmatprep.subr.bf16.mxu1 %v4023_v47 }
 0x48c   : > { %3294 = vmatpush2.bf16.msra.mxu0 %v4025_v23 }
 0x48d   : > { %3335 = vmatpush2.bf16.msra.mxu1 %v4026_v4  ;;  %3295 = vmatprep.subr.bf16.mxu0 %v4027_v25 }
 0x48e   : > { %3336 = vmatprep.subr.bf16.mxu1 %v4029_v18 }
 0x490   : > { %3296 = vmatpush2.bf16.msra.mxu0 %v4031_v48 }
 0x491   : > { %3337 = vmatpush2.bf16.msra.mxu1 %v4032_v46  ;;  %3297 = vmatprep.subr.bf16.mxu0 %v4033_v8 }
 0x492   : > { %3338 = vmatprep.subr.bf16.mxu1 %v4035_v54 }
 0x494   : > { %3298 = vmatpush2.bf16.msra.mxu0 %v4037_v32 }
 0x495   : > { %3339 = vmatpush2.bf16.msra.mxu1 %v4038_v26  ;;  %3299 = vmatprep.subr.bf16.mxu0 %v4039_v1 }
 0x496   : > { %3340 = vmatprep.subr.bf16.mxu1 %v4041_v53 }
 0x498   : > { %3300 = vmatpush2.bf16.msra.mxu0 %v4043_v51 }
 0x499   : > { %3341 = vmatpush2.bf16.msra.mxu1 %v4044_v62  ;;  %3772 = vmatprep.subr.bf16.mxu0 %v4045_v38 }
 0x49b   : > { %3302 = vmatmul.mubr.bf16.vlgmr.msra.gmra.mxu0 %v2869_v31 }
 0x49c   : > { %3343 = vmatmul.mubr.bf16.vlgmr.msra.gmra.mxu1 %v2871_v20  ;;  %3773 = vmatpush3.bf16.msra.mxu0 %v4046_v19 }
 0x49d   : > { %3774 = vmatprep.subr.bf16.mxu0 %v4047_v41 }
 0x4a0   : > { %3775 = vmatpush3.bf16.msra.mxu0 %v4048_v10 }
 0x4a1   : > { %3776 = vmatprep.subr.bf16.mxu0 %v4049_v15 }
 0x4a4   : > { %3777 = vmatpush3.bf16.msra.mxu0 %v4050_v30 }
 0x4a5   : > { %3778 = vmatprep.subr.bf16.mxu0 %v4051_v49 }
 0x4a8   : > { %3779 = vmatpush3.bf16.msra.mxu0 %v4052_v58 }
 0x4a9   : > { %3780 = vmatprep.subr.bf16.mxu0 %v4053_v2 }
 0x4ac   : > { %3781 = vmatpush3.bf16.msra.mxu0 %v4054_v3 }
 0x4ad   : > { %3782 = vmatprep.subr.bf16.mxu0 %v4055_v52 }
 0x4b0   : > { %3783 = vmatpush3.bf16.msra.mxu0 %v4056_v40 }
 0x4b1   : > { %3784 = vmatprep.subr.bf16.mxu0 %v4057_v6 }
 0x4b4   : > { %3785 = vmatpush3.bf16.msra.mxu0 %v4058_v60 }
 0x4b5   : > { %3786 = vmatprep.subr.bf16.mxu0 %v4059_v42 }
 0x4b8   : > { %3787 = vmatpush3.bf16.msra.mxu0 %v4060_v35 }
 0x55b   : > { %v3303_v37 = vpop.f32.mrf.mxu0 }
 0x55c   : > { %v3344_v28 = vpop.f32.mrf.mxu1  ;;  %v3304_v44 = vadd.f32 %v3303_v37, %v2942_v24 }
 0x55d   : > { %v3305_v22 = vpop.f32.mrf.mxu0 }
 0x55e   : > { %v3346_v39 = vpop.f32.mrf.mxu1  ;;  %v3345_v27 = vadd.f32 %v3344_v28, %v3304_v44  ;;  %v3306_v50 = vadd.f32 %v3305_v22, %v2946_v7 }
 0x55f   : > { %v3307_v9 = vpop.f32.mrf.mxu0 }
 0x560   : > { %v3348_v43 = vpop.f32.mrf.mxu1  ;;  %v3347_v63 = vadd.f32 %v3346_v39, %v3306_v50  ;;  %v3351_v47 = vmax.f32 %v3345_v27, 0.0 }
 0x561   : > { %v3308_v61 = vpop.f32.mrf.mxu0 }
 0x562   : > { %v3349_v23 = vpop.f32.mrf.mxu1  ;;  %v3352_v57 = vmax.f32 %v3347_v63, 0.0  ;;  %v3353_v36 = vpack.c.bf16 %v3351_v47, %v3351_v47 }
 0x564   : > { %v3354_v4 = vpack.c.bf16 %v3352_v57, %v3352_v57 }
 0x566   : > { %3522 = vmatprep.mubr.bf16.mxu0 %v3354_v4 }
 0x567   : > { %3523 = vmatmul.mubr.bf16.vlgmr.msra.gmra.mxu0 %v3353_v36 }
 0x627   : > { %v3788_v21 = vpop.f32.mrf.mxu0 }
 0x629   : > { %v3789_v25 = vpop.f32.mrf.mxu0 }
 0x62a   : > { %v3790_v29 = vadd.f32 %v3789_v25, %v3788_v21 }
 0x62b   : > { %v3791_v18 = vpop.f32.mrf.mxu0 }
 0x62c   : > { %v3525_v34 = vadd.f32 %v3790_v29, %v3750_v0 }
 0x62d   : > { %v3792_v5 = vpop.f32.mrf.mxu0 }
 0x62e   : > { %3530 = vst [vmem:[#allocation4] sm:$0x3] %v3525_v34 }
 0x62f PF: > { %p6003_p12 = scmp.eq.s32.totalorder %s3610_s14, 9  ;;  %s4134_s17 = smov [#allocation4]  }
 0x630   : > { %s3540_s30 = sshll.u32 %s4134_s17, 4  ;;  %s3541_s30 = int_to_ptr.vmem [resolvable:$true] %s3540_s30 }
 0x631   : > { %s4061_s21 = scalar_lea.vmem %s3541_s30, 32  ;;  %p4068_p2 = scmp.lt.s32.totalorder %s3541_s30, %s3541_s30 }
 0x632   : > { %p4062_p13 = scmp.ne.s32.totalorder %s3541_s30, %s4061_s21  ;;  %p4069_p3 = scmp.lt.s32.totalorder %s4061_s21, %s4061_s21 }
 0x634   : > { %p4063_p0 = pnand %p4062_p13, %p6003_p12  ;;  %p4070_p4 = por %p4069_p3, %p4068_p2 }
 0x636   : > { %p4064_p1 = pneg %p4063_p0 }
 0x638   : > { %p4071_p5 = pnand %p4070_p4, %p4064_p1 }
 0x63a   : > { %4074 = shalt.err (!%p4071_p5)
}
 0x63b   : > { %3795 = dma.vmem_to_hbm [thread:$0]  (%p6003_p12), %s3541_s30, 32, %s6042_s9, [#allocation5]  }
 0x63c   : > { %4106 = dma.done.wait (%p6003_p12), [#allocation5], 32  }
 0x63d   : > { %4108 = vsyncadd (%p6003_p12), [#allocation5], 4294967264 }
 0x63e PF: > { %s20_s13 = sadd.s32 1, %s4127_s13   ;;  %s6283_s30 = smov %s4115_s10 }
 0x63f   : > { %p17_p6 = scmp.ge.s32.totalorder %s20_s13, 12   ;;  %s6284_s10 = smov %s4221_s18 }
 0x640   : > { %s6285_s11 = smov %s4123_s12  ;;  %s6286_s12 = smov %s6288_s15 }
 0x641   :  { %19 = sbr.rel (!%p17_p6) target bundleno = 3 (0x3), region = 141 }
 0x646   :  { %3553 = vsyncpa [#allocation5], 1 }
 0x647   :  { %3555 = vsyncpa [#allocation5 + $0x1], 1 }

</bundles_post_ra>
